<compile_context>
chip_gen: v7x
topology: tpu7x:2x2x1
jax: 0.10.0
libtpu: 0.0.40
codegen_flags: <defaults>
</compile_context>

<pallas_src>
import jax
import jax.numpy as jnp
import numpy as np
from jax.experimental import pallas as pl
from jax.experimental.pallas import tpu as pltpu

HIDDEN = 1024


# ----------------------------------------------------------------------------
# Kernel: one row-tile of the 3-layer MLP.
# ----------------------------------------------------------------------------
def _da_ins_head_kernel(x_ref, w1_ref, b1_ref, w2_ref, b2_ref, w3_ref, b3_ref,
                        out_ref):
    x = x_ref[...]                                             # (TR, C) bf16
    # fc1 + ReLU (bf16 MXU, f32 accumulate)
    h1 = jnp.dot(x, w1_ref[...], preferred_element_type=jnp.float32)
    h1 = jnp.maximum(h1 + b1_ref[...], 0.0)
    # TODO(synk): dropout(p=0.5) is identity in eval mode; training-mode
    # dropout (pltpu PRNG masking) not implemented.
    # fc2 + ReLU
    h2 = jnp.dot(h1.astype(jnp.bfloat16), w2_ref[...],
                 preferred_element_type=jnp.float32)
    h2 = jnp.maximum(h2 + b2_ref[...], 0.0)
    # fc3 (1024 -> 1): VPU multiply + lane reduction instead of a degenerate
    # single-column MXU matmul.
    y = jnp.sum(h2 * w3_ref[...], axis=-1, keepdims=True) + b3_ref[...]
    out_ref[...] = y.astype(out_ref.dtype)                     # (TR, 1)


def _row_tile(n_rows):
    # Largest tile that keeps per-step VMEM bounded (h1/h2 f32 intermediates
    # are TRx1024) while amortizing the ~0.35us/step pipeline overhead.
    if n_rows <= 512:
        return 128
    if n_rows <= 2048:
        return 256
    return 512


# ----------------------------------------------------------------------------
# Wrapper: pad rows, tile, call the kernel.
# ----------------------------------------------------------------------------
def da_ins_head_forward(x, params):
    R, C = x.shape
    TR = _row_tile(R)
    Rp = pl.cdiv(R, TR) * TR

    xb = x.astype(jnp.bfloat16)
    if Rp != R:
        xb = jnp.pad(xb, ((0, Rp - R), (0, 0)))
    grid = (Rp // TR,)

    out = pl.pallas_call(
        _da_ins_head_kernel,
        out_shape=jax.ShapeDtypeStruct((Rp, 1), jnp.float32),
        grid_spec=pltpu.PrefetchScalarGridSpec(
            num_scalar_prefetch=0,
            grid=grid,
            in_specs=[
                pl.BlockSpec((TR, C), lambda i: (i, 0)),           # x row-tile
                pl.BlockSpec((C, HIDDEN), lambda i: (0, 0)),       # W1 (resident)
                pl.BlockSpec((1, HIDDEN), lambda i: (0, 0)),       # b1
                pl.BlockSpec((HIDDEN, HIDDEN), lambda i: (0, 0)),  # W2 (resident)
                pl.BlockSpec((1, HIDDEN), lambda i: (0, 0)),       # b2
                pl.BlockSpec((1, HIDDEN), lambda i: (0, 0)),       # W3 row
                pl.BlockSpec((1, 1), lambda i: (0, 0)),            # b3
            ],
            out_specs=pl.BlockSpec((TR, 1), lambda i: (i, 0)),
        ),
        compiler_params=pltpu.CompilerParams(
            dimension_semantics=("parallel",),
            vmem_limit_bytes=32 * 1024 * 1024,
        ),
    )(xb, params["w1"], params["b1"], params["w2"], params["b2"],
      params["w3"], params["b3"])

    return out[:R]                                             # (R, 1) f32


# ----------------------------------------------------------------------------
# Parameter init (mirrors the PyTorch init scheme); weights stored as (in, out).
# ----------------------------------------------------------------------------
def init_params(key, in_channels):
    k1, k2, k3 = jax.random.split(key, 3)
    return {
        "w1": (0.01 * jax.random.normal(k1, (in_channels, HIDDEN),
                                        jnp.float32)).astype(jnp.bfloat16),
        "b1": jnp.zeros((1, HIDDEN), jnp.float32),
        "w2": (0.01 * jax.random.normal(k2, (HIDDEN, HIDDEN),
                                        jnp.float32)).astype(jnp.bfloat16),
        "b2": jnp.zeros((1, HIDDEN), jnp.float32),
        "w3": 0.05 * jax.random.normal(k3, (1, HIDDEN), jnp.float32),
        "b3": jnp.zeros((1, 1), jnp.float32),
    }


# Pure-JAX reference with identical bf16/f32 dtype handling.
def reference_forward(x, params):
    xb = x.astype(jnp.bfloat16)
    h1 = jnp.maximum(
        jnp.dot(xb, params["w1"], preferred_element_type=jnp.float32)
        + params["b1"], 0.0)
    h2 = jnp.maximum(
        jnp.dot(h1.astype(jnp.bfloat16), params["w2"],
                preferred_element_type=jnp.float32) + params["b2"], 0.0)
    return jnp.sum(h2 * params["w3"], axis=-1, keepdims=True) + params["b3"]


if __name__ == "__main__":
    key = jax.random.PRNGKey(0)
    kx, kp = jax.random.split(key)

    in_channels = 64
    num_rois = 10   # deliberately not a multiple of the row tile (exercises padding)

    x = jax.random.normal(kx, (num_rois, in_channels), jnp.float32)
    params = init_params(kp, in_channels)

    out = da_ins_head_forward(x, params)
    out = jax.block_until_ready(out)
    assert out.shape == (num_rois, 1)

    ref = jax.block_until_ready(reference_forward(x, params))
    assert np.allclose(np.asarray(out), np.asarray(ref), atol=2e-3, rtol=2e-2), \
        "Pallas kernel does not match reference"

    print("KERNEL_OK")
</pallas_src>

<mosaic_0001>
module attributes {stable_mosaic.version = 11 : i64} {
  func.func @_da_ins_head_kernel(%arg0: i32, %arg1: memref<128x64xbf16, #tpu.memory_space<vmem>>, %arg2: memref<64x1024xbf16, #tpu.memory_space<vmem>>, %arg3: memref<1x1024xf32, #tpu.memory_space<vmem>>, %arg4: memref<1024x1024xbf16, #tpu.memory_space<vmem>>, %arg5: memref<1x1024xf32, #tpu.memory_space<vmem>>, %arg6: memref<1x1024xf32, #tpu.memory_space<vmem>>, %arg7: memref<1x1xf32, #tpu.memory_space<vmem>>, %arg8: memref<128x1xf32, #tpu.memory_space<vmem>>) attributes {dimension_semantics = [#tpu.dimension_semantics<parallel>], iteration_bounds = array<i64: 1>, scalar_prefetch = 0 : i64, scratch_operands = 0 : i64, tpu.core_type = #tpu.core_type<tc>, window_params = [{transform_indices = @transform_0, window_bounds = array<i64: 128, 64>}, {pipeline_mode = #tpu.pipeline_mode<synchronous>, transform_indices = @transform_1, window_bounds = array<i64: 64, 1024>}, {pipeline_mode = #tpu.pipeline_mode<synchronous>, transform_indices = @transform_2, window_bounds = array<i64: 1, 1024>}, {pipeline_mode = #tpu.pipeline_mode<synchronous>, transform_indices = @transform_3, window_bounds = array<i64: 1024, 1024>}, {pipeline_mode = #tpu.pipeline_mode<synchronous>, transform_indices = @transform_4, window_bounds = array<i64: 1, 1024>}, {pipeline_mode = #tpu.pipeline_mode<synchronous>, transform_indices = @transform_5, window_bounds = array<i64: 1, 1024>}, {pipeline_mode = #tpu.pipeline_mode<synchronous>, transform_indices = @transform_6, window_bounds = array<i64: 1, 1>}, {transform_indices = @transform_7, window_bounds = array<i64: 128, 1>}]} {
    %c0 = arith.constant 0 : index
    %c0_0 = arith.constant 0 : index
    %0 = vector.load %arg1[%c0, %c0_0] : memref<128x64xbf16, #tpu.memory_space<vmem>>, vector<128x64xbf16>
    %c0_1 = arith.constant 0 : index
    %c0_2 = arith.constant 0 : index
    %1 = vector.load %arg2[%c0_1, %c0_2] : memref<64x1024xbf16, #tpu.memory_space<vmem>>, vector<64x1024xbf16>
    %cst = arith.constant dense<0.000000e+00> : vector<128x1024xf32>
    %2 = tpu.matmul %0, %1, %cst {dimension_numbers = #tpu.dot_dimension_numbers<[1], [0], [0], [1], [0, 0, 1, 1], [], []>} : vector<128x64xbf16>, vector<64x1024xbf16>, vector<128x1024xf32> -> vector<128x1024xf32>
    %c0_3 = arith.constant 0 : index
    %c0_4 = arith.constant 0 : index
    %3 = vector.load %arg3[%c0_3, %c0_4] : memref<1x1024xf32, #tpu.memory_space<vmem>>, vector<1x1024xf32>
    %4 = vector.broadcast %3 : vector<1x1024xf32> to vector<128x1024xf32>
    %5 = arith.addf %2, %4 : vector<128x1024xf32>
    %cst_5 = arith.constant 0.000000e+00 : f32
    %6 = vector.broadcast %cst_5 : f32 to vector<128x1024xf32>
    %7 = arith.maximumf %5, %6 : vector<128x1024xf32>
    %8 = arith.truncf %7 : vector<128x1024xf32> to vector<128x1024xbf16>
    %c0_6 = arith.constant 0 : index
    %c0_7 = arith.constant 0 : index
    %9 = vector.load %arg4[%c0_6, %c0_7] : memref<1024x1024xbf16, #tpu.memory_space<vmem>>, vector<1024x1024xbf16>
    %cst_8 = arith.constant dense<0.000000e+00> : vector<128x1024xf32>
    %10 = tpu.matmul %8, %9, %cst_8 {dimension_numbers = #tpu.dot_dimension_numbers<[1], [0], [0], [1], [0, 0, 1, 1], [], []>} : vector<128x1024xbf16>, vector<1024x1024xbf16>, vector<128x1024xf32> -> vector<128x1024xf32>
    %c0_9 = arith.constant 0 : index
    %c0_10 = arith.constant 0 : index
    %11 = vector.load %arg5[%c0_9, %c0_10] : memref<1x1024xf32, #tpu.memory_space<vmem>>, vector<1x1024xf32>
    %12 = vector.broadcast %11 : vector<1x1024xf32> to vector<128x1024xf32>
    %13 = arith.addf %10, %12 : vector<128x1024xf32>
    %cst_11 = arith.constant 0.000000e+00 : f32
    %14 = vector.broadcast %cst_11 : f32 to vector<128x1024xf32>
    %15 = arith.maximumf %13, %14 : vector<128x1024xf32>
    %c0_12 = arith.constant 0 : index
    %c0_13 = arith.constant 0 : index
    %16 = vector.load %arg6[%c0_12, %c0_13] : memref<1x1024xf32, #tpu.memory_space<vmem>>, vector<1x1024xf32>
    %17 = vector.broadcast %16 : vector<1x1024xf32> to vector<128x1024xf32>
    %18 = arith.mulf %15, %17 : vector<128x1024xf32>
    %cst_14 = arith.constant dense<0.000000e+00> : vector<128xf32>
    %19 = vector.multi_reduction <add>, %18, %cst_14 [1] : vector<128x1024xf32> to vector<128xf32>
    %20 = vector.shape_cast %19 : vector<128xf32> to vector<128x1xf32>
    %c0_15 = arith.constant 0 : index
    %c0_16 = arith.constant 0 : index
    %21 = vector.load %arg7[%c0_15, %c0_16] : memref<1x1xf32, #tpu.memory_space<vmem>>, vector<1x1xf32>
    %22 = vector.broadcast %21 : vector<1x1xf32> to vector<128x1xf32>
    %23 = arith.addf %20, %22 : vector<128x1xf32>
    %c0_17 = arith.constant 0 : index
    %c0_18 = arith.constant 0 : index
    %24 = vector.load %arg8[%c0_17, %c0_18] : memref<128x1xf32, #tpu.memory_space<vmem>>, vector<128x1xf32>
    tpu.vector_store %arg8[%c0_17, %c0_18], %23 {strides = array<i32>} : memref<128x1xf32, #tpu.memory_space<vmem>>, vector<128x1xf32>,
    return
  }
  func.func @transform_0(%arg0: i32) -> (i32, i32) {
    %c0_i32 = arith.constant 0 : i32
    %c0_i32_0 = arith.constant 0 : i32
    return %arg0, %c0_i32 : i32, i32
  }
  func.func @transform_1(%arg0: i32) -> (i32, i32) {
    %c0_i32 = arith.constant 0 : i32
    %c0_i32_0 = arith.constant 0 : i32
    %c0_i32_1 = arith.constant 0 : i32
    return %c0_i32, %c0_i32_0 : i32, i32
  }
  func.func @transform_2(%arg0: i32) -> (i32, i32) {
    %c0_i32 = arith.constant 0 : i32
    %c0_i32_0 = arith.constant 0 : i32
    %c0_i32_1 = arith.constant 0 : i32
    return %c0_i32, %c0_i32_0 : i32, i32
  }
  func.func @transform_3(%arg0: i32) -> (i32, i32) {
    %c0_i32 = arith.constant 0 : i32
    %c0_i32_0 = arith.constant 0 : i32
    %c0_i32_1 = arith.constant 0 : i32
    return %c0_i32, %c0_i32_0 : i32, i32
  }
  func.func @transform_4(%arg0: i32) -> (i32, i32) {
    %c0_i32 = arith.constant 0 : i32
    %c0_i32_0 = arith.constant 0 : i32
    %c0_i32_1 = arith.constant 0 : i32
    return %c0_i32, %c0_i32_0 : i32, i32
  }
  func.func @transform_5(%arg0: i32) -> (i32, i32) {
    %c0_i32 = arith.constant 0 : i32
    %c0_i32_0 = arith.constant 0 : i32
    %c0_i32_1 = arith.constant 0 : i32
    return %c0_i32, %c0_i32_0 : i32, i32
  }
  func.func @transform_6(%arg0: i32) -> (i32, i32) {
    %c0_i32 = arith.constant 0 : i32
    %c0_i32_0 = arith.constant 0 : i32
    %c0_i32_1 = arith.constant 0 : i32
    return %c0_i32, %c0_i32_0 : i32, i32
  }
  func.func @transform_7(%arg0: i32) -> (i32, i32) {
    %c0_i32 = arith.constant 0 : i32
    %c0_i32_0 = arith.constant 0 : i32
    return %arg0, %c0_i32 : i32, i32
  }
}

</mosaic_0001>

<bundles_post_ra>
// kernel: tpu_custom_call.1
= control target key start
LH: loop header
LB: loop body
LE: loop exit
PB: predicated region body
PF: predicated region fallthrough
CT: control target
= control target key end

     0   :  { %s9800_s0 = inlined_call_operand.vmem [shape: bf16[128,64], index: 0, kind: input, shape index: {}]   ;;  %s9801_s1 = inlined_call_operand.hbm [shape: bf16[64,1024], index: 1, kind: input, shape index: {}]   ;;  %s9802_s2 = inlined_call_operand.hbm [shape: f32[1,1024], index: 2, kind: input, shape index: {}]   ;;  %s9803_s3 = inlined_call_operand.hbm [shape: bf16[1024,1024], index: 3, kind: input, shape index: {}]   ;;  %s9804_s4 = inlined_call_operand.hbm [shape: f32[1,1024], index: 4, kind: input, shape index: {}]   ;;  %s9805_s5 = inlined_call_operand.hbm [shape: f32[1,1024], index: 5, kind: input, shape index: {}]   ;;  %s9806_s6 = inlined_call_operand.<no memory space> [shape: f32[1,1], index: 6, kind: input, shape index: {}]   ;;  %s9807_s7 = inlined_call_operand.vmem [shape: f32[128,1], index: 7, kind: output, shape index: {}]  }
   0x1   :  { %v12_v0 = vstv %s9806_s6 }
   0x2   :  { %13 = vst [vmem:[#allocation2] sm:$0x1] %v12_v0 }
   0x3   :  { %14 = vsyncpa [#allocation4], 0 }
   0x4   :  { %15 = vsyncpa [#allocation6], 0 }
   0x5   :  { %16 = vsyncpa [#allocation9], 0  ;;  %s7692_s26 = smov [#allocation5]   ;;  %s7693_s28 = smov [#allocation8]  }
   0x6   :  { %s37_s27 = sshll.u32 %s7692_s26, 4  ;;  %s59_s29 = sshll.u32 %s7693_s28, 4  ;;  %s38_s27 = int_to_ptr.vmem [resolvable:$true] %s37_s27  ;;  %s60_s29 = int_to_ptr.vmem [resolvable:$true] %s59_s29 }
   0x7   :  { %s7576_s9 = scalar_lea.hbm %s9802_s2, 128 }
   0x8   :  { %p7577_p0 = scmp.ne.s32.totalorder %s9802_s2, %s7576_s9  ;;  %p7580_p1 = scmp.lt.u32.totalorder %s7576_s9, %s9802_s2 }
   0xa   :  { %p7582_p2 = pnand %p7580_p1, %p7577_p0 }
   0xc   :  { %7585 = shalt.err (!%p7582_p2)
}
   0xd   :  { %s7586_s13 = scalar_lea.vmem %s38_s27, 128  ;;  %p7591_p4 = scmp.lt.s32.totalorder %s38_s27, %s38_s27 }
   0xe   :  { %p7587_p3 = scmp.ne.s32.totalorder %s38_s27, %s7586_s13  ;;  %p7592_p5 = scmp.lt.s32.totalorder %s7586_s13, %s7586_s13 }
  0x10   :  { %p7593_p6 = por %p7592_p5, %p7591_p4 }
  0x12   :  { %p7594_p7 = pnand %p7593_p6, %p7587_p3 }
  0x14   :  { %7597 = shalt.err (!%p7594_p7)
}
  0x15   :  { %40 = dma.hbm_to_vmem [thread:$0]  %s9802_s2, 128, %s38_s27, [#allocation6]  }
  0x16   :  { %s7598_s18 = scalar_lea.hbm %s9804_s4, 128 }
  0x17   :  { %p7599_p8 = scmp.ne.s32.totalorder %s9804_s4, %s7598_s18  ;;  %p7602_p9 = scmp.lt.u32.totalorder %s7598_s18, %s9804_s4 }
  0x19   :  { %p7604_p10 = pnand %p7602_p9, %p7599_p8 }
  0x1b   :  { %7607 = shalt.err (!%p7604_p10)
}
  0x1c   :  { %s7608_s23 = scalar_lea.vmem %s60_s29, 128  ;;  %p7613_p12 = scmp.lt.s32.totalorder %s60_s29, %s60_s29 }
  0x1d   :  { %p7609_p11 = scmp.ne.s32.totalorder %s60_s29, %s7608_s23  ;;  %p7614_p13 = scmp.lt.s32.totalorder %s7608_s23, %s7608_s23 }
  0x1f   :  { %p7615_p0 = por %p7614_p13, %p7613_p12 }
  0x21   :  { %p7616_p1 = pnand %p7615_p0, %p7609_p11 }
  0x23   :  { %7619 = shalt.err (!%p7616_p1)
}
  0x24   :  { %62 = dma.hbm_to_vmem [thread:$0]  %s9804_s4, 128, %s60_s29, [#allocation9]  }
  0x25   :  { %s7694_s25 = smov [#allocation3]   ;;  %s7620_s30 = scalar_lea.hbm %s9801_s1, 4096 }
  0x26   :  { %s24_s26 = sshll.u32 %s7694_s25, 4  ;;  %p7621_p2 = scmp.ne.s32.totalorder %s9801_s1, %s7620_s30  ;;  %s25_s26 = int_to_ptr.vmem [resolvable:$true] %s24_s26 }
  0x27   :  { %p7624_p3 = scmp.lt.u32.totalorder %s7620_s30, %s9801_s1 }
  0x29   :  { %p7626_p4 = pnand %p7624_p3, %p7621_p2 }
  0x2b   :  { %7629 = shalt.err (!%p7626_p4)
}
  0x2c   :  { %s7630_s12 = scalar_lea.vmem %s25_s26, 4096  ;;  %p7635_p6 = scmp.lt.s32.totalorder %s25_s26, %s25_s26 }
  0x2d   :  { %p7631_p5 = scmp.ne.s32.totalorder %s25_s26, %s7630_s12  ;;  %p7636_p7 = scmp.lt.s32.totalorder %s7630_s12, %s7630_s12 }
  0x2f   :  { %p7637_p8 = por %p7636_p7, %p7635_p6 }
  0x31   :  { %p7638_p9 = pnand %p7637_p8, %p7631_p5 }
  0x33   :  { %7641 = shalt.err (!%p7638_p9)
}
  0x34   :  { %s7695_s4 = smov 512   ;;  %s7696_s29 = smov 32  }
  0x35   :  { %30 = dma.hbm_to_vmem [thread:$0]  %s9801_s1, 4096, %s25_s26, [#allocation4], %s7695_s4, %s7695_s4, %s7696_s29  }
  0x36   :  { %s7697_s14 = smov [#allocation7]   ;;  %s7698_s16 = smov [#allocation10]  }
  0x37   :  { %s46_s15 = sshll.u32 %s7697_s14, 4  ;;  %s69_s17 = sshll.u32 %s7698_s16, 4  ;;  %s47_s15 = int_to_ptr.vmem [resolvable:$true] %s46_s15  ;;  %s70_s17 = int_to_ptr.vmem [resolvable:$true] %s69_s17 }
  0x38   :  { %s7642_s20 = scalar_lea.hbm %s9803_s3, 65536 }
  0x39   :  { %p7643_p10 = scmp.ne.s32.totalorder %s9803_s3, %s7642_s20  ;;  %p7646_p11 = scmp.lt.u32.totalorder %s7642_s20, %s9803_s3 }
  0x3b   :  { %p7648_p12 = pnand %p7646_p11, %p7643_p10 }
  0x3d   :  { %7651 = shalt.err (!%p7648_p12)
}
  0x3e   :  { %s7652_s1 = scalar_lea.vmem %s47_s15, 65536  ;;  %p7657_p0 = scmp.lt.s32.totalorder %s47_s15, %s47_s15 }
  0x3f   :  { %p7653_p13 = scmp.ne.s32.totalorder %s47_s15, %s7652_s1  ;;  %p7658_p1 = scmp.lt.s32.totalorder %s7652_s1, %s7652_s1 }
  0x41   :  { %p7659_p2 = por %p7658_p1, %p7657_p0 }
  0x43   :  { %p7660_p3 = pnand %p7659_p2, %p7653_p13 }
  0x45   :  { %7663 = shalt.err (!%p7660_p3)
}
  0x46   :  { %52 = dma.hbm_to_vmem [thread:$0]  %s9803_s3, 65536, %s47_s15, [#allocation6], %s7695_s4, %s7695_s4, %s7696_s29  }
  0x47   :  { %s7664_s28 = scalar_lea.hbm %s9805_s5, 128 }
  0x48   :  { %p7665_p4 = scmp.ne.s32.totalorder %s9805_s5, %s7664_s28  ;;  %p7668_p5 = scmp.lt.u32.totalorder %s7664_s28, %s9805_s5 }
  0x4a   :  { %p7670_p6 = pnand %p7668_p5, %p7665_p4 }
  0x4c   :  { %7673 = shalt.err (!%p7670_p6)
}
  0x4d   :  { %s7674_s11 = scalar_lea.vmem %s70_s17, 128  ;;  %p7679_p8 = scmp.lt.s32.totalorder %s70_s17, %s70_s17 }
  0x4e   :  { %p7675_p7 = scmp.ne.s32.totalorder %s70_s17, %s7674_s11  ;;  %p7680_p9 = scmp.lt.s32.totalorder %s7674_s11, %s7674_s11 }
  0x50   :  { %p7681_p10 = por %p7680_p9, %p7679_p8 }
  0x52   :  { %p7682_p11 = pnand %p7681_p10, %p7675_p7 }
  0x54   :  { %7685 = shalt.err (!%p7682_p11)
}
  0x55   :  { %72 = dma.hbm_to_vmem [thread:$0]  %s9805_s5, 128, %s70_s17, [#allocation9]  }
  0x56   :  { %7686 = dma.done.wait [#allocation4], 4096  }
  0x57   :  { %7687 = vsyncadd [#allocation4], 4294963200 }
  0x58   :  { %7688 = dma.done.wait [#allocation6], 65664  }
  0x59   :  { %7689 = vsyncadd [#allocation6], 4294901632 }
  0x5a   :  { %7690 = dma.done.wait [#allocation9], 256  }
  0x5b   :  { %7691 = vsyncadd [#allocation9], 4294967040  ;;  %v7699_v1 = vmov 0   ;;  %v107_v2 = vld [vmem:[#allocation3] sm:$0xff]  ;;  %v108_v16 = vld [vmem:[#allocation3 + $0x8] sm:$0xff]  ;;  %vm381_vm0 = vcmask 523264  }
  0x5c   :  { %438 = vmatprep.mubr.bf16.mxu0 %v7699_v1  ;;  %551 = vmatprep.mubr.bf16.mxu1 %v7699_v1  ;;  %v111_v3 = vld [vmem:[#allocation3 + $0x20] sm:$0xff]  ;;  %v112_v18 = vld [vmem:[#allocation3 + $0x28] sm:$0xff]  ;;  %v109_v28 = vld [vmem:[#allocation3 + $0x10] sm:$0xff]  ;;  %vm6437_vm1 = vcmask 7168  }
  0x5d   :  { %v115_v4 = vld [vmem:[#allocation3 + $0x40] sm:$0xff]  ;;  %v6470_v5 = vcombine.high %v107_v2, %v111_v3  ;;  %v6469_v6 = vcombine.low %v107_v2, %v111_v3  ;;  %v6472_v19 = vcombine.high %v108_v16, %v112_v18  ;;  %v6471_v20 = vcombine.low %v108_v16, %v112_v18  ;;  %v116_v21 = vld [vmem:[#allocation3 + $0x48] sm:$0xff]  ;;  %v113_v29 = vld [vmem:[#allocation3 + $0x30] sm:$0xff] }
  0x5e   :  { %v119_v7 = vld [vmem:[#allocation3 + $0x60] sm:$0xff]  ;;  %v120_v22 = vld [vmem:[#allocation3 + $0x68] sm:$0xff]  ;;  %v6474_v31 = vcombine.high %v109_v28, %v113_v29  ;;  %v117_v32 = vld [vmem:[#allocation3 + $0x50] sm:$0xff]  ;;  %v6473_v37 = vcombine.low %v109_v28, %v113_v29 }
  0x5f   :  { %v6478_v8 = vcombine.high %v115_v4, %v119_v7  ;;  %v123_v9 = vld [vmem:[#allocation3 + $0x80] sm:$0xff]  ;;  %406 = vmatprep.subr.bf16.mxu0 %v6470_v5  ;;  %v6477_v11 = vcombine.low %v115_v4, %v119_v7  ;;  %v6480_v23 = vcombine.high %v116_v21, %v120_v22  ;;  %v124_v24 = vld [vmem:[#allocation3 + $0x88] sm:$0xff]  ;;  %519 = vmatprep.subr.bf16.mxu1 %v6472_v19  ;;  %v121_v33 = vld [vmem:[#allocation3 + $0x70] sm:$0xff] }
  0x60   :  { %v127_v10 = vld [vmem:[#allocation3 + $0xa0] sm:$0xff]  ;;  %407 = vmatpush1.bf16.msra.mxu0 %v6469_v6  ;;  %v128_v25 = vld [vmem:[#allocation3 + $0xa8] sm:$0xff]  ;;  %520 = vmatpush1.bf16.msra.mxu1 %v6471_v20  ;;  %v6479_v27 = vcombine.low %v116_v21, %v120_v22  ;;  %v6482_v39 = vcombine.high %v117_v32, %v121_v33  ;;  %v125_v41 = vld [vmem:[#allocation3 + $0x90] sm:$0xff]  ;;  %v6481_v45 = vcombine.low %v117_v32, %v121_v33 }
  0x61   :  { %408 = vmatprep.subr.bf16.mxu0 %v6478_v8  ;;  %v6486_v12 = vcombine.high %v123_v9, %v127_v10  ;;  %v131_v13 = vld [vmem:[#allocation3 + $0xc0] sm:$0xff]  ;;  %v6485_v15 = vcombine.low %v123_v9, %v127_v10  ;;  %521 = vmatprep.subr.bf16.mxu1 %v6480_v23  ;;  %v6488_v30 = vcombine.high %v124_v24, %v128_v25  ;;  %v132_v35 = vld [vmem:[#allocation3 + $0xc8] sm:$0xff]  ;;  %v129_v42 = vld [vmem:[#allocation3 + $0xb0] sm:$0xff] }
  0x62   :  { %v135_v14 = vld [vmem:[#allocation3 + $0xe0] sm:$0xff]  ;;  %v136_v36 = vld [vmem:[#allocation3 + $0xe8] sm:$0xff]  ;;  %v6487_v38 = vcombine.low %v124_v24, %v128_v25  ;;  %v110_v43 = vld [vmem:[#allocation3 + $0x18] sm:$0xff]  ;;  %v6490_v47 = vcombine.high %v125_v41, %v129_v42  ;;  %v6489_v54 = vcombine.low %v125_v41, %v129_v42 }
  0x63   :  { %v6494_v17 = vcombine.high %v131_v13, %v135_v14  ;;  %v6493_v26 = vcombine.low %v131_v13, %v135_v14  ;;  %v7808_v34 = vld [vmem:[%s9800_s0] sm:$0xff]   ;;  %v6496_v40 = vcombine.high %v132_v35, %v136_v36  ;;  %v6495_v46 = vcombine.low %v132_v35, %v136_v36  ;;  %v7816_v49 = vld [vmem:[%s9800_s0 + $0x8] sm:$0xff]   ;;  %v133_v50 = vld [vmem:[#allocation3 + $0xd0] sm:$0xff] }
  0x64   :  { %409 = vmatpush1.bf16.msra.mxu0 %v6477_v11  ;;  %522 = vmatpush1.bf16.msra.mxu1 %v6479_v27  ;;  %v114_v44 = vld [vmem:[#allocation3 + $0x38] sm:$0xff]  ;;  %v137_v51 = vld [vmem:[#allocation3 + $0xf0] sm:$0xff]  ;;  %v7820_v58 = vld [vmem:[#allocation7] sm:$0xff] }
  0x65   :  { %410 = vmatprep.subr.bf16.mxu0 %v6486_v12  ;;  %523 = vmatprep.subr.bf16.mxu1 %v6488_v30  ;;  %v6476_v48 = vcombine.high %v110_v43, %v114_v44  ;;  %v118_v52 = vld [vmem:[#allocation3 + $0x58] sm:$0xff]  ;;  %v6475_v55 = vcombine.low %v110_v43, %v114_v44  ;;  %v6498_v56 = vcombine.high %v133_v50, %v137_v51  ;;  %v7822_v59 = vld [vmem:[#allocation7 + $0x20] sm:$0xff]  ;;  %v7840_v8 = vld [vmem:[#allocation7 + $0x8] sm:$0xff] }
  0x66   :  { %v122_v53 = vld [vmem:[#allocation3 + $0x78] sm:$0xff]  ;;  %v6497_v62 = vcombine.low %v133_v50, %v137_v51  ;;  %v6534_v0 = vcombine.high %v7820_v58, %v7822_v59  ;;  %v7833_v2 = vld [vmem:[%s9800_s0 + $0x10] sm:$0xff]   ;;  %v7872_v14 = vld [vmem:[%s9800_s0 + $0x28] sm:$0xff]   ;;  %v6533_v19 = vcombine.low %v7820_v58, %v7822_v59 }
  0x67   :  { %v6484_v57 = vcombine.high %v118_v52, %v122_v53  ;;  %v126_v60 = vld [vmem:[#allocation3 + $0x98] sm:$0xff]  ;;  %v6483_v63 = vcombine.low %v118_v52, %v122_v53  ;;  %v7842_v9 = vld [vmem:[#allocation7 + $0x28] sm:$0xff]  ;;  %v1062_v18 = vld [vmem:[#allocation7 + $0x60] sm:$0xff] }
  0x68   :  { %411 = vmatpush1.bf16.msra.mxu0 %v6485_v15  ;;  %524 = vmatpush1.bf16.msra.mxu1 %v6487_v38  ;;  %v130_v61 = vld [vmem:[#allocation3 + $0xb8] sm:$0xff]  ;;  %v6536_v12 = vcombine.high %v7840_v8, %v7842_v9  ;;  %v7883_v15 = vld [vmem:[%s9800_s0 + $0x30] sm:$0xff]   ;;  %v6535_v29 = vcombine.low %v7840_v8, %v7842_v9 }
  0x69   :  { %412 = vmatprep.subr.bf16.mxu0 %v6494_v17  ;;  %525 = vmatprep.subr.bf16.mxu1 %v6496_v40  ;;  %v6492_v3 = vcombine.high %v126_v60, %v130_v61  ;;  %v134_v4 = vld [vmem:[#allocation3 + $0xd8] sm:$0xff]  ;;  %v6491_v6 = vcombine.low %v126_v60, %v130_v61  ;;  %v1058_v17 = vld [vmem:[#allocation7 + $0x40] sm:$0xff]  ;;  %v1059_v25 = vld [vmem:[#allocation7 + $0x48] sm:$0xff] }
  0x6a   :  { %v138_v5 = vld [vmem:[#allocation3 + $0xf8] sm:$0xff]  ;;  %v6542_v20 = vcombine.high %v1058_v17, %v1062_v18  ;;  %v1066_v21 = vld [vmem:[#allocation7 + $0x80] sm:$0xff]  ;;  %v6541_v23 = vcombine.low %v1058_v17, %v1062_v18  ;;  %v1067_v32 = vld [vmem:[#allocation7 + $0x88] sm:$0xff] }
  0x6b   :  { %v6500_v7 = vcombine.high %v134_v4, %v138_v5  ;;  %v6499_v10 = vcombine.low %v134_v4, %v138_v5  ;;  %v7848_v11 = vld [vmem:[%s9800_s0 + $0x18] sm:$0xff]   ;;  %v7861_v13 = vld [vmem:[%s9800_s0 + $0x20] sm:$0xff]   ;;  %v1070_v22 = vld [vmem:[#allocation7 + $0xa0] sm:$0xff] }
  0x6c   :  { %413 = vmatpush1.bf16.msra.mxu0 %v6493_v26  ;;  %526 = vmatpush1.bf16.msra.mxu1 %v6495_v46  ;;  %v7894_v16 = vld [vmem:[%s9800_s0 + $0x38] sm:$0xff]   ;;  %v6550_v24 = vcombine.high %v1066_v21, %v1070_v22  ;;  %v1074_v27 = vld [vmem:[#allocation7 + $0xc0] sm:$0xff] }
  0x6d   :  { %632 = vmatprep.subr.bf16.mxu0 %v6474_v31  ;;  %745 = vmatprep.subr.bf16.mxu1 %v6476_v48  ;;  %v1063_v26 = vld [vmem:[#allocation7 + $0x68] sm:$0xff]  ;;  %v1078_v28 = vld [vmem:[#allocation7 + $0xe0] sm:$0xff]  ;;  %v6549_v31 = vcombine.low %v1066_v21, %v1070_v22 }
  0x6e   :  { %v6544_v30 = vcombine.high %v1059_v25, %v1063_v26  ;;  %v1071_v33 = vld [vmem:[#allocation7 + $0xa8] sm:$0xff]  ;;  %v6558_v35 = vcombine.high %v1074_v27, %v1078_v28  ;;  %v1082_v36 = vld [vmem:[#allocation7 + $0x100] sm:$0xff]  ;;  %v6543_v38 = vcombine.low %v1059_v25, %v1063_v26  ;;  %v6557_v40 = vcombine.low %v1074_v27, %v1078_v28 }
  0x6f   :  { %6501 = vmatmul.mubr.msk.bf16.vlgmr.msra.gmra.mrb[0].mxu0 %vm381_vm0, %v7808_v34  ;;  %6509 = vmatmul.mubr.msk.bf16.vlgmr.msra.gmra.mrb[0].mxu1 %vm381_vm0, %v7808_v34  ;;  %v1075_v41 = vld [vmem:[#allocation7 + $0xc8] sm:$0xff]  ;;  %v1090_v44 = vld [vmem:[#allocation7 + $0x140] sm:$0xff]  ;;  %v6551_v46 = vcombine.low %v1067_v32, %v1071_v33 }
  0x70   :  { %448 = vmatprep.mubr.bf16.mxu0 %v7699_v1  ;;  %633 = vmatpush1.bf16.msra.mxu0 %v6473_v37  ;;  %v1086_v37 = vld [vmem:[#allocation7 + $0x120] sm:$0xff]  ;;  %v1079_v42 = vld [vmem:[#allocation7 + $0xe8] sm:$0xff] }
  0x71   :  { %634 = vmatprep.subr.bf16.mxu0 %v6482_v39  ;;  %561 = vmatprep.mubr.bf16.mxu1 %v7699_v1  ;;  %v6552_v39 = vcombine.high %v1067_v32, %v1071_v33  ;;  %v6566_v43 = vcombine.high %v1082_v36, %v1086_v37  ;;  %v1083_v48 = vld [vmem:[#allocation7 + $0x108] sm:$0xff]  ;;  %v1098_v52 = vld [vmem:[#allocation7 + $0x180] sm:$0xff] }
  0x72   :  { %746 = vmatpush1.bf16.msra.mxu1 %v6475_v55  ;;  %v1087_v50 = vld [vmem:[#allocation7 + $0x128] sm:$0xff]  ;;  %v1102_v53 = vld [vmem:[#allocation7 + $0x1a0] sm:$0xff] }
  0x73   :  { %747 = vmatprep.subr.bf16.mxu1 %v6484_v57  ;;  %v6568_v55 = vcombine.high %v1083_v48, %v1087_v50  ;;  %v1091_v57 = vld [vmem:[#allocation7 + $0x148] sm:$0xff]  ;;  %v6582_v59 = vcombine.high %v1098_v52, %v1102_v53  ;;  %v1106_v60 = vld [vmem:[#allocation7 + $0x1c0] sm:$0xff] }
  0x74   :  { %635 = vmatpush1.bf16.msra.mxu0 %v6481_v45  ;;  %v1094_v45 = vld [vmem:[#allocation7 + $0x160] sm:$0xff]  ;;  %v1095_v58 = vld [vmem:[#allocation7 + $0x168] sm:$0xff] }
  0x75   :  { %636 = vmatprep.subr.bf16.mxu0 %v6490_v47  ;;  %v6565_v47 = vcombine.low %v1082_v36, %v1086_v37  ;;  %v6574_v51 = vcombine.high %v1090_v44, %v1094_v45  ;;  %v1110_v61 = vld [vmem:[#allocation7 + $0x1e0] sm:$0xff]  ;;  %v7934_v17 = vld [vmem:[#allocation7 + $0x408] sm:$0xff] }
  0x76   :  { %748 = vmatpush1.bf16.msra.mxu1 %v6483_v63  ;;  %v6581_v63 = vcombine.low %v1098_v52, %v1102_v53  ;;  %v6590_v4 = vcombine.high %v1106_v60, %v1110_v61  ;;  %v1114_v5 = vld [vmem:[#allocation7 + $0x200] sm:$0xff]  ;;  %v6589_v9 = vcombine.low %v1106_v60, %v1110_v61  ;;  %v1107_v18 = vld [vmem:[#allocation7 + $0x1c8] sm:$0xff] }
  0x77   :  { %6502 = vmatmul.mubr.msk.bf16.gmra.mrb[4].mxu0 %vm381_vm0, %v7816_v49  ;;  %749 = vmatprep.subr.bf16.mxu1 %v6492_v3  ;;  %v1103_v3 = vld [vmem:[#allocation7 + $0x1a8] sm:$0xff]  ;;  %v1122_v21 = vld [vmem:[#allocation7 + $0x240] sm:$0xff] }
  0x78   :  { %458 = vmatprep.mubr.bf16.mxu0 %v7699_v1  ;;  %637 = vmatpush1.bf16.msra.mxu0 %v6489_v54  ;;  %v6559_v54 = vcombine.low %v1075_v41, %v1079_v42  ;;  %v1126_v22 = vld [vmem:[#allocation7 + $0x260] sm:$0xff]  ;;  %v1115_v28 = vld [vmem:[#allocation7 + $0x208] sm:$0xff] }
  0x79   :  { %638 = vmatprep.subr.bf16.mxu0 %v6498_v56  ;;  %6510 = vmatmul.mubr.msk.bf16.gmra.mrb[4].mxu1 %vm381_vm0, %v7816_v49  ;;  %v6573_v56 = vcombine.low %v1090_v44, %v1094_v45  ;;  %v1134_v32 = vld [vmem:[#allocation7 + $0x2a0] sm:$0xff]  ;;  %v6605_v36 = vcombine.low %v1122_v21, %v1126_v22  ;;  %v1123_v37 = vld [vmem:[#allocation7 + $0x248] sm:$0xff] }
  0x7a   :  { %571 = vmatprep.mubr.bf16.mxu1 %v7699_v1  ;;  %750 = vmatpush1.bf16.msra.mxu1 %v6491_v6  ;;  %v1118_v6 = vld [vmem:[#allocation7 + $0x220] sm:$0xff]  ;;  %v1131_v44 = vld [vmem:[#allocation7 + $0x288] sm:$0xff] }
  0x7b   :  { %751 = vmatprep.subr.bf16.mxu1 %v6500_v7  ;;  %v6575_v7 = vcombine.low %v1091_v57, %v1095_v58  ;;  %v6597_v27 = vcombine.low %v1114_v5, %v1118_v6  ;;  %v1135_v45 = vld [vmem:[#allocation7 + $0x2a8] sm:$0xff] }
  0x7c   :  { %639 = vmatpush1.bf16.msra.mxu0 %v6497_v62  ;;  %v6567_v62 = vcombine.low %v1083_v48, %v1087_v50  ;;  %v6616_v50 = vcombine.high %v1131_v44, %v1135_v45  ;;  %v1139_v52 = vld [vmem:[#allocation7 + $0x2c8] sm:$0xff] }
  0x7d   :  { %4164 = vmatprep.subr.bf16.mxu0 %v6534_v0  ;;  %v1099_v0 = vld [vmem:[#allocation7 + $0x188] sm:$0xff] }
  0x7e   :  { %752 = vmatpush1.bf16.msra.mxu1 %v6499_v10  ;;  %v6584_v8 = vcombine.high %v1099_v0, %v1103_v3  ;;  %v7930_v10 = vld [vmem:[#allocation7 + $0x400] sm:$0xff]  ;;  %v6583_v25 = vcombine.low %v1099_v0, %v1103_v3  ;;  %v1143_v53 = vld [vmem:[#allocation7 + $0x2e8] sm:$0xff] }
  0x7f   :  { %6503 = vmatmul.mubr.msk.bf16.gmra.mrb[8].mxu0 %vm381_vm0, %v7833_v2  ;;  %4616 = vmatprep.subr.bf16.mxu1 %v6536_v12  ;;  %v7932_v12 = vld [vmem:[#allocation7 + $0x420] sm:$0xff]  ;;  %v1151_v60 = vld [vmem:[#allocation7 + $0x328] sm:$0xff] }
  0x80   :  { %468 = vmatprep.mubr.bf16.mxu0 %v7699_v1 }
  0x81   :  { %6511 = vmatmul.mubr.msk.bf16.gmra.mrb[8].mxu1 %vm381_vm0, %v7833_v2 }
  0x82   :  { %581 = vmatprep.mubr.bf16.mxu1 %v7699_v1 }
  0x87   :  { %6504 = vmatmul.mubr.msk.bf16.gmra.mrb[12].mxu0 %vm381_vm0, %v7848_v11 }
  0x88   :  { %478 = vmatprep.mubr.bf16.mxu0 %v7699_v1 }
  0x89   :  { %6512 = vmatmul.mubr.msk.bf16.gmra.mrb[12].mxu1 %vm381_vm0, %v7848_v11 }
  0x8a   :  { %591 = vmatprep.mubr.bf16.mxu1 %v7699_v1 }
  0x8f   :  { %6505 = vmatmul.mubr.msk.bf16.gmra.mrb[16].mxu0 %vm381_vm0, %v7861_v13 }
  0x90   :  { %488 = vmatprep.mubr.bf16.mxu0 %v7699_v1 }
  0x91   :  { %6513 = vmatmul.mubr.msk.bf16.gmra.mrb[16].mxu1 %vm381_vm0, %v7861_v13 }
  0x92   :  { %601 = vmatprep.mubr.bf16.mxu1 %v7699_v1 }
  0x97   :  { %6506 = vmatmul.mubr.msk.bf16.gmra.mrb[20].mxu0 %vm381_vm0, %v7872_v14 }
  0x98   :  { %498 = vmatprep.mubr.bf16.mxu0 %v7699_v1 }
  0x99   :  { %6514 = vmatmul.mubr.msk.bf16.gmra.mrb[20].mxu1 %vm381_vm0, %v7872_v14 }
  0x9a   :  { %611 = vmatprep.mubr.bf16.mxu1 %v7699_v1 }
  0x9f   :  { %6507 = vmatmul.mubr.msk.bf16.gmra.mrb[24].mxu0 %vm381_vm0, %v7883_v15 }
  0xa0   :  { %508 = vmatprep.mubr.bf16.mxu0 %v7699_v1 }
  0xa1   :  { %6515 = vmatmul.mubr.msk.bf16.gmra.mrb[24].mxu1 %vm381_vm0, %v7883_v15 }
  0xa2   :  { %621 = vmatprep.mubr.bf16.mxu1 %v7699_v1 }
  0xa7   :  { %6508 = vmatmul.mubr.msk.bf16.gmra.mrb[28].mxu0 %vm381_vm0, %v7894_v16 }
  0xa8   :  { %664 = vmatprep.mubr.bf16.mxu0 %v7699_v1 }
  0xa9   :  { %6516 = vmatmul.mubr.msk.bf16.gmra.mrb[28].mxu1 %vm381_vm0, %v7894_v16 }
  0xaa   :  { %777 = vmatprep.mubr.bf16.mxu1 %v7699_v1 }
  0xaf   :  { %6517 = vmatmul.mubr.msk.bf16.vlgmr.msra.gmra.mrb[32].mxu0 %vm381_vm0, %v7808_v34 }
  0xb0   :  { %674 = vmatprep.mubr.bf16.mxu0 %v7699_v1  ;;  %4165 = vmatpush1.bf16.msra.mxu0 %v6533_v19  ;;  %v1111_v19 = vld [vmem:[#allocation7 + $0x1e8] sm:$0xff] }
  0xb1   :  { %4166 = vmatprep.subr.bf16.mxu0 %v6542_v20  ;;  %6525 = vmatmul.mubr.msk.bf16.vlgmr.msra.gmra.mrb[32].mxu1 %vm381_vm0, %v7808_v34  ;;  %v6560_v34 = vcombine.high %v1075_v41, %v1079_v42  ;;  %v7936_v20 = vld [vmem:[#allocation7 + $0x428] sm:$0xff]  ;;  %v6592_v26 = vcombine.high %v1107_v18, %v1111_v19  ;;  %v6591_v33 = vcombine.low %v1107_v18, %v1111_v19  ;;  %v1142_v41 = vld [vmem:[#allocation7 + $0x2e0] sm:$0xff] }
  0xb2   :  { %4617 = vmatpush1.bf16.msra.mxu1 %v6535_v29  ;;  %787 = vmatprep.mubr.bf16.mxu1 %v7699_v1  ;;  %v1119_v29 = vld [vmem:[#allocation7 + $0x228] sm:$0xff] }
  0xb3   :  { %4618 = vmatprep.subr.bf16.mxu1 %v6544_v30  ;;  %v6606_v30 = vcombine.high %v1122_v21, %v1126_v22  ;;  %v6599_v42 = vcombine.low %v1115_v28, %v1119_v29  ;;  %v1163_v19 = vld [vmem:[#allocation7 + $0x388] sm:$0xff] }
  0xb4   :  { %4167 = vmatpush1.bf16.msra.mxu0 %v6541_v23  ;;  %v6661_v23 = vcombine.low %v7930_v10, %v7932_v12 }
  0xb5   :  { %4168 = vmatprep.subr.bf16.mxu0 %v6550_v24  ;;  %v6663_v24 = vcombine.low %v7934_v17, %v7936_v20 }
  0xb6   :  { %4619 = vmatpush1.bf16.msra.mxu1 %v6543_v38  ;;  %v1127_v38 = vld [vmem:[#allocation7 + $0x268] sm:$0xff] }
  0xb7   :  { %6518 = vmatmul.mubr.msk.bf16.gmra.mrb[36].mxu0 %vm381_vm0, %v7816_v49  ;;  %4620 = vmatprep.subr.bf16.mxu1 %v6552_v39  ;;  %v6607_v48 = vcombine.low %v1123_v37, %v1127_v38 }
  0xb8   :  { %684 = vmatprep.mubr.bf16.mxu0 %v7699_v1  ;;  %4169 = vmatpush1.bf16.msra.mxu0 %v6549_v31  ;;  %v1130_v31 = vld [vmem:[#allocation7 + $0x280] sm:$0xff] }
  0xb9   :  { %4170 = vmatprep.subr.bf16.mxu0 %v6558_v35  ;;  %6526 = vmatmul.mubr.msk.bf16.gmra.mrb[36].mxu1 %vm381_vm0, %v7816_v49  ;;  %v6576_v49 = vcombine.high %v1091_v57, %v1095_v58  ;;  %v6600_v35 = vcombine.high %v1115_v28, %v1119_v29  ;;  %v6614_v39 = vcombine.high %v1130_v31, %v1134_v32  ;;  %v1175_v28 = vld [vmem:[#allocation7 + $0x3e8] sm:$0xff] }
  0xba   :  { %4621 = vmatpush1.bf16.msra.mxu1 %v6551_v46  ;;  %797 = vmatprep.mubr.bf16.mxu1 %v7699_v1  ;;  %v6615_v57 = vcombine.low %v1131_v44, %v1135_v45  ;;  %v6662_v29 = vcombine.high %v7930_v10, %v7932_v12  ;;  %v8070_v10 = vld [vmem:[#allocation7 + $0x500] sm:$0xff] }
  0xbb   :  { %4622 = vmatprep.subr.bf16.mxu1 %v6560_v34  ;;  %v1146_v34 = vld [vmem:[#allocation7 + $0x300] sm:$0xff] }
  0xbc   :  { %4171 = vmatpush1.bf16.msra.mxu0 %v6557_v40  ;;  %v1138_v40 = vld [vmem:[#allocation7 + $0x2c0] sm:$0xff] }
  0xbd   :  { %4172 = vmatprep.subr.bf16.mxu0 %v6566_v43  ;;  %v6613_v43 = vcombine.low %v1130_v31, %v1134_v32  ;;  %v6622_v46 = vcombine.high %v1138_v40, %v1142_v41  ;;  %v141_v32 = vlaneseq  ;;  %v8072_v12 = vld [vmem:[#allocation7 + $0x520] sm:$0xff] }
  0xbe   :  { %4623 = vmatpush1.bf16.msra.mxu1 %v6559_v54 }
  0xbf   :  { %6519 = vmatmul.mubr.msk.bf16.gmra.mrb[40].mxu0 %vm381_vm0, %v7833_v2  ;;  %4624 = vmatprep.subr.bf16.mxu1 %v6568_v55  ;;  %v1154_v55 = vld [vmem:[#allocation7 + $0x340] sm:$0xff] }
  0xc0   :  { %694 = vmatprep.mubr.bf16.mxu0 %v7699_v1  ;;  %4173 = vmatpush1.bf16.msra.mxu0 %v6565_v47  ;;  %v1150_v47 = vld [vmem:[#allocation7 + $0x320] sm:$0xff] }
  0xc1   :  { %4174 = vmatprep.subr.bf16.mxu0 %v6574_v51  ;;  %6527 = vmatmul.mubr.msk.bf16.gmra.mrb[40].mxu1 %vm381_vm0, %v7833_v2  ;;  %v6598_v2 = vcombine.high %v1114_v5, %v1118_v6  ;;  %v6621_v51 = vcombine.low %v1138_v40, %v1142_v41  ;;  %v6630_v54 = vcombine.high %v1146_v34, %v1150_v47  ;;  %v1159_v5 = vld [vmem:[#allocation7 + $0x368] sm:$0xff] }
  0xc2   :  { %4625 = vmatpush1.bf16.msra.mxu1 %v6567_v62  ;;  %807 = vmatprep.mubr.bf16.mxu1 %v7699_v1  ;;  %v6629_v58 = vcombine.low %v1146_v34, %v1150_v47  ;;  %v1162_v62 = vld [vmem:[#allocation7 + $0x380] sm:$0xff] }
  0xc3   :  { %4626 = vmatprep.subr.bf16.mxu1 %v6576_v49  ;;  %v1166_v49 = vld [vmem:[#allocation7 + $0x3a0] sm:$0xff] }
  0xc4   :  { %4175 = vmatpush1.bf16.msra.mxu0 %v6573_v56  ;;  %v1158_v56 = vld [vmem:[#allocation7 + $0x360] sm:$0xff]  ;;  %v6646_v6 = vcombine.high %v1162_v62, %v1166_v49  ;;  %v6645_v18 = vcombine.low %v1162_v62, %v1166_v49 }
  0xc5   :  { %4176 = vmatprep.subr.bf16.mxu0 %v6582_v59  ;;  %v1147_v59 = vld [vmem:[#allocation7 + $0x308] sm:$0xff]  ;;  %v6638_v61 = vcombine.high %v1154_v55, %v1158_v56  ;;  %v6637_v3 = vcombine.low %v1154_v55, %v1158_v56  ;;  %v7999_v47 = vld [vmem:[#allocation7 + $0x440] sm:$0xff] }
  0xc6   :  { %4627 = vmatpush1.bf16.msra.mxu1 %v6575_v7  ;;  %v6632_v0 = vcombine.high %v1147_v59, %v1151_v60  ;;  %v1170_v7 = vld [vmem:[#allocation7 + $0x3c0] sm:$0xff] }
  0xc7   :  { %6520 = vmatmul.mubr.msk.bf16.gmra.mrb[44].mxu0 %vm381_vm0, %v7848_v11  ;;  %4628 = vmatprep.subr.bf16.mxu1 %v6584_v8  ;;  %v1174_v8 = vld [vmem:[#allocation7 + $0x3e0] sm:$0xff] }
  0xc8   :  { %704 = vmatprep.mubr.bf16.mxu0 %v7699_v1  ;;  %4177 = vmatpush1.bf16.msra.mxu0 %v6581_v63  ;;  %v6623_v63 = vcombine.low %v1139_v52, %v1143_v53  ;;  %v6654_v21 = vcombine.high %v1170_v7, %v1174_v8  ;;  %v8007_v56 = vld [vmem:[#allocation7 + $0x480] sm:$0xff] }
  0xc9   :  { %4178 = vmatprep.subr.bf16.mxu0 %v6590_v4  ;;  %6528 = vmatmul.mubr.msk.bf16.gmra.mrb[44].mxu1 %vm381_vm0, %v7848_v11  ;;  %v6608_v11 = vcombine.high %v1123_v37, %v1127_v38  ;;  %v1155_v4 = vld [vmem:[#allocation7 + $0x348] sm:$0xff] }
  0xca   :  { %4629 = vmatpush1.bf16.msra.mxu1 %v6583_v25  ;;  %817 = vmatprep.mubr.bf16.mxu1 %v7699_v1  ;;  %v6639_v22 = vcombine.low %v1155_v4, %v1159_v5 }
  0xcb   :  { %4630 = vmatprep.subr.bf16.mxu1 %v6592_v26  ;;  %v6653_v26 = vcombine.low %v1170_v7, %v1174_v8 }
  0xcc   :  { %4179 = vmatpush1.bf16.msra.mxu0 %v6589_v9  ;;  %v6631_v9 = vcombine.low %v1147_v59, %v1151_v60  ;;  %v8017_v59 = vld [vmem:[#allocation7 + $0x488] sm:$0xff] }
  0xcd   :  { %4180 = vmatprep.subr.bf16.mxu0 %v6598_v2  ;;  %v1167_v2 = vld [vmem:[#allocation7 + $0x3a8] sm:$0xff] }
  0xce   :  { %4631 = vmatpush1.bf16.msra.mxu1 %v6591_v33  ;;  %v6648_v25 = vcombine.high %v1163_v19, %v1167_v2  ;;  %v7971_v33 = vshrl.u32 %v141_v32, 7  ;;  %v8019_v60 = vld [vmem:[#allocation7 + $0x4a8] sm:$0xff] }
  0xcf   :  { %6521 = vmatmul.mubr.msk.bf16.gmra.mrb[48].mxu0 %vm381_vm0, %v7861_v13  ;;  %4632 = vmatprep.subr.bf16.mxu1 %v6600_v35  ;;  %v8067_v32 = vld [vmem:[#allocation7 + $0x4e8] sm:$0xff] }
  0xd0   :  { %714 = vmatprep.mubr.bf16.mxu0 %v7699_v1  ;;  %4181 = vmatpush1.bf16.msra.mxu0 %v6597_v27  ;;  %v1171_v27 = vld [vmem:[#allocation7 + $0x3c8] sm:$0xff]  ;;  %v7974_v35 = vsub.s32 0, %v7971_v33  ;;  %v7979_v37 = vsub.s32 1, %v7971_v33 }
  0xd1   :  { %4182 = vmatprep.subr.bf16.mxu0 %v6606_v30  ;;  %6529 = vmatmul.mubr.msk.bf16.gmra.mrb[48].mxu1 %vm381_vm0, %v7861_v13  ;;  %v6624_v13 = vcombine.high %v1139_v52, %v1143_v53  ;;  %v6647_v30 = vcombine.low %v1163_v19, %v1167_v2  ;;  %v6656_v31 = vcombine.high %v1171_v27, %v1175_v28  ;;  %v8003_v52 = vld [vmem:[#allocation7 + $0x448] sm:$0xff] }
  0xd2   :  { %4633 = vmatpush1.bf16.msra.mxu1 %v6599_v42  ;;  %827 = vmatprep.mubr.bf16.mxu1 %v7699_v1  ;;  %9914 = vst [vmem:[#allocation14_spill] sm:$0xff] %v7974_v35  ;;  %9915 = vst [vmem:[#allocation15_spill] sm:$0xff] %v7979_v37  ;;  %v8005_v53 = vld [vmem:[#allocation7 + $0x468] sm:$0xff] }
  0xd3   :  { %4634 = vmatprep.subr.bf16.mxu1 %v6608_v11 }
  0xd4   :  { %4183 = vmatpush1.bf16.msra.mxu0 %v6605_v36  ;;  %v7976_v36 = vld [vmem:[#allocation5] sm:$0xff] }
  0xd5   :  { %4184 = vmatprep.subr.bf16.mxu0 %v6614_v39  ;;  %v7987_v38 = vrot.slane %v7976_v36, %v7979_v37 }
  0xd6   :  { %4635 = vmatpush1.bf16.msra.mxu1 %v6607_v48 }
  0xd7   :  { %6522 = vmatmul.mubr.msk.bf16.gmra.mrb[52].mxu0 %vm381_vm0, %v7872_v14  ;;  %4636 = vmatprep.subr.bf16.mxu1 %v6616_v50 }
  0xd8   :  { %724 = vmatprep.mubr.bf16.mxu0 %v7699_v1  ;;  %4185 = vmatpush1.bf16.msra.mxu0 %v6613_v43  ;;  %v7992_v43 = vsub.s32 2, %v7971_v33 }
  0xd9   :  { %4186 = vmatprep.subr.bf16.mxu0 %v6622_v46  ;;  %6530 = vmatmul.mubr.msk.bf16.gmra.mrb[52].mxu1 %vm381_vm0, %v7872_v14  ;;  %v6640_v14 = vcombine.high %v1155_v4, %v1159_v5  ;;  %v7996_v46 = vsub.s32 3, %v7971_v33 }
  0xda   :  { %4637 = vmatpush1.bf16.msra.mxu1 %v6615_v57  ;;  %837 = vmatprep.mubr.bf16.mxu1 %v7699_v1  ;;  %9916 = vst [vmem:[#allocation16_spill] sm:$0xff] %v7992_v43  ;;  %v8009_v57 = vld [vmem:[#allocation7 + $0x4a0] sm:$0xff] }
  0xdb   :  { %4638 = vmatprep.subr.bf16.mxu1 %v6624_v13  ;;  %9917 = vst [vmem:[#allocation17_spill] sm:$0xff] %v7996_v46  ;;  %v8013_v13 = vrot.slane %v7976_v36, %v7992_v43  ;;  %v6677_v7 = vcombine.low %v8007_v56, %v8009_v57  ;;  %v6678_v8 = vcombine.high %v8007_v56, %v8009_v57  ;;  %v8131_v56 = vld [vmem:[#allocation7 + $0x580] sm:$0xff]  ;;  %v8414_v43 = vld [vmem:[#allocation7 + $0x7a8] sm:$0xff] }
  0xdc   :  { %4187 = vmatpush1.bf16.msra.mxu0 %v6621_v51  ;;  %v8001_v51 = vld [vmem:[#allocation7 + $0x460] sm:$0xff] }
  0xdd   :  { %4188 = vmatprep.subr.bf16.mxu0 %v6630_v54  ;;  %v8133_v57 = vld [vmem:[#allocation7 + $0x5a0] sm:$0xff] }
  0xde   :  { %4639 = vmatpush1.bf16.msra.mxu1 %v6623_v63  ;;  %v6669_v63 = vcombine.low %v7999_v47, %v8001_v51 }
  0xdf   :  { %6523 = vmatmul.mubr.msk.bf16.gmra.mrb[56].mxu0 %vm381_vm0, %v7883_v15  ;;  %4640 = vmatprep.subr.bf16.mxu1 %v6632_v0  ;;  %v6670_v0 = vcombine.high %v7999_v47, %v8001_v51  ;;  %v8085_v51 = vld [vmem:[#allocation7 + $0x528] sm:$0xff] }
  0xe0   :  { %734 = vmatprep.mubr.bf16.mxu0 %v7699_v1  ;;  %4189 = vmatpush1.bf16.msra.mxu0 %v6629_v58 }
  0xe1   :  { %4190 = vmatprep.subr.bf16.mxu0 %v6638_v61  ;;  %6531 = vmatmul.mubr.msk.bf16.gmra.mrb[56].mxu1 %vm381_vm0, %v7883_v15  ;;  %v6664_v15 = vcombine.high %v7934_v17, %v7936_v20  ;;  %v8023_v61 = vrot.slane %v7976_v36, %v7996_v46 }
  0xe2   :  { %4641 = vmatpush1.bf16.msra.mxu1 %v6631_v9  ;;  %847 = vmatprep.mubr.bf16.mxu1 %v7699_v1  ;;  %v6655_v1 = vcombine.low %v1171_v27, %v1175_v28  ;;  %v8040_v9 = vld [vmem:[#allocation7 + $0x4c0] sm:$0xff]  ;;  %v6680_v28 = vcombine.high %v8017_v59, %v8019_v60 }
  0xe3   :  { %4642 = vmatprep.subr.bf16.mxu1 %v6640_v14  ;;  %v8042_v14 = vld [vmem:[#allocation7 + $0x4e0] sm:$0xff] }
  0xe4   :  { %4191 = vmatpush1.bf16.msra.mxu0 %v6637_v3  ;;  %v6671_v3 = vcombine.low %v8003_v52, %v8005_v53 }
  0xe5   :  { %4192 = vmatprep.subr.bf16.mxu0 %v6646_v6  ;;  %v6672_v6 = vcombine.high %v8003_v52, %v8005_v53 }
  0xe6   :  { %4643 = vmatpush1.bf16.msra.mxu1 %v6639_v22 }
  0xe7   :  { %6524 = vmatmul.mubr.msk.bf16.gmra.mrb[60].mxu0 %vm381_vm0, %v7894_v16  ;;  %4644 = vmatprep.subr.bf16.mxu1 %v6648_v25 }
  0xe8   :  { %4193 = vmatpush1.bf16.msra.mxu0 %v6645_v18 }
  0xe9   :  { %4194 = vmatprep.subr.bf16.mxu0 %v6654_v21  ;;  %6532 = vmatmul.mubr.msk.bf16.gmra.mrb[60].mxu1 %vm381_vm0, %v7894_v16  ;;  %v7983_v16 = vrot.slane %v7976_v36, %v7974_v35  ;;  %v6679_v21 = vcombine.low %v8017_v59, %v8019_v60 }
  0xea   :  { %4645 = vmatpush1.bf16.msra.mxu1 %v6647_v30 }
  0xeb   :  { %4646 = vmatprep.subr.bf16.mxu1 %v6656_v31 }
  0xec   :  { %4195 = vmatpush1.bf16.msra.mxu0 %v6653_v26 }
  0xed   :  { %4277 = vmatprep.subr.bf16.mxu0 %v6662_v29 }
  0xee   :  { %4647 = vmatpush1.bf16.msra.mxu1 %v6655_v1  ;;  %v6686_v1 = vcombine.high %v8040_v9, %v8042_v14 }
  0xef   :  { %4729 = vmatprep.subr.bf16.mxu1 %v6664_v15  ;;  %v8065_v15 = vld [vmem:[#allocation7 + $0x4c8] sm:$0xff] }
  0xf0   :  { %v6687_v47 = vcombine.low %v8065_v15, %v8067_v32 }
 0x142   :  { %v440_v39 = vpop.f32.mrb[0].mxu0  ;;  %v553_v18 = vpop.f32.mrb[0].mxu1 }
 0x143   :  { %v441_v40 = vadd.f32 %v440_v39, %v7983_v16  ;;  %v442_v41 = vpop.f32.mrb[1].mxu0  ;;  %v554_v22 = vadd.f32 %v553_v18, %v8013_v13  ;;  %v555_v25 = vpop.f32.mrb[1].mxu1  ;;  %v8098_v18 = vld [vmem:[#allocation7 + $0x560] sm:$0xff] }
 0x144   :  { %v443_v42 = vadd.f32 %v442_v41, %v7987_v38  ;;  %v444_v11 = vpop.f32.mrb[2].mxu0  ;;  %v556_v29 = vadd.f32 %v555_v25, %v8023_v61  ;;  %v557_v30 = vpop.f32.mrb[2].mxu1 }
 0x145   :  { %v445_v44 = vadd.f32 %v444_v11, %v7983_v16  ;;  %v446_v45 = vpop.f32.mrb[3].mxu0  ;;  %v858_v48 = vmax.f32 %v441_v40, 0.0  ;;  %v860_v39 = vmax.f32 %v554_v22, 0.0  ;;  %v558_v40 = vadd.f32 %v557_v30, %v8013_v13  ;;  %v559_v41 = vpop.f32.mrb[3].mxu1 }
 0x146   :  { %v447_v34 = vadd.f32 %v446_v45, %v7987_v38  ;;  %v859_v54 = vmax.f32 %v443_v42, 0.0  ;;  %v861_v17 = vmax.f32 %v556_v29, 0.0  ;;  %v560_v20 = vadd.f32 %v559_v41, %v8023_v61  ;;  %v8125_v41 = vld [vmem:[#allocation7 + $0x568] sm:$0xff] }
 0x147   :  { %v866_v50 = vmax.f32 %v445_v44, 0.0  ;;  %v6685_v44 = vcombine.low %v8040_v9, %v8042_v14  ;;  %v868_v45 = vmax.f32 %v558_v40, 0.0  ;;  %v8123_v40 = vld [vmem:[#allocation7 + $0x548] sm:$0xff]  ;;  %v8163_v9 = vld [vmem:[#allocation7 + $0x5c0] sm:$0xff] }
 0x148   :  { %v867_v55 = vmax.f32 %v447_v34, 0.0  ;;  %v869_v52 = vmax.f32 %v560_v20, 0.0  ;;  %v8165_v14 = vld [vmem:[#allocation7 + $0x5e0] sm:$0xff] }
 0x149   :  { %v8015_v58 = vpack.c.bf16 %v866_v50, %v858_v48  ;;  %v6688_v48 = vcombine.high %v8065_v15, %v8067_v32  ;;  %v8083_v50 = vld [vmem:[#allocation7 + $0x508] sm:$0xff] }
 0x14a   :  { %v8025_v62 = vpack.c.bf16 %v867_v55, %v859_v54  ;;  %v450_v49 = vpop.f32.mrb[4].mxu0  ;;  %v6694_v55 = vcombine.high %v8070_v10, %v8072_v12 }
 0x14b   :  { %v451_v4 = vadd.f32 %v450_v49, %v7983_v16  ;;  %v452_v5 = vpop.f32.mrb[5].mxu0  ;;  %v8091_v49 = vpack.c.bf16 %v868_v45, %v860_v39 }
 0x14c   :  { %v453_v19 = vadd.f32 %v452_v5, %v7987_v38  ;;  %v454_v2 = vpop.f32.mrb[6].mxu0  ;;  %4196 = vmatprep.mubr.bf16.mxu0 %v8025_v62  ;;  %4648 = vmatprep.mubr.bf16.mxu1 %v8025_v62  ;;  %v6693_v5 = vcombine.low %v8070_v10, %v8072_v12  ;;  %v8198_v10 = vld [vmem:[#allocation7 + $0x600] sm:$0xff] }
 0x14d   :  { %v455_v26 = vadd.f32 %v454_v2, %v7983_v16  ;;  %v456_v27 = vpop.f32.mrb[7].mxu0  ;;  %4197 = vmatmul.mubr.bf16.vlgmr.msra.gmra.mrb[64].mxu0 %v8015_v58  ;;  %4649 = vmatmul.mubr.bf16.vlgmr.msra.gmra.mrb[64].mxu1 %v8015_v58  ;;  %v874_v42 = vmax.f32 %v451_v4, 0.0  ;;  %9918 = vst [vmem:[#allocation18_spill] sm:$0xff] %v8091_v49  ;;  %v8200_v12 = vld [vmem:[#allocation7 + $0x620] sm:$0xff] }
 0x14e   :  { %v457_v31 = vadd.f32 %v456_v27, %v7987_v38  ;;  %4278 = vmatpush1.bf16.msra.mxu0 %v6661_v23  ;;  %4730 = vmatpush1.bf16.msra.mxu1 %v6663_v24  ;;  %v875_v23 = vmax.f32 %v453_v19, 0.0 }
 0x14f   :  { %v882_v11 = vmax.f32 %v455_v26, 0.0  ;;  %4279 = vmatprep.subr.bf16.mxu0 %v6670_v0  ;;  %4731 = vmatprep.subr.bf16.mxu1 %v6672_v6  ;;  %v8096_v6 = vld [vmem:[#allocation7 + $0x540] sm:$0xff] }
 0x150   :  { %v883_v24 = vmax.f32 %v457_v31, 0.0  ;;  %v6702_v39 = vcombine.high %v8096_v6, %v8098_v18 }
 0x151   :  { %v8077_v34 = vpack.c.bf16 %v882_v11, %v874_v42 }
 0x152   :  { %v8087_v53 = vpack.c.bf16 %v883_v24, %v875_v23  ;;  %4280 = vmatpush1.bf16.msra.mxu0 %v6669_v63  ;;  %v460_v54 = vpop.f32.mrb[8].mxu0  ;;  %4732 = vmatpush1.bf16.msra.mxu1 %v6671_v3  ;;  %v8100_v63 = vpack.c.bf16 %v869_v52, %v861_v17  ;;  %v563_v3 = vpop.f32.mrb[4].mxu1  ;;  %v6701_v24 = vcombine.low %v8096_v6, %v8098_v18  ;;  %v8230_v6 = vld [vmem:[#allocation7 + $0x640] sm:$0xff] }
 0x153   :  { %v461_v0 = vadd.f32 %v460_v54, %v7983_v16  ;;  %v462_v4 = vpop.f32.mrb[9].mxu0  ;;  %4281 = vmatprep.subr.bf16.mxu0 %v6678_v8  ;;  %4733 = vmatprep.subr.bf16.mxu1 %v6680_v28  ;;  %v6695_v8 = vcombine.low %v8083_v50, %v8085_v51  ;;  %v564_v22 = vadd.f32 %v563_v3, %v8013_v13  ;;  %v565_v25 = vpop.f32.mrb[5].mxu1  ;;  %v8232_v18 = vld [vmem:[#allocation7 + $0x660] sm:$0xff] }
 0x154   :  { %9919 = vst [vmem:[#allocation19_spill] sm:$0xff] %v8100_v63  ;;  %v463_v19 = vadd.f32 %v462_v4, %v7987_v38  ;;  %v464_v2 = vpop.f32.mrb[10].mxu0  ;;  %4206 = vmatprep.mubr.bf16.mxu0 %v8087_v53  ;;  %4658 = vmatprep.mubr.bf16.mxu1 %v8087_v53  ;;  %v6696_v28 = vcombine.high %v8083_v50, %v8085_v51  ;;  %v567_v30 = vpop.f32.mrb[6].mxu1 }
 0x155   :  { %v465_v26 = vadd.f32 %v464_v2, %v7983_v16  ;;  %v466_v27 = vpop.f32.mrb[11].mxu0  ;;  %4207 = vmatmul.mubr.bf16.gmra.mrb[68].mxu0 %v8077_v34  ;;  %4659 = vmatmul.mubr.bf16.gmra.mrb[68].mxu1 %v8077_v34  ;;  %v566_v29 = vadd.f32 %v565_v25, %v8023_v61  ;;  %v876_v42 = vmax.f32 %v564_v22, 0.0  ;;  %v568_v11 = vadd.f32 %v567_v30, %v8013_v13  ;;  %v569_v17 = vpop.f32.mrb[7].mxu1 }
 0x156   :  { %v467_v31 = vadd.f32 %v466_v27, %v7987_v38  ;;  %4282 = vmatpush1.bf16.msra.mxu0 %v6677_v7  ;;  %4734 = vmatpush1.bf16.msra.mxu1 %v6679_v21  ;;  %v890_v20 = vmax.f32 %v461_v0, 0.0  ;;  %v570_v60 = vadd.f32 %v569_v17, %v8023_v61  ;;  %v891_v7 = vmax.f32 %v463_v19, 0.0  ;;  %v8146_v0 = vld [vmem:[#allocation7 + $0x5a8] sm:$0xff]  ;;  %v573_v15 = vpop.f32.mrb[8].mxu1 }
 0x157   :  { %v898_v23 = vmax.f32 %v465_v26, 0.0  ;;  %4283 = vmatprep.subr.bf16.mxu0 %v6686_v1  ;;  %4735 = vmatprep.subr.bf16.mxu1 %v6688_v48  ;;  %v877_v59 = vmax.f32 %v566_v29, 0.0  ;;  %v884_v45 = vmax.f32 %v568_v11, 0.0  ;;  %v6703_v54 = vcombine.low %v8123_v40, %v8125_v41  ;;  %v8144_v48 = vld [vmem:[#allocation7 + $0x588] sm:$0xff]  ;;  %v575_v29 = vpop.f32.mrb[9].mxu1 }
 0x158   :  { %v899_v21 = vmax.f32 %v467_v31, 0.0  ;;  %v6704_v1 = vcombine.high %v8123_v40, %v8125_v41  ;;  %v885_v4 = vmax.f32 %v570_v60, 0.0  ;;  %v6710_v2 = vcombine.high %v8131_v56, %v8133_v57  ;;  %v577_v17 = vpop.f32.mrb[10].mxu1  ;;  %v8192_v60 = vld [vmem:[#allocation7 + $0x5e8] sm:$0xff] }
 0x159   :  { %v8138_v52 = vpack.c.bf16 %v898_v23, %v890_v20  ;;  %v8158_v22 = vpack.c.bf16 %v884_v45, %v876_v42  ;;  %v6709_v27 = vcombine.low %v8131_v56, %v8133_v57  ;;  %v6712_v42 = vcombine.high %v8144_v48, %v8146_v0  ;;  %v579_v45 = vpop.f32.mrb[11].mxu1  ;;  %v8265_v56 = vld [vmem:[#allocation7 + $0x680] sm:$0xff] }
 0x15a   :  { %v8148_v3 = vpack.c.bf16 %v899_v21, %v891_v7  ;;  %4284 = vmatpush1.bf16.msra.mxu0 %v6685_v44  ;;  %v470_v19 = vpop.f32.mrb[12].mxu0  ;;  %4736 = vmatpush1.bf16.msra.mxu1 %v6687_v47  ;;  %v8167_v44 = vpack.c.bf16 %v885_v4, %v877_v59  ;;  %v576_v11 = vadd.f32 %v575_v29, %v8023_v61  ;;  %v8190_v59 = vld [vmem:[#allocation7 + $0x5c8] sm:$0xff]  ;;  %v8267_v57 = vld [vmem:[#allocation7 + $0x6a0] sm:$0xff] }
 0x15b   :  { %9920 = vst [vmem:[#allocation20_spill] sm:$0xff] %v8138_v52  ;;  %9922 = vst [vmem:[#allocation22_spill] sm:$0xff] %v8158_v22  ;;  %v471_v25 = vadd.f32 %v470_v19, %v7983_v16  ;;  %v472_v26 = vpop.f32.mrb[13].mxu0  ;;  %4285 = vmatprep.subr.bf16.mxu0 %v6694_v55  ;;  %4737 = vmatprep.subr.bf16.mxu1 %v6696_v28  ;;  %v6711_v55 = vcombine.low %v8144_v48, %v8146_v0 }
 0x15c   :  { %9921 = vst [vmem:[#allocation21_spill] sm:$0xff] %v8148_v3  ;;  %9923 = vst [vmem:[#allocation23_spill] sm:$0xff] %v8167_v44  ;;  %v473_v32 = vadd.f32 %v472_v26, %v7987_v38  ;;  %v474_v47 = vpop.f32.mrb[14].mxu0  ;;  %4216 = vmatprep.mubr.bf16.mxu0 %v8148_v3  ;;  %4668 = vmatprep.mubr.bf16.mxu1 %v8148_v3  ;;  %v574_v28 = vadd.f32 %v573_v15, %v8013_v13  ;;  %v893_v50 = vmax.f32 %v576_v11, 0.0  ;;  %v583_v40 = vpop.f32.mrb[12].mxu1 }
 0x15d   :  { %v475_v30 = vadd.f32 %v474_v47, %v7983_v16  ;;  %v476_v31 = vpop.f32.mrb[15].mxu0  ;;  %4217 = vmatmul.mubr.bf16.gmra.mrb[72].mxu0 %v8138_v52  ;;  %4669 = vmatmul.mubr.bf16.gmra.mrb[72].mxu1 %v8138_v52  ;;  %v6718_v23 = vcombine.high %v8163_v9, %v8165_v14  ;;  %v578_v21 = vadd.f32 %v577_v17, %v8013_v13  ;;  %v906_v4 = vmax.f32 %v471_v25, 0.0 }
 0x15e   :  { %v477_v20 = vadd.f32 %v476_v31, %v7987_v38  ;;  %4286 = vmatpush1.bf16.msra.mxu0 %v6693_v5  ;;  %4738 = vmatpush1.bf16.msra.mxu1 %v6695_v8  ;;  %v892_v7 = vmax.f32 %v574_v28, 0.0  ;;  %v580_v51 = vadd.f32 %v579_v45, %v8023_v61  ;;  %v907_v5 = vmax.f32 %v473_v32, 0.0  ;;  %v8213_v28 = vld [vmem:[#allocation7 + $0x628] sm:$0xff] }
 0x15f   :  { %v914_v19 = vmax.f32 %v475_v30, 0.0  ;;  %4287 = vmatprep.subr.bf16.mxu0 %v6702_v39  ;;  %4739 = vmatprep.subr.bf16.mxu1 %v6704_v1  ;;  %v6717_v26 = vcombine.low %v8163_v9, %v8165_v14  ;;  %v900_v15 = vmax.f32 %v578_v21, 0.0  ;;  %v6719_v47 = vcombine.low %v8190_v59, %v8192_v60  ;;  %v8211_v1 = vld [vmem:[#allocation7 + $0x608] sm:$0xff]  ;;  %v8297_v9 = vld [vmem:[#allocation7 + $0x6c0] sm:$0xff] }
 0x160   :  { %v915_v8 = vmax.f32 %v477_v20, 0.0  ;;  %v6720_v39 = vcombine.high %v8190_v59, %v8192_v60  ;;  %v901_v29 = vmax.f32 %v580_v51, 0.0  ;;  %v6726_v31 = vcombine.high %v8198_v10, %v8200_v12  ;;  %v8299_v14 = vld [vmem:[#allocation7 + $0x6e0] sm:$0xff] }
 0x161   :  { %v8205_v25 = vpack.c.bf16 %v914_v19, %v906_v4  ;;  %v8225_v11 = vpack.c.bf16 %v900_v15, %v892_v7  ;;  %v6725_v21 = vcombine.low %v8198_v10, %v8200_v12  ;;  %v585_v7 = vpop.f32.mrb[13].mxu1  ;;  %v6728_v19 = vcombine.high %v8211_v1, %v8213_v28  ;;  %v8257_v15 = vld [vmem:[#allocation7 + $0x648] sm:$0xff]  ;;  %v8332_v10 = vld [vmem:[#allocation7 + $0x700] sm:$0xff] }
 0x162   :  { %v8215_v30 = vpack.c.bf16 %v915_v8, %v907_v5  ;;  %4288 = vmatpush1.bf16.msra.mxu0 %v6701_v24  ;;  %v480_v32 = vpop.f32.mrb[16].mxu0  ;;  %4740 = vmatpush1.bf16.msra.mxu1 %v6703_v54  ;;  %v8234_v24 = vpack.c.bf16 %v901_v29, %v893_v50  ;;  %v586_v50 = vadd.f32 %v585_v7, %v8023_v61  ;;  %v587_v51 = vpop.f32.mrb[14].mxu1  ;;  %v8259_v29 = vld [vmem:[#allocation7 + $0x668] sm:$0xff]  ;;  %v8334_v12 = vld [vmem:[#allocation7 + $0x720] sm:$0xff] }
 0x163   :  { %9924 = vst [vmem:[#allocation24_spill] sm:$0xff] %v8205_v25  ;;  %9926 = vst [vmem:[#allocation26_spill] sm:$0xff] %v8225_v11  ;;  %v481_v17 = vadd.f32 %v480_v32, %v7983_v16  ;;  %v482_v20 = vpop.f32.mrb[17].mxu0  ;;  %4289 = vmatprep.subr.bf16.mxu0 %v6710_v2  ;;  %4741 = vmatprep.subr.bf16.mxu1 %v6712_v42  ;;  %v6727_v2 = vcombine.low %v8211_v1, %v8213_v28 }
 0x164   :  { %9925 = vst [vmem:[#allocation25_spill] sm:$0xff] %v8215_v30  ;;  %9927 = vst [vmem:[#allocation27_spill] sm:$0xff] %v8234_v24  ;;  %v483_v41 = vadd.f32 %v482_v20, %v7987_v38  ;;  %v484_v54 = vpop.f32.mrb[18].mxu0  ;;  %4226 = vmatprep.mubr.bf16.mxu0 %v8215_v30  ;;  %4678 = vmatprep.mubr.bf16.mxu1 %v8215_v30  ;;  %v584_v42 = vadd.f32 %v583_v40, %v8013_v13  ;;  %v589_v40 = vpop.f32.mrb[15].mxu1  ;;  %v909_v48 = vmax.f32 %v586_v50, 0.0 }
 0x165   :  { %v485_v45 = vadd.f32 %v484_v54, %v7983_v16  ;;  %v486_v4 = vpop.f32.mrb[19].mxu0  ;;  %4227 = vmatmul.mubr.bf16.gmra.mrb[76].mxu0 %v8205_v25  ;;  %4679 = vmatmul.mubr.bf16.gmra.mrb[76].mxu1 %v8205_v25  ;;  %v6734_v8 = vcombine.high %v8230_v6, %v8232_v18  ;;  %v588_v20 = vadd.f32 %v587_v51, %v8013_v13  ;;  %v922_v54 = vmax.f32 %v481_v17, 0.0  ;;  %v8280_v51 = vld [vmem:[#allocation7 + $0x6a8] sm:$0xff]  ;;  %v593_v59 = vpop.f32.mrb[16].mxu1 }
 0x166   :  { %v487_v5 = vadd.f32 %v486_v4, %v7987_v38  ;;  %4290 = vmatpush1.bf16.msra.mxu0 %v6709_v27  ;;  %4742 = vmatpush1.bf16.msra.mxu1 %v6711_v55  ;;  %v908_v32 = vmax.f32 %v584_v42, 0.0  ;;  %v590_v0 = vadd.f32 %v589_v40, %v8023_v61  ;;  %v923_v27 = vmax.f32 %v483_v41, 0.0 }
 0x167   :  { %v930_v7 = vmax.f32 %v485_v45, 0.0  ;;  %4291 = vmatprep.subr.bf16.mxu0 %v6718_v23  ;;  %4743 = vmatprep.subr.bf16.mxu1 %v6720_v39  ;;  %v6733_v42 = vcombine.low %v8230_v6, %v8232_v18  ;;  %v916_v4 = vmax.f32 %v588_v20, 0.0  ;;  %v6736_v23 = vcombine.high %v8257_v15, %v8259_v29  ;;  %v8278_v39 = vld [vmem:[#allocation7 + $0x688] sm:$0xff]  ;;  %v8364_v6 = vld [vmem:[#allocation7 + $0x740] sm:$0xff] }
 0x168   :  { %v931_v55 = vmax.f32 %v487_v5, 0.0  ;;  %v917_v50 = vmax.f32 %v590_v0, 0.0  ;;  %v6742_v5 = vcombine.high %v8265_v56, %v8267_v57  ;;  %v8366_v18 = vld [vmem:[#allocation7 + $0x760] sm:$0xff] }
 0x169   :  { %v8272_v17 = vpack.c.bf16 %v930_v7, %v922_v54  ;;  %v8292_v20 = vpack.c.bf16 %v916_v4, %v908_v32  ;;  %v595_v32 = vpop.f32.mrb[17].mxu1 }
 0x16a   :  { %v8282_v40 = vpack.c.bf16 %v931_v55, %v923_v27  ;;  %4292 = vmatpush1.bf16.msra.mxu0 %v6717_v26  ;;  %v490_v41 = vpop.f32.mrb[20].mxu0  ;;  %4744 = vmatpush1.bf16.msra.mxu1 %v6719_v47  ;;  %v8301_v26 = vpack.c.bf16 %v917_v50, %v909_v48  ;;  %v6744_v48 = vcombine.high %v8278_v39, %v8280_v51  ;;  %v597_v50 = vpop.f32.mrb[18].mxu1 }
 0x16b   :  { %9928 = vst [vmem:[#allocation28_spill] sm:$0xff] %v8272_v17  ;;  %9930 = vst [vmem:[#allocation30_spill] sm:$0xff] %v8292_v20  ;;  %v491_v54 = vadd.f32 %v490_v41, %v7983_v16  ;;  %v492_v7 = vpop.f32.mrb[21].mxu0  ;;  %4293 = vmatprep.subr.bf16.mxu0 %v6726_v31  ;;  %4745 = vmatprep.subr.bf16.mxu1 %v6728_v19  ;;  %v594_v19 = vadd.f32 %v593_v59, %v8013_v13  ;;  %v8324_v59 = vld [vmem:[#allocation7 + $0x6c8] sm:$0xff]  ;;  %v599_v0 = vpop.f32.mrb[19].mxu1 }
 0x16c   :  { %9929 = vst [vmem:[#allocation29_spill] sm:$0xff] %v8282_v40  ;;  %9931 = vst [vmem:[#allocation31_spill] sm:$0xff] %v8301_v26  ;;  %v493_v60 = vadd.f32 %v492_v7, %v7987_v38  ;;  %v494_v47 = vpop.f32.mrb[22].mxu0  ;;  %4236 = vmatprep.mubr.bf16.mxu0 %v8282_v40  ;;  %4688 = vmatprep.mubr.bf16.mxu1 %v8282_v40  ;;  %v596_v4 = vadd.f32 %v595_v32, %v8023_v61  ;;  %v8347_v7 = vld [vmem:[#allocation7 + $0x728] sm:$0xff] }
 0x16d   :  { %v495_v27 = vadd.f32 %v494_v47, %v7983_v16  ;;  %v496_v55 = vpop.f32.mrb[23].mxu0  ;;  %4237 = vmatmul.mubr.bf16.gmra.mrb[80].mxu0 %v8272_v17  ;;  %4689 = vmatmul.mubr.bf16.gmra.mrb[80].mxu1 %v8272_v17  ;;  %v8326_v47 = vld [vmem:[#allocation7 + $0x6e8] sm:$0xff]  ;;  %v924_v31 = vmax.f32 %v594_v19, 0.0  ;;  %v598_v32 = vadd.f32 %v597_v50, %v8013_v13  ;;  %v600_v28 = vadd.f32 %v599_v0, %v8023_v61 }
 0x16e   :  { %v497_v41 = vadd.f32 %v496_v55, %v7987_v38  ;;  %4294 = vmatpush1.bf16.msra.mxu0 %v6725_v21  ;;  %4746 = vmatpush1.bf16.msra.mxu1 %v6727_v2  ;;  %v938_v55 = vmax.f32 %v491_v54, 0.0  ;;  %v925_v1 = vmax.f32 %v596_v4, 0.0  ;;  %v939_v21 = vmax.f32 %v493_v60, 0.0 }
 0x16f   :  { %v946_v45 = vmax.f32 %v495_v27, 0.0  ;;  %4295 = vmatprep.subr.bf16.mxu0 %v6734_v8  ;;  %4747 = vmatprep.subr.bf16.mxu1 %v6736_v23  ;;  %v932_v50 = vmax.f32 %v598_v32, 0.0  ;;  %v6752_v8 = vcombine.high %v8324_v59, %v8326_v47  ;;  %v8345_v23 = vld [vmem:[#allocation7 + $0x708] sm:$0xff]  ;;  %v933_v4 = vmax.f32 %v600_v28, 0.0 }
 0x170   :  { %v947_v2 = vmax.f32 %v497_v41, 0.0  ;;  %v6758_v41 = vcombine.high %v8332_v10, %v8334_v12  ;;  %v8393_v28 = vld [vmem:[#allocation7 + $0x768] sm:$0xff] }
 0x171   :  { %v8339_v54 = vpack.c.bf16 %v946_v45, %v938_v55  ;;  %v9934_v45 = vcombine.low %v8257_v15, %v8259_v29  ;;  %v8359_v32 = vpack.c.bf16 %v932_v50, %v924_v31  ;;  %v603_v15 = vpop.f32.mrb[20].mxu1 }
 0x172   :  { %v8349_v0 = vpack.c.bf16 %v947_v2, %v939_v21  ;;  %4296 = vmatpush1.bf16.msra.mxu0 %v6733_v42  ;;  %v500_v60 = vpop.f32.mrb[24].mxu0  ;;  %v8368_v42 = vpack.c.bf16 %v933_v4, %v925_v1  ;;  %v604_v31 = vadd.f32 %v603_v15, %v8013_v13  ;;  %v6760_v1 = vcombine.high %v8345_v23, %v8347_v7 }
 0x173   :  { %9932 = vst [vmem:[#allocation32_spill] sm:$0xff] %v8339_v54  ;;  %4748 = vmatpush1.bf16.msra.mxu1 %v9934_v45  ;;  %9935 = vst [vmem:[#allocation34_spill] sm:$0xff] %v8359_v32  ;;  %v501_v55 = vadd.f32 %v500_v60, %v7983_v16  ;;  %v502_v27 = vpop.f32.mrb[25].mxu0  ;;  %4297 = vmatprep.subr.bf16.mxu0 %v6742_v5  ;;  %v9937_v45 = vcombine.low %v8265_v56, %v8267_v57  ;;  %v8391_v5 = vld [vmem:[#allocation7 + $0x748] sm:$0xff]  ;;  %v8399_v57 = vld [vmem:[#allocation7 + $0x780] sm:$0xff] }
 0x174   :  { %9933 = vst [vmem:[#allocation33_spill] sm:$0xff] %v8349_v0  ;;  %4749 = vmatprep.subr.bf16.mxu1 %v6744_v48  ;;  %9936 = vst [vmem:[#allocation35_spill] sm:$0xff] %v8368_v42  ;;  %v503_v29 = vadd.f32 %v502_v27, %v7987_v38  ;;  %v504_v21 = vpop.f32.mrb[26].mxu0  ;;  %4246 = vmatprep.mubr.bf16.mxu0 %v8349_v0  ;;  %v605_v48 = vpop.f32.mrb[21].mxu1  ;;  %v9938_v15 = vcombine.low %v8278_v39, %v8280_v51  ;;  %v940_v19 = vmax.f32 %v604_v31, 0.0  ;;  %v8401_v39 = vld [vmem:[#allocation7 + $0x7a0] sm:$0xff] }
 0x175   :  { %4698 = vmatprep.mubr.bf16.mxu1 %v8349_v0  ;;  %v505_v2 = vadd.f32 %v504_v21, %v7983_v16  ;;  %v506_v50 = vpop.f32.mrb[27].mxu0  ;;  %4247 = vmatmul.mubr.bf16.gmra.mrb[84].mxu0 %v8339_v54  ;;  %v606_v27 = vadd.f32 %v605_v48, %v8023_v61  ;;  %v607_v4 = vpop.f32.mrb[22].mxu1  ;;  %v9939_v56 = vcombine.high %v8297_v9, %v8299_v14 }
 0x176   :  { %4699 = vmatmul.mubr.bf16.gmra.mrb[84].mxu1 %v8339_v54  ;;  %v507_v60 = vadd.f32 %v506_v50, %v7987_v38  ;;  %4298 = vmatpush1.bf16.msra.mxu0 %v9937_v45  ;;  %v608_v48 = vadd.f32 %v607_v4, %v8013_v13  ;;  %v609_v46 = vpop.f32.mrb[23].mxu1  ;;  %v954_v50 = vmax.f32 %v501_v55, 0.0 }
 0x177   :  { %4750 = vmatpush1.bf16.msra.mxu1 %v9938_v15  ;;  %v962_v37 = vmax.f32 %v505_v2, 0.0  ;;  %4299 = vmatprep.subr.bf16.mxu0 %v9939_v56  ;;  %v941_v51 = vmax.f32 %v606_v27, 0.0  ;;  %v610_v45 = vadd.f32 %v609_v46, %v8023_v61  ;;  %v955_v15 = vmax.f32 %v503_v29, 0.0  ;;  %v8412_v56 = vld [vmem:[#allocation7 + $0x788] sm:$0xff] }
 0x178   :  { %4751 = vmatprep.subr.bf16.mxu1 %v6752_v8  ;;  %v963_v21 = vmax.f32 %v507_v60, 0.0  ;;  %v948_v4 = vmax.f32 %v608_v48, 0.0  ;;  %v6767_v2 = vcombine.low %v8391_v5, %v8393_v28  ;;  %v6768_v8 = vcombine.high %v8391_v5, %v8393_v28 }
 0x179   :  { %v8406_v55 = vpack.c.bf16 %v962_v37, %v954_v50  ;;  %v949_v27 = vmax.f32 %v610_v45, 0.0  ;;  %v9942_v29 = vcombine.low %v8297_v9, %v8299_v14  ;;  %v9943_v37 = vcombine.low %v8324_v59, %v8326_v47  ;;  %v613_v59 = vpop.f32.mrb[24].mxu1 }
 0x17a   :  { %v8416_v46 = vpack.c.bf16 %v963_v21, %v955_v15  ;;  %v510_v60 = vpop.f32.mrb[28].mxu0  ;;  %v6774_v48 = vcombine.high %v8399_v57, %v8401_v39  ;;  %v8426_v28 = vpack.c.bf16 %v948_v4, %v940_v19  ;;  %v8429_v5 = vsub.s32 4, %v7971_v33 }
 0x17b   :  { %9940 = vst [vmem:[#allocation36_spill] sm:$0xff] %v8406_v55  ;;  %4300 = vmatpush1.bf16.msra.mxu0 %v9942_v29  ;;  %4752 = vmatpush1.bf16.msra.mxu1 %v9943_v37  ;;  %v511_v21 = vadd.f32 %v510_v60, %v7983_v16  ;;  %v512_v50 = vpop.f32.mrb[29].mxu0  ;;  %v8434_v14 = vpack.c.bf16 %v949_v27, %v941_v51 }
 0x17c   :  { %9941 = vst [vmem:[#allocation37_spill] sm:$0xff] %v8416_v46  ;;  %9944 = vst [vmem:[#allocation38_spill] sm:$0xff] %v8426_v28  ;;  %4301 = vmatprep.subr.bf16.mxu0 %v6758_v41  ;;  %4753 = vmatprep.subr.bf16.mxu1 %v6760_v1  ;;  %v513_v47 = vadd.f32 %v512_v50, %v7987_v38  ;;  %v514_v45 = vpop.f32.mrb[30].mxu0  ;;  %v614_v15 = vadd.f32 %v613_v59, %v8013_v13  ;;  %v615_v41 = vpop.f32.mrb[25].mxu1  ;;  %v8443_v1 = vsub.s32 5, %v7971_v33  ;;  %v8458_v59 = vld [vmem:[#allocation7 + $0x7c0] sm:$0xff] }
 0x17d   :  { %9945 = vst [vmem:[#allocation39_spill] sm:$0xff] %v8429_v5  ;;  %9946 = vst [vmem:[#allocation40_spill] sm:$0xff] %v8434_v14  ;;  %4256 = vmatprep.mubr.bf16.mxu0 %v8416_v46  ;;  %4708 = vmatprep.mubr.bf16.mxu1 %v8416_v46  ;;  %v515_v51 = vadd.f32 %v514_v45, %v7983_v16  ;;  %v516_v4 = vpop.f32.mrb[31].mxu0  ;;  %v6776_v27 = vcombine.high %v8412_v56, %v8414_v43  ;;  %v617_v60 = vpop.f32.mrb[26].mxu1  ;;  %v8460_v45 = vld [vmem:[#allocation7 + $0x7e0] sm:$0xff] }
 0x17e   :  { %9947 = vst [vmem:[#allocation41_spill] sm:$0xff] %v8443_v1  ;;  %4257 = vmatmul.mubr.bf16.gmra.mrb[88].mxu0 %v8406_v55  ;;  %4709 = vmatmul.mubr.bf16.gmra.mrb[88].mxu1 %v8406_v55  ;;  %v616_v29 = vadd.f32 %v615_v41, %v8023_v61  ;;  %v517_v37 = vadd.f32 %v516_v4, %v7987_v38  ;;  %v956_v19 = vmax.f32 %v614_v15, 0.0  ;;  %v619_v31 = vpop.f32.mrb[27].mxu1  ;;  %v970_v38 = vmax.f32 %v511_v21, 0.0 }
 0x17f   :  { %v9948_v50 = vcombine.low %v8332_v10, %v8334_v12  ;;  %v9949_v16 = vcombine.low %v8345_v23, %v8347_v7  ;;  %v618_v9 = vadd.f32 %v617_v60, %v8013_v13  ;;  %v8465_v41 = vrot.slane %v7976_v36, %v8429_v5  ;;  %v8470_v7 = vld [vmem:[#allocation7 + $0x7c8] sm:$0xff] }
 0x180   :  { %v978_v4 = vmax.f32 %v515_v51, 0.0  ;;  %v9950_v10 = vcombine.high %v8364_v6, %v8366_v18  ;;  %v8472_v12 = vld [vmem:[#allocation7 + $0x7e8] sm:$0xff]  ;;  %v957_v23 = vmax.f32 %v616_v29, 0.0  ;;  %v620_v15 = vadd.f32 %v619_v31, %v8023_v61  ;;  %v8487_v29 = vld [vmem:[#allocation7 + $0x820] sm:$0xff] }
 0x181   :  { %4302 = vmatpush1.bf16.msra.mxu0 %v9948_v50  ;;  %4754 = vmatpush1.bf16.msra.mxu1 %v9949_v16  ;;  %v971_v60 = vmax.f32 %v513_v47, 0.0  ;;  %v979_v50 = vmax.f32 %v517_v37, 0.0  ;;  %v964_v16 = vmax.f32 %v618_v9, 0.0  ;;  %v8477_v5 = vrot.slane %v7976_v36, %v8443_v1 }
 0x182   :  { %4303 = vmatprep.subr.bf16.mxu0 %v9950_v10  ;;  %4755 = vmatprep.subr.bf16.mxu1 %v6768_v8  ;;  %v8479_v21 = vpack.c.bf16 %v978_v4, %v970_v38  ;;  %v6782_v8 = vcombine.high %v8458_v59, %v8460_v45  ;;  %v8485_v10 = vld [vmem:[#allocation7 + $0x800] sm:$0xff]  ;;  %v965_v31 = vmax.f32 %v620_v15, 0.0  ;;  %v9953_v9 = vcombine.low %v8364_v6, %v8366_v18  ;;  %v666_v4 = vpop.f32.mrb[32].mxu0  ;;  %v623_v15 = vpop.f32.mrb[28].mxu1  ;;  %v8507_v18 = vld [vmem:[#allocation7 + $0x808] sm:$0xff] }
 0x183   :  { %v8489_v47 = vpack.c.bf16 %v979_v50, %v971_v60  ;;  %v6783_v37 = vcombine.low %v8470_v7, %v8472_v12  ;;  %v8496_v38 = vpack.c.bf16 %v964_v16, %v956_v19  ;;  %v6784_v51 = vcombine.high %v8470_v7, %v8472_v12  ;;  %v668_v50 = vpop.f32.mrb[33].mxu0  ;;  %v625_v19 = vpop.f32.mrb[29].mxu1 }
 0x184   :  { %9951 = vst [vmem:[#allocation42_spill] sm:$0xff] %v8479_v21  ;;  %v8500_v1 = vpack.c.bf16 %v965_v31, %v957_v23  ;;  %v667_v60 = vadd.f32 %v666_v4, %v8465_v41  ;;  %v6790_v6 = vcombine.high %v8485_v10, %v8487_v29  ;;  %v670_v7 = vpop.f32.mrb[34].mxu0  ;;  %v8514_v12 = vsub.s32 6, %v7971_v33  ;;  %v627_v16 = vpop.f32.mrb[30].mxu1 }
 0x185   :  { %9952 = vst [vmem:[#allocation43_spill] sm:$0xff] %v8489_v47  ;;  %4304 = vmatpush1.bf16.msra.mxu0 %v9953_v9  ;;  %4756 = vmatpush1.bf16.msra.mxu1 %v6767_v2  ;;  %9954 = vst [vmem:[#allocation44_spill] sm:$0xff] %v8496_v38  ;;  %v8509_v2 = vld [vmem:[#allocation7 + $0x828] sm:$0xff]  ;;  %v626_v23 = vadd.f32 %v625_v19, %v8023_v61  ;;  %v671_v9 = vadd.f32 %v670_v7, %v8465_v41  ;;  %v672_v4 = vpop.f32.mrb[35].mxu0  ;;  %v629_v19 = vpop.f32.mrb[31].mxu1  ;;  %v8534_v7 = vld [vmem:[#allocation7 + $0x840] sm:$0xff] }
 0x186   :  { %4305 = vmatprep.subr.bf16.mxu0 %v6774_v48  ;;  %4757 = vmatprep.subr.bf16.mxu1 %v6776_v27  ;;  %9955 = vst [vmem:[#allocation45_spill] sm:$0xff] %v8500_v1  ;;  %v624_v48 = vadd.f32 %v623_v15, %v8013_v13  ;;  %v669_v27 = vadd.f32 %v668_v50, %v8477_v5  ;;  %9956 = vst [vmem:[#allocation46_spill] sm:$0xff] %v8514_v12  ;;  %v862_v31 = vmax.f32 %v667_v60, 0.0 }
 0x187   :  { %4266 = vmatprep.mubr.bf16.mxu0 %v8489_v47  ;;  %4718 = vmatprep.mubr.bf16.mxu1 %v8489_v47  ;;  %v8521_v15 = vsub.s32 7, %v7971_v33  ;;  %v9958_v50 = vcombine.low %v8399_v57, %v8401_v39  ;;  %v9959_v35 = vcombine.low %v8412_v56, %v8414_v43  ;;  %v673_v60 = vadd.f32 %v672_v4, %v8477_v5  ;;  %v8536_v57 = vld [vmem:[#allocation7 + $0x860] sm:$0xff] }
 0x188   :  { %4267 = vmatmul.mubr.bf16.gmra.mrb[92].mxu0 %v8479_v21  ;;  %4719 = vmatmul.mubr.bf16.gmra.mrb[92].mxu1 %v8479_v21  ;;  %v972_v47 = vmax.f32 %v624_v48, 0.0  ;;  %v628_v21 = vadd.f32 %v627_v16, %v8013_v13  ;;  %v863_v55 = vmax.f32 %v669_v27, 0.0  ;;  %v6792_v33 = vcombine.high %v8507_v18, %v8509_v2  ;;  %v1315_v16 = vld [vmem:[#allocation7 + $0x848] sm:$0xff] }
 0x189   :  { %9957 = vst [vmem:[#allocation47_spill] sm:$0xff] %v8521_v15  ;;  %4306 = vmatpush1.bf16.msra.mxu0 %v9958_v50  ;;  %4758 = vmatpush1.bf16.msra.mxu1 %v9959_v35  ;;  %v973_v39 = vmax.f32 %v626_v23, 0.0  ;;  %v630_v35 = vadd.f32 %v629_v19, %v8023_v61  ;;  %v870_v43 = vmax.f32 %v671_v9, 0.0  ;;  %v6789_v13 = vcombine.low %v8485_v10, %v8487_v29  ;;  %v1319_v23 = vld [vmem:[#allocation7 + $0x868] sm:$0xff]  ;;  %v8559_v29 = vld [vmem:[#allocation7 + $0x880] sm:$0xff]  ;;  %v779_v50 = vpop.f32.mrb[32].mxu1 }
 0x18a   :  { %4307 = vmatprep.subr.bf16.mxu0 %v6782_v8  ;;  %4309 = vmatprep.mubr.bf16.mxu0 %v8100_v63  ;;  %v980_v56 = vmax.f32 %v628_v21, 0.0  ;;  %v871_v8 = vmax.f32 %v673_v60, 0.0  ;;  %v8544_v48 = vrot.slane %v7976_v36, %v8514_v12  ;;  %v6791_v27 = vcombine.low %v8507_v18, %v8509_v2  ;;  %v8561_v18 = vld [vmem:[#allocation7 + $0x8a0] sm:$0xff]  ;;  %v676_v9 = vpop.f32.mrb[36].mxu0 }
 0x18b   :  { %4759 = vmatprep.subr.bf16.mxu1 %v6784_v51  ;;  %4761 = vmatprep.mubr.bf16.mxu1 %v8100_v63  ;;  %v981_v4 = vmax.f32 %v630_v35, 0.0  ;;  %v8548_v61 = vpack.c.bf16 %v870_v43, %v862_v31  ;;  %v8552_v51 = vrot.slane %v7976_v36, %v8521_v15  ;;  %v9960_v21 = vcombine.low %v8458_v59, %v8460_v45  ;;  %v8572_v35 = vld [vmem:[#allocation7 + $0x888] sm:$0xff] }
 0x18c   :  { %v6797_v10 = vcombine.low %v8534_v7, %v8536_v57  ;;  %v8563_v2 = vpack.c.bf16 %v980_v56, %v972_v47  ;;  %v8565_v31 = vpack.c.bf16 %v871_v8, %v863_v55  ;;  %v6798_v36 = vcombine.high %v8534_v7, %v8536_v57  ;;  %v8574_v47 = vld [vmem:[#allocation7 + $0x8a8] sm:$0xff] }
 0x18d   :  { %4308 = vmatpush1.bf16.msra.mxu0 %v9960_v21  ;;  %4760 = vmatpush1.bf16.msra.mxu1 %v6783_v37  ;;  %v8569_v59 = vpack.c.bf16 %v981_v4, %v973_v39  ;;  %v677_v45 = vadd.f32 %v676_v9, %v8465_v41  ;;  %v678_v37 = vpop.f32.mrb[37].mxu0  ;;  %v6799_v19 = vcombine.low %v1315_v16, %v1319_v23  ;;  %v1335_v15 = vld [vmem:[#allocation7 + $0x8e8] sm:$0xff] }
 0x18e   :  { %4390 = vmatprep.subr.bf16.mxu0 %v6790_v6  ;;  %4842 = vmatprep.subr.bf16.mxu1 %v6792_v33  ;;  %v6800_v60 = vcombine.high %v1315_v16, %v1319_v23  ;;  %v679_v55 = vadd.f32 %v678_v37, %v8477_v5  ;;  %v680_v43 = vpop.f32.mrb[38].mxu0  ;;  %v780_v6 = vadd.f32 %v779_v50, %v8544_v48  ;;  %v781_v33 = vpop.f32.mrb[33].mxu1  ;;  %v8589_v50 = vld [vmem:[#allocation7 + $0x8c0] sm:$0xff] }
 0x18f   :  { %9961 = vst [vmem:[#allocation48_spill] sm:$0xff] %v8569_v59  ;;  %v6806_v7 = vcombine.high %v8559_v29, %v8561_v18  ;;  %v878_v57 = vmax.f32 %v677_v45, 0.0  ;;  %v681_v39 = vadd.f32 %v680_v43, %v8465_v41  ;;  %v682_v56 = vpop.f32.mrb[39].mxu0  ;;  %v782_v8 = vadd.f32 %v781_v33, %v8552_v51  ;;  %v783_v16 = vpop.f32.mrb[34].mxu1  ;;  %v8591_v43 = vld [vmem:[#allocation7 + $0x8e0] sm:$0xff] }
 0x190   :  { %4310 = vmatmul.mubr.bf16.vlgmr.msra.gmra.mrb[64].mxu0 %v8091_v49  ;;  %4762 = vmatmul.mubr.bf16.vlgmr.msra.gmra.mrb[64].mxu1 %v8091_v49  ;;  %v879_v23 = vmax.f32 %v679_v55, 0.0  ;;  %v683_v4 = vadd.f32 %v682_v56, %v8477_v5  ;;  %v864_v21 = vmax.f32 %v780_v6, 0.0  ;;  %v784_v9 = vadd.f32 %v783_v16, %v8544_v48  ;;  %v785_v37 = vpop.f32.mrb[35].mxu1  ;;  %v1331_v16 = vld [vmem:[#allocation7 + $0x8c8] sm:$0xff] }
 0x191   :  { %4391 = vmatpush1.bf16.msra.mxu0 %v6789_v13  ;;  %4843 = vmatpush1.bf16.msra.mxu1 %v6791_v27  ;;  %v6808_v45 = vcombine.high %v8572_v35, %v8574_v47  ;;  %v886_v33 = vmax.f32 %v681_v39, 0.0  ;;  %v865_v13 = vmax.f32 %v782_v8, 0.0  ;;  %v786_v27 = vadd.f32 %v785_v37, %v8552_v51  ;;  %v8603_v8 = vld [vmem:[#allocation7 + $0x900] sm:$0xff] }
 0x192   :  { %4392 = vmatprep.subr.bf16.mxu0 %v6798_v36  ;;  %4319 = vmatprep.mubr.bf16.mxu0 %v8167_v44  ;;  %v887_v55 = vmax.f32 %v683_v4, 0.0  ;;  %v872_v6 = vmax.f32 %v784_v9, 0.0  ;;  %v6805_v36 = vcombine.low %v8559_v29, %v8561_v18  ;;  %v6807_v56 = vcombine.low %v8572_v35, %v8574_v47  ;;  %v686_v29 = vpop.f32.mrb[40].mxu0 }
 0x193   :  { %4771 = vmatprep.mubr.bf16.mxu1 %v8167_v44  ;;  %4844 = vmatprep.subr.bf16.mxu1 %v6800_v60  ;;  %v8599_v12 = vpack.c.bf16 %v886_v33, %v878_v57  ;;  %v873_v49 = vmax.f32 %v786_v27, 0.0  ;;  %v6813_v39 = vcombine.low %v8589_v50, %v8591_v43  ;;  %v8605_v60 = vld [vmem:[#allocation7 + $0x920] sm:$0xff]  ;;  %v6814_v35 = vcombine.high %v8589_v50, %v8591_v43  ;;  %v789_v57 = vpop.f32.mrb[36].mxu1  ;;  %v8616_v33 = vld [vmem:[#allocation7 + $0x908] sm:$0xff] }
 0x194   :  { %v8607_v4 = vpack.c.bf16 %v887_v55, %v879_v23  ;;  %v8609_v18 = vpack.c.bf16 %v872_v6, %v864_v21  ;;  %v6815_v9 = vcombine.low %v1331_v16, %v1335_v15  ;;  %v6816_v37 = vcombine.high %v1331_v16, %v1335_v15  ;;  %v8618_v23 = vld [vmem:[#allocation7 + $0x928] sm:$0xff] }
 0x195   :  { %4393 = vmatpush1.bf16.msra.mxu0 %v6797_v10  ;;  %4845 = vmatpush1.bf16.msra.mxu1 %v6799_v19  ;;  %v687_v10 = vadd.f32 %v686_v29, %v8465_v41  ;;  %v688_v19 = vpop.f32.mrb[41].mxu0  ;;  %v8614_v47 = vpack.c.bf16 %v873_v49, %v865_v13  ;;  %v6822_v49 = vcombine.high %v8603_v8, %v8605_v60  ;;  %v1351_v44 = vld [vmem:[#allocation7 + $0x968] sm:$0xff] }
 0x196   :  { %9962 = vst [vmem:[#allocation49_spill] sm:$0xff] %v8609_v18  ;;  %4394 = vmatprep.subr.bf16.mxu0 %v6806_v7  ;;  %4846 = vmatprep.subr.bf16.mxu1 %v6808_v45  ;;  %v689_v21 = vadd.f32 %v688_v19, %v8477_v5  ;;  %v690_v27 = vpop.f32.mrb[42].mxu0  ;;  %v790_v7 = vadd.f32 %v789_v57, %v8544_v48  ;;  %v791_v45 = vpop.f32.mrb[37].mxu1 }
 0x197   :  { %9963 = vst [vmem:[#allocation50_spill] sm:$0xff] %v8614_v47  ;;  %v894_v50 = vmax.f32 %v687_v10, 0.0  ;;  %v691_v15 = vadd.f32 %v690_v27, %v8465_v41  ;;  %v692_v43 = vpop.f32.mrb[43].mxu0  ;;  %v792_v13 = vadd.f32 %v791_v45, %v8552_v51  ;;  %v793_v55 = vpop.f32.mrb[38].mxu1  ;;  %v6824_v10 = vcombine.high %v8616_v33, %v8618_v23  ;;  %v8633_v27 = vld [vmem:[#allocation7 + $0x940] sm:$0xff] }
 0x198   :  { %4320 = vmatmul.mubr.bf16.gmra.mrb[68].mxu0 %v8158_v22  ;;  %4772 = vmatmul.mubr.bf16.gmra.mrb[68].mxu1 %v8158_v22  ;;  %v895_v6 = vmax.f32 %v689_v21, 0.0  ;;  %v693_v16 = vadd.f32 %v692_v43, %v8477_v5  ;;  %v880_v29 = vmax.f32 %v790_v7, 0.0  ;;  %v794_v19 = vadd.f32 %v793_v55, %v8544_v48  ;;  %v795_v57 = vpop.f32.mrb[39].mxu1  ;;  %v8635_v22 = vld [vmem:[#allocation7 + $0x960] sm:$0xff]  ;;  %v1347_v55 = vld [vmem:[#allocation7 + $0x948] sm:$0xff] }
 0x199   :  { %4395 = vmatpush1.bf16.msra.mxu0 %v6805_v36  ;;  %4847 = vmatpush1.bf16.msra.mxu1 %v6807_v56  ;;  %v902_v45 = vmax.f32 %v691_v15, 0.0  ;;  %v881_v36 = vmax.f32 %v792_v13, 0.0  ;;  %v796_v56 = vadd.f32 %v795_v57, %v8552_v51  ;;  %v6823_v43 = vcombine.low %v8616_v33, %v8618_v23  ;;  %v8647_v13 = vld [vmem:[#allocation7 + $0x980] sm:$0xff] }
 0x19a   :  { %4396 = vmatprep.subr.bf16.mxu0 %v6814_v35  ;;  %4329 = vmatprep.mubr.bf16.mxu0 %v8234_v24  ;;  %v903_v21 = vmax.f32 %v693_v16, 0.0  ;;  %v888_v7 = vmax.f32 %v794_v19, 0.0  ;;  %v6821_v35 = vcombine.low %v8603_v8, %v8605_v60  ;;  %v6829_v15 = vcombine.low %v8633_v27, %v8635_v22  ;;  %v696_v8 = vpop.f32.mrb[44].mxu0 }
 0x19b   :  { %4781 = vmatprep.mubr.bf16.mxu1 %v8234_v24  ;;  %4848 = vmatprep.subr.bf16.mxu1 %v6816_v37  ;;  %v8643_v63 = vpack.c.bf16 %v902_v45, %v894_v50  ;;  %v889_v46 = vmax.f32 %v796_v56, 0.0  ;;  %v8649_v37 = vld [vmem:[#allocation7 + $0x9a0] sm:$0xff]  ;;  %v6830_v33 = vcombine.high %v8633_v27, %v8635_v22  ;;  %v799_v50 = vpop.f32.mrb[40].mxu1  ;;  %v6831_v19 = vcombine.low %v1347_v55, %v1351_v44  ;;  %v8660_v45 = vld [vmem:[#allocation7 + $0x988] sm:$0xff] }
 0x19c   :  { %v8651_v16 = vpack.c.bf16 %v903_v21, %v895_v6  ;;  %v8653_v60 = vpack.c.bf16 %v888_v7, %v880_v29  ;;  %v6832_v57 = vcombine.high %v1347_v55, %v1351_v44  ;;  %v8662_v6 = vld [vmem:[#allocation7 + $0x9a8] sm:$0xff]  ;;  %v6838_v22 = vcombine.high %v8647_v13, %v8649_v37 }
 0x19d   :  { %4397 = vmatpush1.bf16.msra.mxu0 %v6813_v39  ;;  %4849 = vmatpush1.bf16.msra.mxu1 %v6815_v9  ;;  %v697_v39 = vadd.f32 %v696_v8, %v8465_v41  ;;  %v698_v9 = vpop.f32.mrb[45].mxu0  ;;  %v8658_v23 = vpack.c.bf16 %v889_v46, %v881_v36  ;;  %v1367_v24 = vld [vmem:[#allocation7 + $0x9e8] sm:$0xff] }
 0x19e   :  { %9964 = vst [vmem:[#allocation51_spill] sm:$0xff] %v8653_v60  ;;  %4398 = vmatprep.subr.bf16.mxu0 %v6822_v49  ;;  %4850 = vmatprep.subr.bf16.mxu1 %v6824_v10  ;;  %v699_v29 = vadd.f32 %v698_v9, %v8477_v5  ;;  %v700_v56 = vpop.f32.mrb[46].mxu0  ;;  %v800_v49 = vadd.f32 %v799_v50, %v8544_v48  ;;  %v801_v10 = vpop.f32.mrb[41].mxu1 }
 0x19f   :  { %9965 = vst [vmem:[#allocation52_spill] sm:$0xff] %v8658_v23  ;;  %v910_v46 = vmax.f32 %v697_v39, 0.0  ;;  %v701_v44 = vadd.f32 %v700_v56, %v8465_v41  ;;  %v702_v27 = vpop.f32.mrb[47].mxu0  ;;  %v802_v36 = vadd.f32 %v801_v10, %v8552_v51  ;;  %v803_v21 = vpop.f32.mrb[42].mxu1  ;;  %v6840_v39 = vcombine.high %v8660_v45, %v8662_v6  ;;  %v8677_v56 = vld [vmem:[#allocation7 + $0x9c0] sm:$0xff] }
 0x1a0   :  { %4330 = vmatmul.mubr.bf16.gmra.mrb[72].mxu0 %v8225_v11  ;;  %4782 = vmatmul.mubr.bf16.gmra.mrb[72].mxu1 %v8225_v11  ;;  %v911_v7 = vmax.f32 %v699_v29, 0.0  ;;  %v703_v55 = vadd.f32 %v702_v27, %v8477_v5  ;;  %v896_v8 = vmax.f32 %v800_v49, 0.0  ;;  %v804_v9 = vadd.f32 %v803_v21, %v8544_v48  ;;  %v805_v50 = vpop.f32.mrb[43].mxu1  ;;  %v8679_v11 = vld [vmem:[#allocation7 + $0x9e0] sm:$0xff]  ;;  %v1363_v21 = vld [vmem:[#allocation7 + $0x9c8] sm:$0xff] }
 0x1a1   :  { %4399 = vmatpush1.bf16.msra.mxu0 %v6821_v35  ;;  %4851 = vmatpush1.bf16.msra.mxu1 %v6823_v43  ;;  %v918_v10 = vmax.f32 %v701_v44, 0.0  ;;  %v897_v35 = vmax.f32 %v802_v36, 0.0  ;;  %v806_v43 = vadd.f32 %v805_v50, %v8552_v51  ;;  %v6839_v27 = vcombine.low %v8660_v45, %v8662_v6  ;;  %v8691_v36 = vld [vmem:[#allocation7 + $0xa00] sm:$0xff] }
 0x1a2   :  { %4400 = vmatprep.subr.bf16.mxu0 %v6830_v33  ;;  %4339 = vmatprep.mubr.bf16.mxu0 %v8301_v26  ;;  %v919_v29 = vmax.f32 %v703_v55, 0.0  ;;  %v904_v49 = vmax.f32 %v804_v9, 0.0  ;;  %v6837_v33 = vcombine.low %v8647_v13, %v8649_v37  ;;  %v6845_v44 = vcombine.low %v8677_v56, %v8679_v11  ;;  %v706_v13 = vpop.f32.mrb[48].mxu0 }
 0x1a3   :  { %4791 = vmatprep.mubr.bf16.mxu1 %v8301_v26  ;;  %4852 = vmatprep.subr.bf16.mxu1 %v6832_v57  ;;  %v8687_v54 = vpack.c.bf16 %v918_v10, %v910_v46  ;;  %v905_v0 = vmax.f32 %v806_v43, 0.0  ;;  %v8693_v57 = vld [vmem:[#allocation7 + $0xa20] sm:$0xff]  ;;  %v6846_v45 = vcombine.high %v8677_v56, %v8679_v11  ;;  %v809_v46 = vpop.f32.mrb[44].mxu1  ;;  %v6847_v9 = vcombine.low %v1363_v21, %v1367_v24  ;;  %v8704_v10 = vld [vmem:[#allocation7 + $0xa08] sm:$0xff] }
 0x1a4   :  { %v8695_v55 = vpack.c.bf16 %v919_v29, %v911_v7  ;;  %v8697_v37 = vpack.c.bf16 %v904_v49, %v896_v8  ;;  %v6848_v50 = vcombine.high %v1363_v21, %v1367_v24  ;;  %v8706_v7 = vld [vmem:[#allocation7 + $0xa28] sm:$0xff]  ;;  %v6854_v11 = vcombine.high %v8691_v36, %v8693_v57 }
 0x1a5   :  { %4401 = vmatpush1.bf16.msra.mxu0 %v6829_v15  ;;  %4853 = vmatpush1.bf16.msra.mxu1 %v6831_v19  ;;  %v707_v15 = vadd.f32 %v706_v13, %v8465_v41  ;;  %v708_v19 = vpop.f32.mrb[49].mxu0  ;;  %v8702_v6 = vpack.c.bf16 %v905_v0, %v897_v35  ;;  %v1383_v26 = vld [vmem:[#allocation7 + $0xa68] sm:$0xff] }
 0x1a6   :  { %9966 = vst [vmem:[#allocation53_spill] sm:$0xff] %v8697_v37  ;;  %4402 = vmatprep.subr.bf16.mxu0 %v6838_v22  ;;  %4854 = vmatprep.subr.bf16.mxu1 %v6840_v39  ;;  %v709_v8 = vadd.f32 %v708_v19, %v8477_v5  ;;  %v710_v43 = vpop.f32.mrb[50].mxu0  ;;  %v810_v22 = vadd.f32 %v809_v46, %v8544_v48  ;;  %v811_v39 = vpop.f32.mrb[45].mxu1 }
 0x1a7   :  { %9967 = vst [vmem:[#allocation54_spill] sm:$0xff] %v8702_v6  ;;  %v926_v0 = vmax.f32 %v707_v15, 0.0  ;;  %v711_v24 = vadd.f32 %v710_v43, %v8465_v41  ;;  %v712_v56 = vpop.f32.mrb[51].mxu0  ;;  %v812_v35 = vadd.f32 %v811_v39, %v8552_v51  ;;  %v813_v29 = vpop.f32.mrb[46].mxu1  ;;  %v6856_v15 = vcombine.high %v8704_v10, %v8706_v7  ;;  %v8721_v43 = vld [vmem:[#allocation7 + $0xa40] sm:$0xff] }
 0x1a8   :  { %4340 = vmatmul.mubr.bf16.gmra.mrb[76].mxu0 %v8292_v20  ;;  %4792 = vmatmul.mubr.bf16.gmra.mrb[76].mxu1 %v8292_v20  ;;  %v927_v49 = vmax.f32 %v709_v8, 0.0  ;;  %v713_v21 = vadd.f32 %v712_v56, %v8477_v5  ;;  %v912_v13 = vmax.f32 %v810_v22, 0.0  ;;  %v814_v19 = vadd.f32 %v813_v29, %v8544_v48  ;;  %v815_v46 = vpop.f32.mrb[47].mxu1  ;;  %v8723_v20 = vld [vmem:[#allocation7 + $0xa60] sm:$0xff]  ;;  %v1379_v29 = vld [vmem:[#allocation7 + $0xa48] sm:$0xff] }
 0x1a9   :  { %4403 = vmatpush1.bf16.msra.mxu0 %v6837_v33  ;;  %4855 = vmatpush1.bf16.msra.mxu1 %v6839_v27  ;;  %v934_v39 = vmax.f32 %v711_v24, 0.0  ;;  %v913_v33 = vmax.f32 %v812_v35, 0.0  ;;  %v816_v27 = vadd.f32 %v815_v46, %v8552_v51  ;;  %v6855_v56 = vcombine.low %v8704_v10, %v8706_v7  ;;  %v8735_v35 = vld [vmem:[#allocation7 + $0xa80] sm:$0xff] }
 0x1aa   :  { %4404 = vmatprep.subr.bf16.mxu0 %v6846_v45  ;;  %4349 = vmatprep.mubr.bf16.mxu0 %v8368_v42  ;;  %v935_v8 = vmax.f32 %v713_v21, 0.0  ;;  %v920_v22 = vmax.f32 %v814_v19, 0.0  ;;  %v6853_v45 = vcombine.low %v8691_v36, %v8693_v57  ;;  %v6861_v24 = vcombine.low %v8721_v43, %v8723_v20  ;;  %v716_v36 = vpop.f32.mrb[52].mxu0 }
 0x1ab   :  { %4801 = vmatprep.mubr.bf16.mxu1 %v8368_v42  ;;  %4856 = vmatprep.subr.bf16.mxu1 %v6848_v50  ;;  %v8731_v17 = vpack.c.bf16 %v934_v39, %v926_v0  ;;  %v921_v40 = vmax.f32 %v816_v27, 0.0  ;;  %v8737_v50 = vld [vmem:[#allocation7 + $0xaa0] sm:$0xff]  ;;  %v6862_v10 = vcombine.high %v8721_v43, %v8723_v20  ;;  %v819_v0 = vpop.f32.mrb[48].mxu1  ;;  %v6863_v19 = vcombine.low %v1379_v29, %v1383_v26  ;;  %v8748_v39 = vld [vmem:[#allocation7 + $0xa88] sm:$0xff] }
 0x1ac   :  { %v8739_v21 = vpack.c.bf16 %v935_v8, %v927_v49  ;;  %v8741_v57 = vpack.c.bf16 %v920_v22, %v912_v13  ;;  %v6864_v46 = vcombine.high %v1379_v29, %v1383_v26  ;;  %v8750_v49 = vld [vmem:[#allocation7 + $0xaa8] sm:$0xff] }
 0x1ad   :  { %4405 = vmatpush1.bf16.msra.mxu0 %v6845_v44  ;;  %4857 = vmatpush1.bf16.msra.mxu1 %v6847_v9  ;;  %v717_v44 = vadd.f32 %v716_v36, %v8465_v41  ;;  %v718_v9 = vpop.f32.mrb[53].mxu0  ;;  %v8746_v7 = vpack.c.bf16 %v921_v40, %v913_v33  ;;  %v6870_v40 = vcombine.high %v8735_v35, %v8737_v50  ;;  %v1399_v42 = vld [vmem:[#allocation7 + $0xae8] sm:$0xff] }
 0x1ae   :  { %9968 = vst [vmem:[#allocation55_spill] sm:$0xff] %v8741_v57  ;;  %4406 = vmatprep.subr.bf16.mxu0 %v6854_v11  ;;  %4858 = vmatprep.subr.bf16.mxu1 %v6856_v15  ;;  %v719_v13 = vadd.f32 %v718_v9, %v8477_v5  ;;  %v720_v27 = vpop.f32.mrb[54].mxu0  ;;  %v820_v11 = vadd.f32 %v819_v0, %v8544_v48  ;;  %v821_v15 = vpop.f32.mrb[49].mxu1 }
 0x1af   :  { %9969 = vst [vmem:[#allocation56_spill] sm:$0xff] %v8746_v7  ;;  %v942_v20 = vmax.f32 %v717_v44, 0.0  ;;  %v721_v26 = vadd.f32 %v720_v27, %v8465_v41  ;;  %v722_v43 = vpop.f32.mrb[55].mxu0  ;;  %v822_v33 = vadd.f32 %v821_v15, %v8552_v51  ;;  %v823_v8 = vpop.f32.mrb[50].mxu1  ;;  %v6872_v44 = vcombine.high %v8748_v39, %v8750_v49  ;;  %v8765_v27 = vld [vmem:[#allocation7 + $0xac0] sm:$0xff] }
 0x1b0   :  { %4350 = vmatmul.mubr.bf16.gmra.mrb[80].mxu0 %v8359_v32  ;;  %4802 = vmatmul.mubr.bf16.gmra.mrb[80].mxu1 %v8359_v32  ;;  %v943_v22 = vmax.f32 %v719_v13, 0.0  ;;  %v723_v29 = vadd.f32 %v722_v43, %v8477_v5  ;;  %v928_v36 = vmax.f32 %v820_v11, 0.0  ;;  %v824_v9 = vadd.f32 %v823_v8, %v8544_v48  ;;  %v825_v0 = vpop.f32.mrb[51].mxu1  ;;  %v8767_v32 = vld [vmem:[#allocation7 + $0xae0] sm:$0xff]  ;;  %v1395_v8 = vld [vmem:[#allocation7 + $0xac8] sm:$0xff] }
 0x1b1   :  { %4407 = vmatpush1.bf16.msra.mxu0 %v6853_v45  ;;  %4859 = vmatpush1.bf16.msra.mxu1 %v6855_v56  ;;  %v950_v15 = vmax.f32 %v721_v26, 0.0  ;;  %v929_v45 = vmax.f32 %v822_v33, 0.0  ;;  %v826_v56 = vadd.f32 %v825_v0, %v8552_v51  ;;  %v6871_v43 = vcombine.low %v8748_v39, %v8750_v49  ;;  %v8779_v33 = vld [vmem:[#allocation7 + $0xb00] sm:$0xff] }
 0x1b2   :  { %4408 = vmatprep.subr.bf16.mxu0 %v6862_v10  ;;  %4359 = vmatprep.mubr.bf16.mxu0 %v8434_v14  ;;  %v951_v13 = vmax.f32 %v723_v29, 0.0  ;;  %v936_v11 = vmax.f32 %v824_v9, 0.0  ;;  %v6869_v10 = vcombine.low %v8735_v35, %v8737_v50  ;;  %v6877_v26 = vcombine.low %v8765_v27, %v8767_v32  ;;  %v726_v35 = vpop.f32.mrb[56].mxu0 }
 0x1b3   :  { %4811 = vmatprep.mubr.bf16.mxu1 %v8434_v14  ;;  %4860 = vmatprep.subr.bf16.mxu1 %v6864_v46  ;;  %v8775_v25 = vpack.c.bf16 %v950_v15, %v942_v20  ;;  %v937_v30 = vmax.f32 %v826_v56, 0.0  ;;  %v8781_v46 = vld [vmem:[#allocation7 + $0xb20] sm:$0xff]  ;;  %v6878_v39 = vcombine.high %v8765_v27, %v8767_v32  ;;  %v829_v20 = vpop.f32.mrb[52].mxu1  ;;  %v6879_v9 = vcombine.low %v1395_v8, %v1399_v42  ;;  %v8792_v15 = vld [vmem:[#allocation7 + $0xb08] sm:$0xff] }
 0x1b4   :  { %v8783_v29 = vpack.c.bf16 %v951_v13, %v943_v22  ;;  %v8785_v50 = vpack.c.bf16 %v936_v11, %v928_v36  ;;  %v6880_v0 = vcombine.high %v1395_v8, %v1399_v42  ;;  %v8794_v22 = vld [vmem:[#allocation7 + $0xb28] sm:$0xff] }
 0x1b5   :  { %4409 = vmatpush1.bf16.msra.mxu0 %v6861_v24  ;;  %4861 = vmatpush1.bf16.msra.mxu1 %v6863_v19  ;;  %v727_v24 = vadd.f32 %v726_v35, %v8465_v41  ;;  %v728_v19 = vpop.f32.mrb[57].mxu0  ;;  %v8790_v49 = vpack.c.bf16 %v937_v30, %v929_v45  ;;  %v6886_v30 = vcombine.high %v8779_v33, %v8781_v46  ;;  %v1415_v14 = vld [vmem:[#allocation7 + $0xb68] sm:$0xff] }
 0x1b6   :  { %9970 = vst [vmem:[#allocation57_spill] sm:$0xff] %v8785_v50  ;;  %4410 = vmatprep.subr.bf16.mxu0 %v6870_v40  ;;  %4862 = vmatprep.subr.bf16.mxu1 %v6872_v44  ;;  %v729_v36 = vadd.f32 %v728_v19, %v8477_v5  ;;  %v730_v56 = vpop.f32.mrb[58].mxu0  ;;  %v830_v40 = vadd.f32 %v829_v20, %v8544_v48  ;;  %v831_v44 = vpop.f32.mrb[53].mxu1 }
 0x1b7   :  { %9971 = vst [vmem:[#allocation58_spill] sm:$0xff] %v8790_v49  ;;  %v958_v32 = vmax.f32 %v727_v24, 0.0  ;;  %v731_v42 = vadd.f32 %v730_v56, %v8465_v41  ;;  %v732_v27 = vpop.f32.mrb[59].mxu0  ;;  %v832_v45 = vadd.f32 %v831_v44, %v8552_v51  ;;  %v833_v13 = vpop.f32.mrb[54].mxu1  ;;  %v6888_v24 = vcombine.high %v8792_v15, %v8794_v22  ;;  %v8809_v56 = vld [vmem:[#allocation7 + $0xb40] sm:$0xff] }
 0x1b8   :  { %4360 = vmatmul.mubr.bf16.gmra.mrb[84].mxu0 %v8426_v28  ;;  %4812 = vmatmul.mubr.bf16.gmra.mrb[84].mxu1 %v8426_v28  ;;  %v959_v11 = vmax.f32 %v729_v36, 0.0  ;;  %v733_v8 = vadd.f32 %v732_v27, %v8477_v5  ;;  %v944_v35 = vmax.f32 %v830_v40, 0.0  ;;  %v834_v19 = vadd.f32 %v833_v13, %v8544_v48  ;;  %v835_v20 = vpop.f32.mrb[55].mxu1  ;;  %v8811_v28 = vld [vmem:[#allocation7 + $0xb60] sm:$0xff]  ;;  %v1411_v13 = vld [vmem:[#allocation7 + $0xb48] sm:$0xff] }
 0x1b9   :  { %4411 = vmatpush1.bf16.msra.mxu0 %v6869_v10  ;;  %4863 = vmatpush1.bf16.msra.mxu1 %v6871_v43  ;;  %v966_v44 = vmax.f32 %v731_v42, 0.0  ;;  %v945_v10 = vmax.f32 %v832_v45, 0.0  ;;  %v836_v43 = vadd.f32 %v835_v20, %v8552_v51  ;;  %v6887_v27 = vcombine.low %v8792_v15, %v8794_v22  ;;  %v8823_v45 = vld [vmem:[#allocation7 + $0xb80] sm:$0xff] }
 0x1ba   :  { %4412 = vmatprep.subr.bf16.mxu0 %v6878_v39  ;;  %4369 = vmatprep.mubr.bf16.mxu0 %v8500_v1  ;;  %v967_v36 = vmax.f32 %v733_v8, 0.0  ;;  %v952_v40 = vmax.f32 %v834_v19, 0.0  ;;  %v6885_v39 = vcombine.low %v8779_v33, %v8781_v46  ;;  %v6893_v42 = vcombine.low %v8809_v56, %v8811_v28  ;;  %v736_v33 = vpop.f32.mrb[60].mxu0 }
 0x1bb   :  { %4821 = vmatprep.mubr.bf16.mxu1 %v8500_v1  ;;  %4864 = vmatprep.subr.bf16.mxu1 %v6880_v0  ;;  %v8819_v52 = vpack.c.bf16 %v966_v44, %v958_v32  ;;  %v953_v3 = vmax.f32 %v836_v43, 0.0  ;;  %v8825_v0 = vld [vmem:[#allocation7 + $0xba0] sm:$0xff]  ;;  %v6894_v15 = vcombine.high %v8809_v56, %v8811_v28  ;;  %v839_v32 = vpop.f32.mrb[56].mxu1  ;;  %v6895_v19 = vcombine.low %v1411_v13, %v1415_v14  ;;  %v1419_v44 = vld [vmem:[#allocation7 + $0xb88] sm:$0xff] }
 0x1bc   :  { %v8827_v8 = vpack.c.bf16 %v967_v36, %v959_v11  ;;  %v8829_v46 = vpack.c.bf16 %v952_v40, %v944_v35  ;;  %v6896_v20 = vcombine.high %v1411_v13, %v1415_v14  ;;  %v1423_v43 = vld [vmem:[#allocation7 + $0xba8] sm:$0xff]  ;;  %v840_v35 = vadd.f32 %v839_v32, %v8544_v48 }
 0x1bd   :  { %4413 = vmatpush1.bf16.msra.mxu0 %v6877_v26  ;;  %4865 = vmatpush1.bf16.msra.mxu1 %v6879_v9  ;;  %v737_v26 = vadd.f32 %v736_v33, %v8465_v41  ;;  %v738_v9 = vpop.f32.mrb[61].mxu0  ;;  %v8834_v22 = vpack.c.bf16 %v953_v3, %v945_v10  ;;  %v6902_v28 = vcombine.high %v8823_v45, %v8825_v0 }
 0x1be   :  { %9972 = vst [vmem:[#allocation59_spill] sm:$0xff] %v8829_v46  ;;  %4414 = vmatprep.subr.bf16.mxu0 %v6886_v30  ;;  %4866 = vmatprep.subr.bf16.mxu1 %v6888_v24  ;;  %v739_v11 = vadd.f32 %v738_v9, %v8477_v5  ;;  %v740_v36 = vpop.f32.mrb[62].mxu0  ;;  %v841_v30 = vpop.f32.mrb[57].mxu1  ;;  %v960_v33 = vmax.f32 %v840_v35, 0.0  ;;  %v1427_v35 = vld [vmem:[#allocation7 + $0xbc8] sm:$0xff] }
 0x1bf   :  { %9973 = vst [vmem:[#allocation60_spill] sm:$0xff] %v8834_v22  ;;  %v974_v3 = vmax.f32 %v737_v26, 0.0  ;;  %v741_v24 = vadd.f32 %v740_v36, %v8465_v41  ;;  %v742_v56 = vpop.f32.mrb[63].mxu0  ;;  %v842_v14 = vadd.f32 %v841_v30, %v8552_v51  ;;  %v843_v10 = vpop.f32.mrb[58].mxu1  ;;  %v1431_v30 = vld [vmem:[#allocation7 + $0xbe8] sm:$0xff] }
 0x1c0   :  { %4370 = vmatmul.mubr.bf16.gmra.mrb[88].mxu0 %v8496_v38  ;;  %4822 = vmatmul.mubr.bf16.gmra.mrb[88].mxu1 %v8496_v38  ;;  %v975_v40 = vmax.f32 %v739_v11, 0.0  ;;  %v743_v13 = vadd.f32 %v742_v56, %v8477_v5  ;;  %v844_v9 = vadd.f32 %v843_v10, %v8544_v48  ;;  %v845_v32 = vpop.f32.mrb[59].mxu1  ;;  %v6904_v38 = vcombine.high %v1419_v44, %v1423_v43 }
 0x1c1   :  { %4415 = vmatpush1.bf16.msra.mxu0 %v6885_v39  ;;  %4867 = vmatpush1.bf16.msra.mxu1 %v6887_v27  ;;  %v982_v26 = vmax.f32 %v741_v24, 0.0  ;;  %v961_v1 = vmax.f32 %v842_v14, 0.0  ;;  %v846_v41 = vadd.f32 %v845_v32, %v8552_v51  ;;  %v1426_v39 = vld [vmem:[#allocation7 + $0xbc0] sm:$0xff]  ;;  %v6901_v5 = vcombine.low %v8823_v45, %v8825_v0  ;;  %v849_v32 = vpop.f32.mrb[60].mxu1 }
 0x1c2   :  { %4416 = vmatprep.subr.bf16.mxu0 %v6894_v15  ;;  %4379 = vmatprep.mubr.bf16.mxu0 %v8569_v59  ;;  %v1430_v27 = vld [vmem:[#allocation7 + $0xbe0] sm:$0xff]  ;;  %v983_v11 = vmax.f32 %v743_v13, 0.0  ;;  %v968_v36 = vmax.f32 %v844_v9, 0.0  ;;  %v6903_v24 = vcombine.low %v1419_v44, %v1423_v43  ;;  %v6912_v45 = vcombine.high %v1427_v35, %v1431_v30 }
 0x1c3   :  { %4831 = vmatprep.mubr.bf16.mxu1 %v8569_v59  ;;  %4868 = vmatprep.subr.bf16.mxu1 %v6896_v20  ;;  %v8851_v15 = vpack.c.bf16 %v982_v26, %v974_v3  ;;  %v969_v56 = vmax.f32 %v846_v41, 0.0  ;;  %v6910_v20 = vcombine.high %v1426_v39, %v1430_v27  ;;  %v1434_v13 = vld [vmem:[#allocation7 + $0xc00] sm:$0xff]  ;;  %v1435_v59 = vld [vmem:[#allocation7 + $0xc08] sm:$0xff]  ;;  %v850_v26 = vadd.f32 %v849_v32, %v8544_v48 }
 0x1c4   :  { %v8853_v14 = vpack.c.bf16 %v983_v11, %v975_v40  ;;  %v8855_v10 = vpack.c.bf16 %v968_v36, %v960_v33  ;;  %v1438_v0 = vld [vmem:[#allocation7 + $0xc20] sm:$0xff]  ;;  %v1439_v3 = vld [vmem:[#allocation7 + $0xc28] sm:$0xff] }
 0x1c5   :  { %9974 = vst [vmem:[#allocation61_spill] sm:$0xff] %v8851_v15  ;;  %4417 = vmatpush1.bf16.msra.mxu0 %v6893_v42  ;;  %4869 = vmatpush1.bf16.msra.mxu1 %v6895_v19  ;;  %v8857_v9 = vpack.c.bf16 %v969_v56, %v961_v1  ;;  %v851_v42 = vpop.f32.mrb[61].mxu1  ;;  %v6911_v1 = vcombine.low %v1427_v35, %v1431_v30  ;;  %v976_v43 = vmax.f32 %v850_v26, 0.0  ;;  %v1442_v56 = vld [vmem:[#allocation7 + $0xc40] sm:$0xff] }
 0x1c6   :  { %9975 = vst [vmem:[#allocation62_spill] sm:$0xff] %v8853_v14  ;;  %9976 = vst [vmem:[#allocation63_spill] sm:$0xff] %v8855_v10  ;;  %4418 = vmatprep.subr.bf16.mxu0 %v6902_v28  ;;  %4870 = vmatprep.subr.bf16.mxu1 %v6904_v38  ;;  %v852_v19 = vadd.f32 %v851_v42, %v8552_v51  ;;  %v853_v44 = vpop.f32.mrb[62].mxu1  ;;  %v6909_v38 = vcombine.low %v1426_v39, %v1430_v27  ;;  %v1443_v39 = vld [vmem:[#allocation7 + $0xc48] sm:$0xff]  ;;  %v1450_v26 = vld [vmem:[#allocation7 + $0xc80] sm:$0xff] }
 0x1c7   :  { %9977 = vst [vmem:[#allocation64_spill] sm:$0xff] %v8857_v9  ;;  %v854_v28 = vadd.f32 %v853_v44, %v8544_v48  ;;  %v855_v40 = vpop.f32.mrb[63].mxu1  ;;  %v6918_v33 = vcombine.high %v1434_v13, %v1438_v0  ;;  %v6920_v41 = vcombine.high %v1435_v59, %v1439_v3  ;;  %v1447_v27 = vld [vmem:[#allocation7 + $0xc68] sm:$0xff]  ;;  %v6917_v48 = vcombine.low %v1434_v13, %v1438_v0  ;;  %v1454_v42 = vld [vmem:[#allocation7 + $0xca0] sm:$0xff] }
 0x1c8   :  { %4380 = vmatmul.mubr.bf16.gmra.mrb[92].mxu0 %v8563_v2  ;;  %4832 = vmatmul.mubr.bf16.gmra.mrb[92].mxu1 %v8563_v2  ;;  %v977_v11 = vmax.f32 %v852_v19, 0.0  ;;  %v856_v36 = vadd.f32 %v855_v40, %v8552_v51  ;;  %v6919_v30 = vcombine.low %v1435_v59, %v1439_v3  ;;  %v1451_v19 = vld [vmem:[#allocation7 + $0xc88] sm:$0xff]  ;;  %v6927_v59 = vcombine.low %v1443_v39, %v1447_v27 }
 0x1c9   :  { %4419 = vmatpush1.bf16.msra.mxu0 %v6901_v5  ;;  %4871 = vmatpush1.bf16.msra.mxu1 %v6903_v24  ;;  %v1446_v5 = vld [vmem:[#allocation7 + $0xc60] sm:$0xff]  ;;  %v984_v24 = vmax.f32 %v854_v28, 0.0  ;;  %v1455_v44 = vld [vmem:[#allocation7 + $0xca8] sm:$0xff]  ;;  %v6934_v0 = vcombine.high %v1450_v26, %v1454_v42  ;;  %v6933_v40 = vcombine.low %v1450_v26, %v1454_v42 }
 0x1ca   :  { %4420 = vmatprep.subr.bf16.mxu0 %v6910_v20  ;;  %4422 = vmatprep.mubr.bf16.mxu0 %v8565_v31  ;;  %v985_v35 = vmax.f32 %v856_v36, 0.0  ;;  %v6926_v32 = vcombine.high %v1442_v56, %v1446_v5  ;;  %v6925_v13 = vcombine.low %v1442_v56, %v1446_v5  ;;  %v6936_v3 = vcombine.high %v1451_v19, %v1455_v44  ;;  %v1463_v28 = vld [vmem:[#allocation7 + $0xce8] sm:$0xff]  ;;  %v1470_v56 = vld [vmem:[#allocation7 + $0xd20] sm:$0xff] }
 0x1cb   :  { %4872 = vmatprep.subr.bf16.mxu1 %v6912_v45  ;;  %4874 = vmatprep.mubr.bf16.mxu1 %v8565_v31  ;;  %v8867_v20 = vpack.c.bf16 %v984_v24, %v976_v43  ;;  %v6928_v45 = vcombine.high %v1443_v39, %v1447_v27  ;;  %v1459_v43 = vld [vmem:[#allocation7 + $0xcc8] sm:$0xff] }
 0x1cc   :  { %v8869_v51 = vpack.c.bf16 %v985_v35, %v977_v11  ;;  %v1466_v11 = vld [vmem:[#allocation7 + $0xd00] sm:$0xff]  ;;  %v6944_v36 = vcombine.high %v1459_v43, %v1463_v28  ;;  %v1467_v5 = vld [vmem:[#allocation7 + $0xd08] sm:$0xff]  ;;  %v6943_v27 = vcombine.low %v1459_v43, %v1463_v28 }
 0x1cd   :  { %4421 = vmatpush1.bf16.msra.mxu0 %v6909_v38  ;;  %4873 = vmatpush1.bf16.msra.mxu1 %v6911_v1  ;;  %9978 = vst [vmem:[#allocation65_spill] sm:$0xff] %v8867_v20  ;;  %v1458_v38 = vld [vmem:[#allocation7 + $0xcc0] sm:$0xff]  ;;  %v1471_v24 = vld [vmem:[#allocation7 + $0xd28] sm:$0xff]  ;;  %v6950_v35 = vcombine.high %v1466_v11, %v1470_v56  ;;  %v6949_v42 = vcombine.low %v1466_v11, %v1470_v56 }
 0x1ce   :  { %4503 = vmatprep.subr.bf16.mxu0 %v6918_v33  ;;  %4955 = vmatprep.subr.bf16.mxu1 %v6920_v41  ;;  %9979 = vst [vmem:[#allocation66_spill] sm:$0xff] %v8869_v51  ;;  %v1462_v1 = vld [vmem:[#allocation7 + $0xce0] sm:$0xff]  ;;  %v6935_v33 = vcombine.low %v1451_v19, %v1455_v44  ;;  %v1475_v26 = vld [vmem:[#allocation7 + $0xd48] sm:$0xff]  ;;  %v6951_v19 = vcombine.low %v1467_v5, %v1471_v24 }
 0x1cf   :  { %v6942_v41 = vcombine.high %v1458_v38, %v1462_v1  ;;  %v6941_v39 = vcombine.low %v1458_v38, %v1462_v1  ;;  %v1487_v38 = vld [vmem:[#allocation7 + $0xda8] sm:$0xff] }
 0x1d0   :  { %4423 = vmatmul.mubr.bf16.vlgmr.msra.gmra.mrb[64].mxu0 %v8548_v61  ;;  %4875 = vmatmul.mubr.bf16.vlgmr.msra.gmra.mrb[64].mxu1 %v8548_v61  ;;  %v1491_v11 = vld [vmem:[#allocation7 + $0xdc8] sm:$0xff] }
 0x1d1   :  { %4504 = vmatpush1.bf16.msra.mxu0 %v6917_v48  ;;  %4956 = vmatpush1.bf16.msra.mxu1 %v6919_v30  ;;  %v6952_v48 = vcombine.high %v1467_v5, %v1471_v24  ;;  %v1474_v30 = vld [vmem:[#allocation7 + $0xd40] sm:$0xff] }
 0x1d2   :  { %4505 = vmatprep.subr.bf16.mxu0 %v6926_v32  ;;  %4432 = vmatprep.mubr.bf16.mxu0 %v8607_v4  ;;  %v1478_v32 = vld [vmem:[#allocation7 + $0xd60] sm:$0xff] }
 0x1d3   :  { %4884 = vmatprep.mubr.bf16.mxu1 %v8607_v4  ;;  %4957 = vmatprep.subr.bf16.mxu1 %v6928_v45  ;;  %v1479_v45 = vld [vmem:[#allocation7 + $0xd68] sm:$0xff]  ;;  %v6958_v44 = vcombine.high %v1474_v30, %v1478_v32  ;;  %v6957_v1 = vcombine.low %v1474_v30, %v1478_v32 }
 0x1d4   :  { %v6959_v43 = vcombine.low %v1475_v26, %v1479_v45  ;;  %v1503_v30 = vld [vmem:[#allocation7 + $0xe28] sm:$0xff] }
 0x1d5   :  { %4506 = vmatpush1.bf16.msra.mxu0 %v6925_v13  ;;  %4958 = vmatpush1.bf16.msra.mxu1 %v6927_v59  ;;  %v1482_v13 = vld [vmem:[#allocation7 + $0xd80] sm:$0xff]  ;;  %v6960_v59 = vcombine.high %v1475_v26, %v1479_v45 }
 0x1d6   :  { %4507 = vmatprep.subr.bf16.mxu0 %v6934_v0  ;;  %4959 = vmatprep.subr.bf16.mxu1 %v6936_v3  ;;  %v1486_v0 = vld [vmem:[#allocation7 + $0xda0] sm:$0xff]  ;;  %v1483_v3 = vld [vmem:[#allocation7 + $0xd88] sm:$0xff] }
 0x1d7   :  { %v6966_v28 = vcombine.high %v1482_v13, %v1486_v0  ;;  %v6965_v56 = vcombine.low %v1482_v13, %v1486_v0  ;;  %v6967_v5 = vcombine.low %v1483_v3, %v1487_v38  ;;  %v1507_v13 = vld [vmem:[#allocation7 + $0xe48] sm:$0xff] }
 0x1d8   :  { %4433 = vmatmul.mubr.bf16.gmra.mrb[68].mxu0 %v8599_v12  ;;  %4885 = vmatmul.mubr.bf16.gmra.mrb[68].mxu1 %v8599_v12 }
 0x1d9   :  { %4508 = vmatpush1.bf16.msra.mxu0 %v6933_v40  ;;  %4960 = vmatpush1.bf16.msra.mxu1 %v6935_v33  ;;  %v6968_v40 = vcombine.high %v1483_v3, %v1487_v38  ;;  %v1490_v33 = vld [vmem:[#allocation7 + $0xdc0] sm:$0xff] }
 0x1da   :  { %4509 = vmatprep.subr.bf16.mxu0 %v6942_v41  ;;  %4442 = vmatprep.mubr.bf16.mxu0 %v8651_v16  ;;  %v1494_v41 = vld [vmem:[#allocation7 + $0xde0] sm:$0xff] }
 0x1db   :  { %4894 = vmatprep.mubr.bf16.mxu1 %v8651_v16  ;;  %4961 = vmatprep.subr.bf16.mxu1 %v6944_v36  ;;  %v1495_v36 = vld [vmem:[#allocation7 + $0xde8] sm:$0xff]  ;;  %v6974_v24 = vcombine.high %v1490_v33, %v1494_v41  ;;  %v6973_v32 = vcombine.low %v1490_v33, %v1494_v41 }
 0x1dc   :  { %v6975_v26 = vcombine.low %v1491_v11, %v1495_v36  ;;  %v1519_v33 = vld [vmem:[#allocation7 + $0xea8] sm:$0xff] }
 0x1dd   :  { %4510 = vmatpush1.bf16.msra.mxu0 %v6941_v39  ;;  %4962 = vmatpush1.bf16.msra.mxu1 %v6943_v27  ;;  %v1498_v39 = vld [vmem:[#allocation7 + $0xe00] sm:$0xff]  ;;  %v6976_v27 = vcombine.high %v1491_v11, %v1495_v36 }
 0x1de   :  { %4511 = vmatprep.subr.bf16.mxu0 %v6950_v35  ;;  %4963 = vmatprep.subr.bf16.mxu1 %v6952_v48  ;;  %v1502_v35 = vld [vmem:[#allocation7 + $0xe20] sm:$0xff]  ;;  %v1499_v48 = vld [vmem:[#allocation7 + $0xe08] sm:$0xff] }
 0x1df   :  { %v6982_v45 = vcombine.high %v1498_v39, %v1502_v35  ;;  %v6981_v0 = vcombine.low %v1498_v39, %v1502_v35  ;;  %v6983_v3 = vcombine.low %v1499_v48, %v1503_v30  ;;  %v1523_v39 = vld [vmem:[#allocation7 + $0xec8] sm:$0xff] }
 0x1e0   :  { %4443 = vmatmul.mubr.bf16.gmra.mrb[72].mxu0 %v8643_v63  ;;  %4895 = vmatmul.mubr.bf16.gmra.mrb[72].mxu1 %v8643_v63 }
 0x1e1   :  { %4512 = vmatpush1.bf16.msra.mxu0 %v6949_v42  ;;  %4964 = vmatpush1.bf16.msra.mxu1 %v6951_v19  ;;  %v6984_v42 = vcombine.high %v1499_v48, %v1503_v30  ;;  %v1506_v19 = vld [vmem:[#allocation7 + $0xe40] sm:$0xff] }
 0x1e2   :  { %4513 = vmatprep.subr.bf16.mxu0 %v6958_v44  ;;  %4452 = vmatprep.mubr.bf16.mxu0 %v8695_v55  ;;  %v1510_v44 = vld [vmem:[#allocation7 + $0xe60] sm:$0xff] }
 0x1e3   :  { %4904 = vmatprep.mubr.bf16.mxu1 %v8695_v55  ;;  %4965 = vmatprep.subr.bf16.mxu1 %v6960_v59  ;;  %v1511_v59 = vld [vmem:[#allocation7 + $0xe68] sm:$0xff]  ;;  %v6990_v38 = vcombine.high %v1506_v19, %v1510_v44  ;;  %v6989_v41 = vcombine.low %v1506_v19, %v1510_v44 }
 0x1e4   :  { %v6991_v11 = vcombine.low %v1507_v13, %v1511_v59  ;;  %v1535_v19 = vld [vmem:[#allocation7 + $0xf28] sm:$0xff] }
 0x1e5   :  { %4514 = vmatpush1.bf16.msra.mxu0 %v6957_v1  ;;  %4966 = vmatpush1.bf16.msra.mxu1 %v6959_v43  ;;  %v1514_v1 = vld [vmem:[#allocation7 + $0xe80] sm:$0xff]  ;;  %v6992_v43 = vcombine.high %v1507_v13, %v1511_v59 }
 0x1e6   :  { %4515 = vmatprep.subr.bf16.mxu0 %v6966_v28  ;;  %4967 = vmatprep.subr.bf16.mxu1 %v6968_v40  ;;  %v1518_v28 = vld [vmem:[#allocation7 + $0xea0] sm:$0xff]  ;;  %v1515_v40 = vld [vmem:[#allocation7 + $0xe88] sm:$0xff] }
 0x1e7   :  { %v6998_v36 = vcombine.high %v1514_v1, %v1518_v28  ;;  %v6997_v35 = vcombine.low %v1514_v1, %v1518_v28  ;;  %v6999_v48 = vcombine.low %v1515_v40, %v1519_v33  ;;  %v1539_v1 = vld [vmem:[#allocation7 + $0xf48] sm:$0xff] }
 0x1e8   :  { %4453 = vmatmul.mubr.bf16.gmra.mrb[76].mxu0 %v8687_v54  ;;  %4905 = vmatmul.mubr.bf16.gmra.mrb[76].mxu1 %v8687_v54 }
 0x1e9   :  { %4516 = vmatpush1.bf16.msra.mxu0 %v6965_v56  ;;  %4968 = vmatpush1.bf16.msra.mxu1 %v6967_v5  ;;  %v7000_v56 = vcombine.high %v1515_v40, %v1519_v33  ;;  %v1522_v5 = vld [vmem:[#allocation7 + $0xec0] sm:$0xff] }
 0x1ea   :  { %4517 = vmatprep.subr.bf16.mxu0 %v6974_v24  ;;  %4462 = vmatprep.mubr.bf16.mxu0 %v8739_v21  ;;  %v1526_v24 = vld [vmem:[#allocation7 + $0xee0] sm:$0xff] }
 0x1eb   :  { %4914 = vmatprep.mubr.bf16.mxu1 %v8739_v21  ;;  %4969 = vmatprep.subr.bf16.mxu1 %v6976_v27  ;;  %v1527_v27 = vld [vmem:[#allocation7 + $0xee8] sm:$0xff]  ;;  %v7006_v30 = vcombine.high %v1522_v5, %v1526_v24  ;;  %v7005_v44 = vcombine.low %v1522_v5, %v1526_v24 }
 0x1ec   :  { %v7007_v13 = vcombine.low %v1523_v39, %v1527_v27  ;;  %v1551_v5 = vld [vmem:[#allocation7 + $0xfa8] sm:$0xff] }
 0x1ed   :  { %4518 = vmatpush1.bf16.msra.mxu0 %v6973_v32  ;;  %4970 = vmatpush1.bf16.msra.mxu1 %v6975_v26  ;;  %v1530_v32 = vld [vmem:[#allocation7 + $0xf00] sm:$0xff]  ;;  %v7008_v26 = vcombine.high %v1523_v39, %v1527_v27 }
 0x1ee   :  { %4519 = vmatprep.subr.bf16.mxu0 %v6982_v45  ;;  %4971 = vmatprep.subr.bf16.mxu1 %v6984_v42  ;;  %v1534_v45 = vld [vmem:[#allocation7 + $0xf20] sm:$0xff]  ;;  %v1531_v42 = vld [vmem:[#allocation7 + $0xf08] sm:$0xff] }
 0x1ef   :  { %v7014_v59 = vcombine.high %v1530_v32, %v1534_v45  ;;  %v7013_v28 = vcombine.low %v1530_v32, %v1534_v45  ;;  %v7015_v40 = vcombine.low %v1531_v42, %v1535_v19  ;;  %v1555_v32 = vld [vmem:[#allocation7 + $0xfc8] sm:$0xff] }
 0x1f0   :  { %4463 = vmatmul.mubr.bf16.gmra.mrb[80].mxu0 %v8731_v17  ;;  %4915 = vmatmul.mubr.bf16.gmra.mrb[80].mxu1 %v8731_v17 }
 0x1f1   :  { %4520 = vmatpush1.bf16.msra.mxu0 %v6981_v0  ;;  %4972 = vmatpush1.bf16.msra.mxu1 %v6983_v3  ;;  %v7016_v0 = vcombine.high %v1531_v42, %v1535_v19  ;;  %v1538_v3 = vld [vmem:[#allocation7 + $0xf40] sm:$0xff] }
 0x1f2   :  { %4521 = vmatprep.subr.bf16.mxu0 %v6990_v38  ;;  %4472 = vmatprep.mubr.bf16.mxu0 %v8783_v29  ;;  %v1542_v38 = vld [vmem:[#allocation7 + $0xf60] sm:$0xff] }
 0x1f3   :  { %4924 = vmatprep.mubr.bf16.mxu1 %v8783_v29  ;;  %4973 = vmatprep.subr.bf16.mxu1 %v6992_v43  ;;  %v1543_v43 = vld [vmem:[#allocation7 + $0xf68] sm:$0xff]  ;;  %v7022_v33 = vcombine.high %v1538_v3, %v1542_v38  ;;  %v7021_v24 = vcombine.low %v1538_v3, %v1542_v38  ;;  %v1057_v3 = vld [vmem:[#allocation7 + $0x38] sm:$0xff] }
 0x1f4   :  { %v7023_v39 = vcombine.low %v1539_v1, %v1543_v43 }
 0x1f5   :  { %4522 = vmatpush1.bf16.msra.mxu0 %v6989_v41  ;;  %4974 = vmatpush1.bf16.msra.mxu1 %v6991_v11  ;;  %v1546_v41 = vld [vmem:[#allocation7 + $0xf80] sm:$0xff]  ;;  %v7024_v11 = vcombine.high %v1539_v1, %v1543_v43 }
 0x1f6   :  { %4523 = vmatprep.subr.bf16.mxu0 %v6998_v36  ;;  %4975 = vmatprep.subr.bf16.mxu1 %v7000_v56  ;;  %v1550_v36 = vld [vmem:[#allocation7 + $0xfa0] sm:$0xff]  ;;  %v1547_v56 = vld [vmem:[#allocation7 + $0xf88] sm:$0xff] }
 0x1f7   :  { %v7030_v27 = vcombine.high %v1546_v41, %v1550_v36  ;;  %v7029_v45 = vcombine.low %v1546_v41, %v1550_v36  ;;  %v7031_v42 = vcombine.low %v1547_v56, %v1551_v5  ;;  %v1065_v36 = vld [vmem:[#allocation7 + $0x78] sm:$0xff] }
 0x1f8   :  { %4473 = vmatmul.mubr.bf16.gmra.mrb[84].mxu0 %v8775_v25  ;;  %4925 = vmatmul.mubr.bf16.gmra.mrb[84].mxu1 %v8775_v25 }
 0x1f9   :  { %4524 = vmatpush1.bf16.msra.mxu0 %v6997_v35  ;;  %4976 = vmatpush1.bf16.msra.mxu1 %v6999_v48  ;;  %v7032_v35 = vcombine.high %v1547_v56, %v1551_v5  ;;  %v1554_v48 = vld [vmem:[#allocation7 + $0xfc0] sm:$0xff] }
 0x1fa   :  { %4525 = vmatprep.subr.bf16.mxu0 %v7006_v30  ;;  %4482 = vmatprep.mubr.bf16.mxu0 %v8827_v8  ;;  %v1558_v30 = vld [vmem:[#allocation7 + $0xfe0] sm:$0xff] }
 0x1fb   :  { %4934 = vmatprep.mubr.bf16.mxu1 %v8827_v8  ;;  %4977 = vmatprep.subr.bf16.mxu1 %v7008_v26  ;;  %v1559_v26 = vld [vmem:[#allocation7 + $0xfe8] sm:$0xff]  ;;  %v7038_v19 = vcombine.high %v1554_v48, %v1558_v30  ;;  %v7037_v38 = vcombine.low %v1554_v48, %v1558_v30  ;;  %v1069_v48 = vld [vmem:[#allocation7 + $0x98] sm:$0xff] }
 0x1fc   :  { %v7039_v1 = vcombine.low %v1555_v32, %v1559_v26  ;;  %v1073_v30 = vld [vmem:[#allocation7 + $0xb8] sm:$0xff] }
 0x1fd   :  { %4526 = vmatpush1.bf16.msra.mxu0 %v7005_v44  ;;  %4978 = vmatpush1.bf16.msra.mxu1 %v7007_v13  ;;  %v7040_v44 = vcombine.high %v1555_v32, %v1559_v26  ;;  %v1052_v13 = vld [vmem:[#allocation7 + $0x10] sm:$0xff] }
 0x1fe   :  { %4527 = vmatprep.subr.bf16.mxu0 %v7014_v59  ;;  %4979 = vmatprep.subr.bf16.mxu1 %v7016_v0  ;;  %v1056_v59 = vld [vmem:[#allocation7 + $0x30] sm:$0xff]  ;;  %v1053_v0 = vld [vmem:[#allocation7 + $0x18] sm:$0xff] }
 0x1ff   :  { %v6538_v43 = vcombine.high %v1052_v13, %v1056_v59  ;;  %v6537_v41 = vcombine.low %v1052_v13, %v1056_v59  ;;  %v6539_v56 = vcombine.low %v1053_v0, %v1057_v3  ;;  %v1077_v13 = vld [vmem:[#allocation7 + $0xd8] sm:$0xff] }
 0x200   :  { %4483 = vmatmul.mubr.bf16.gmra.mrb[88].mxu0 %v8819_v52  ;;  %4935 = vmatmul.mubr.bf16.gmra.mrb[88].mxu1 %v8819_v52  ;;  %v1081_v59 = vld [vmem:[#allocation7 + $0xf8] sm:$0xff] }
 0x201   :  { %4528 = vmatpush1.bf16.msra.mxu0 %v7013_v28  ;;  %4980 = vmatpush1.bf16.msra.mxu1 %v7015_v40  ;;  %v6540_v28 = vcombine.high %v1053_v0, %v1057_v3  ;;  %v1060_v40 = vld [vmem:[#allocation7 + $0x50] sm:$0xff]  ;;  %v6555_v0 = vcombine.low %v1069_v48, %v1073_v30 }
 0x202   :  { %4529 = vmatprep.subr.bf16.mxu0 %v7022_v33  ;;  %4492 = vmatprep.mubr.bf16.mxu0 %v8853_v14  ;;  %v1064_v33 = vld [vmem:[#allocation7 + $0x70] sm:$0xff] }
 0x203   :  { %4944 = vmatprep.mubr.bf16.mxu1 %v8853_v14  ;;  %4981 = vmatprep.subr.bf16.mxu1 %v7024_v11  ;;  %v1061_v11 = vld [vmem:[#allocation7 + $0x58] sm:$0xff]  ;;  %v6546_v5 = vcombine.high %v1060_v40, %v1064_v33 }
 0x204   :  { %v6547_v26 = vcombine.low %v1061_v11, %v1065_v36 }
 0x205   :  { %4530 = vmatpush1.bf16.msra.mxu0 %v7021_v24  ;;  %4982 = vmatpush1.bf16.msra.mxu1 %v7023_v39  ;;  %v1068_v24 = vld [vmem:[#allocation7 + $0x90] sm:$0xff] }
 0x206   :  { %4531 = vmatprep.subr.bf16.mxu0 %v7030_v27  ;;  %4983 = vmatprep.subr.bf16.mxu1 %v7032_v35  ;;  %v1072_v39 = vld [vmem:[#allocation7 + $0xb0] sm:$0xff]  ;;  %v6548_v27 = vcombine.high %v1061_v11, %v1065_v36  ;;  %v6545_v35 = vcombine.low %v1060_v40, %v1064_v33  ;;  %v1085_v40 = vld [vmem:[#allocation7 + $0x118] sm:$0xff]  ;;  %v6563_v11 = vcombine.low %v1077_v13, %v1081_v59 }
 0x207   :  { %v6554_v32 = vcombine.high %v1068_v24, %v1072_v39  ;;  %v1089_v33 = vld [vmem:[#allocation7 + $0x138] sm:$0xff] }
 0x208   :  { %4493 = vmatmul.mubr.bf16.gmra.mrb[92].mxu0 %v8851_v15  ;;  %4945 = vmatmul.mubr.bf16.gmra.mrb[92].mxu1 %v8851_v15  ;;  %v6572_v36 = vcombine.high %v1085_v40, %v1089_v33 }
 0x209   :  { %4532 = vmatpush1.bf16.msra.mxu0 %v7029_v45  ;;  %4535 = vmatprep.mubr.bf16.mxu0 %v8614_v47  ;;  %v6556_v45 = vcombine.high %v1069_v48, %v1073_v30  ;;  %v1100_v30 = vld [vmem:[#allocation7 + $0x190] sm:$0xff] }
 0x20a   :  { %4984 = vmatpush1.bf16.msra.mxu1 %v7031_v42  ;;  %4987 = vmatprep.mubr.bf16.mxu1 %v8614_v47  ;;  %v1076_v42 = vld [vmem:[#allocation7 + $0xd0] sm:$0xff] }
 0x20b   :  { %4533 = vmatprep.subr.bf16.mxu0 %v7038_v19  ;;  %4985 = vmatprep.subr.bf16.mxu1 %v7040_v44  ;;  %v1080_v19 = vld [vmem:[#allocation7 + $0xf0] sm:$0xff]  ;;  %v6553_v44 = vcombine.low %v1068_v24, %v1072_v39  ;;  %v1093_v39 = vld [vmem:[#allocation7 + $0x158] sm:$0xff] }
 0x20c   :  { %v6562_v3 = vcombine.high %v1076_v42, %v1080_v19  ;;  %v9206_v47 = vld [vmem:[#allocation7 + $0xf70] sm:$0xff] }
 0x20d   :  { %4534 = vmatpush1.bf16.msra.mxu0 %v7037_v38  ;;  %v1084_v38 = vld [vmem:[#allocation7 + $0x110] sm:$0xff] }
 0x20e   :  { %4986 = vmatpush1.bf16.msra.mxu1 %v7039_v1  ;;  %5068 = vmatprep.subr.bf16.mxu0 %v6538_v43  ;;  %v1088_v1 = vld [vmem:[#allocation7 + $0x130] sm:$0xff]  ;;  %v6564_v43 = vcombine.high %v1077_v13, %v1081_v59 }
 0x20f   :  { %5520 = vmatprep.subr.bf16.mxu1 %v6540_v28  ;;  %v6561_v28 = vcombine.low %v1076_v42, %v1080_v19  ;;  %v6569_v24 = vcombine.low %v1084_v38, %v1088_v1  ;;  %v1101_v42 = vld [vmem:[#allocation7 + $0x198] sm:$0xff] }
 0x210   :  { %4536 = vmatmul.mubr.bf16.vlgmr.msra.gmra.mrb[64].mxu0 %v8609_v18  ;;  %v1105_v19 = vld [vmem:[#allocation7 + $0x1b8] sm:$0xff] }
 0x211   :  { %4988 = vmatmul.mubr.bf16.vlgmr.msra.gmra.mrb[64].mxu1 %v8609_v18  ;;  %5069 = vmatpush1.bf16.msra.mxu0 %v6537_v41  ;;  %v6570_v41 = vcombine.high %v1084_v38, %v1088_v1  ;;  %v6588_v59 = vcombine.high %v1101_v42, %v1105_v19  ;;  %v1109_v1 = vld [vmem:[#allocation7 + $0x1d8] sm:$0xff] }
 0x212   :  { %4545 = vmatprep.mubr.bf16.mxu0 %v8658_v23  ;;  %4997 = vmatprep.mubr.bf16.mxu1 %v8658_v23 }
 0x213   :  { %5521 = vmatpush1.bf16.msra.mxu1 %v6539_v56  ;;  %5070 = vmatprep.subr.bf16.mxu0 %v6546_v5  ;;  %v1092_v56 = vld [vmem:[#allocation7 + $0x150] sm:$0xff] }
 0x214   :  { %5522 = vmatprep.subr.bf16.mxu1 %v6548_v27  ;;  %v1096_v5 = vld [vmem:[#allocation7 + $0x170] sm:$0xff]  ;;  %v1097_v27 = vld [vmem:[#allocation7 + $0x178] sm:$0xff] }
 0x215   :  { %5071 = vmatpush1.bf16.msra.mxu0 %v6545_v35  ;;  %v6571_v35 = vcombine.low %v1085_v40, %v1089_v33  ;;  %v6578_v48 = vcombine.high %v1092_v56, %v1096_v5  ;;  %v6579_v13 = vcombine.low %v1093_v39, %v1097_v27  ;;  %v1116_v33 = vld [vmem:[#allocation7 + $0x210] sm:$0xff] }
 0x216   :  { %5072 = vmatprep.subr.bf16.mxu0 %v6554_v32  ;;  %v1104_v32 = vld [vmem:[#allocation7 + $0x1b0] sm:$0xff] }
 0x217   :  { %5523 = vmatpush1.bf16.msra.mxu1 %v6547_v26  ;;  %v6580_v26 = vcombine.high %v1093_v39, %v1097_v27  ;;  %v6585_v38 = vcombine.low %v1100_v30, %v1104_v32 }
 0x218   :  { %4546 = vmatmul.mubr.bf16.gmra.mrb[68].mxu0 %v8653_v60  ;;  %5524 = vmatprep.subr.bf16.mxu1 %v6556_v45  ;;  %v6577_v45 = vcombine.low %v1092_v56, %v1096_v5  ;;  %v1117_v56 = vld [vmem:[#allocation7 + $0x218] sm:$0xff] }
 0x219   :  { %4998 = vmatmul.mubr.bf16.gmra.mrb[68].mxu1 %v8653_v60  ;;  %5073 = vmatpush1.bf16.msra.mxu0 %v6553_v44  ;;  %v6586_v44 = vcombine.high %v1100_v30, %v1104_v32  ;;  %v1121_v5 = vld [vmem:[#allocation7 + $0x238] sm:$0xff] }
 0x21a   :  { %4555 = vmatprep.mubr.bf16.mxu0 %v8702_v6  ;;  %5007 = vmatprep.mubr.bf16.mxu1 %v8702_v6  ;;  %v6604_v27 = vcombine.high %v1117_v56, %v1121_v5  ;;  %v1125_v32 = vld [vmem:[#allocation7 + $0x258] sm:$0xff] }
 0x21b   :  { %5525 = vmatpush1.bf16.msra.mxu1 %v6555_v0  ;;  %5074 = vmatprep.subr.bf16.mxu0 %v6562_v3  ;;  %v1108_v0 = vld [vmem:[#allocation7 + $0x1d0] sm:$0xff] }
 0x21c   :  { %5526 = vmatprep.subr.bf16.mxu1 %v6564_v43  ;;  %v1112_v3 = vld [vmem:[#allocation7 + $0x1f0] sm:$0xff]  ;;  %v1113_v43 = vld [vmem:[#allocation7 + $0x1f8] sm:$0xff] }
 0x21d   :  { %5075 = vmatpush1.bf16.msra.mxu0 %v6561_v28  ;;  %v6587_v28 = vcombine.low %v1101_v42, %v1105_v19  ;;  %v6594_v40 = vcombine.high %v1108_v0, %v1112_v3  ;;  %v6595_v39 = vcombine.low %v1109_v1, %v1113_v43  ;;  %v1132_v19 = vld [vmem:[#allocation7 + $0x290] sm:$0xff] }
 0x21e   :  { %5076 = vmatprep.subr.bf16.mxu0 %v6570_v41  ;;  %v1120_v41 = vld [vmem:[#allocation7 + $0x230] sm:$0xff] }
 0x21f   :  { %5527 = vmatpush1.bf16.msra.mxu1 %v6563_v11  ;;  %v6596_v11 = vcombine.high %v1109_v1, %v1113_v43  ;;  %v6601_v30 = vcombine.low %v1116_v33, %v1120_v41 }
 0x220   :  { %4556 = vmatmul.mubr.bf16.gmra.mrb[72].mxu0 %v8697_v37  ;;  %5528 = vmatprep.subr.bf16.mxu1 %v6572_v36  ;;  %v6593_v36 = vcombine.low %v1108_v0, %v1112_v3  ;;  %v1133_v0 = vld [vmem:[#allocation7 + $0x298] sm:$0xff] }
 0x221   :  { %5008 = vmatmul.mubr.bf16.gmra.mrb[72].mxu1 %v8697_v37  ;;  %5077 = vmatpush1.bf16.msra.mxu0 %v6569_v24  ;;  %v6602_v24 = vcombine.high %v1116_v33, %v1120_v41  ;;  %v1137_v3 = vld [vmem:[#allocation7 + $0x2b8] sm:$0xff] }
 0x222   :  { %4565 = vmatprep.mubr.bf16.mxu0 %v8746_v7  ;;  %5017 = vmatprep.mubr.bf16.mxu1 %v8746_v7  ;;  %v6620_v43 = vcombine.high %v1133_v0, %v1137_v3  ;;  %v1141_v41 = vld [vmem:[#allocation7 + $0x2d8] sm:$0xff] }
 0x223   :  { %5529 = vmatpush1.bf16.msra.mxu1 %v6571_v35  ;;  %5078 = vmatprep.subr.bf16.mxu0 %v6578_v48  ;;  %v1124_v35 = vld [vmem:[#allocation7 + $0x250] sm:$0xff]  ;;  %v9174_v7 = vld [vmem:[#allocation7 + $0xf38] sm:$0xff] }
 0x224   :  { %5530 = vmatprep.subr.bf16.mxu1 %v6580_v26  ;;  %v1128_v48 = vld [vmem:[#allocation7 + $0x270] sm:$0xff]  ;;  %v1129_v26 = vld [vmem:[#allocation7 + $0x278] sm:$0xff] }
 0x225   :  { %5079 = vmatpush1.bf16.msra.mxu0 %v6577_v45  ;;  %v6603_v45 = vcombine.low %v1117_v56, %v1121_v5  ;;  %v6610_v42 = vcombine.high %v1124_v35, %v1128_v48  ;;  %v6611_v1 = vcombine.low %v1125_v32, %v1129_v26  ;;  %v1148_v5 = vld [vmem:[#allocation7 + $0x310] sm:$0xff] }
 0x226   :  { %5080 = vmatprep.subr.bf16.mxu0 %v6586_v44  ;;  %v1136_v44 = vld [vmem:[#allocation7 + $0x2b0] sm:$0xff] }
 0x227   :  { %5531 = vmatpush1.bf16.msra.mxu1 %v6579_v13  ;;  %v6612_v13 = vcombine.high %v1125_v32, %v1129_v26  ;;  %v6617_v33 = vcombine.low %v1132_v19, %v1136_v44 }
 0x228   :  { %4566 = vmatmul.mubr.bf16.gmra.mrb[76].mxu0 %v8741_v57  ;;  %5532 = vmatprep.subr.bf16.mxu1 %v6588_v59  ;;  %v6609_v59 = vcombine.low %v1124_v35, %v1128_v48  ;;  %v1149_v35 = vld [vmem:[#allocation7 + $0x318] sm:$0xff] }
 0x229   :  { %5018 = vmatmul.mubr.bf16.gmra.mrb[76].mxu1 %v8741_v57  ;;  %5081 = vmatpush1.bf16.msra.mxu0 %v6585_v38  ;;  %v6618_v38 = vcombine.high %v1132_v19, %v1136_v44  ;;  %v1153_v48 = vld [vmem:[#allocation7 + $0x338] sm:$0xff]  ;;  %v9160_v57 = vld [vmem:[#allocation7 + $0xf30] sm:$0xff] }
 0x22a   :  { %4575 = vmatprep.mubr.bf16.mxu0 %v8790_v49  ;;  %5027 = vmatprep.mubr.bf16.mxu1 %v8790_v49  ;;  %v6636_v26 = vcombine.high %v1149_v35, %v1153_v48  ;;  %v1157_v44 = vld [vmem:[#allocation7 + $0x358] sm:$0xff] }
 0x22b   :  { %5533 = vmatpush1.bf16.msra.mxu1 %v6587_v28  ;;  %5082 = vmatprep.subr.bf16.mxu0 %v6594_v40  ;;  %v1140_v28 = vld [vmem:[#allocation7 + $0x2d0] sm:$0xff] }
 0x22c   :  { %5534 = vmatprep.subr.bf16.mxu1 %v6596_v11  ;;  %v1144_v40 = vld [vmem:[#allocation7 + $0x2f0] sm:$0xff]  ;;  %v1145_v11 = vld [vmem:[#allocation7 + $0x2f8] sm:$0xff] }
 0x22d   :  { %5083 = vmatpush1.bf16.msra.mxu0 %v6593_v36  ;;  %v6619_v36 = vcombine.low %v1133_v0, %v1137_v3  ;;  %v6626_v56 = vcombine.high %v1140_v28, %v1144_v40  ;;  %v6627_v32 = vcombine.low %v1141_v41, %v1145_v11  ;;  %v1164_v3 = vld [vmem:[#allocation7 + $0x390] sm:$0xff] }
 0x22e   :  { %5084 = vmatprep.subr.bf16.mxu0 %v6602_v24  ;;  %v1152_v24 = vld [vmem:[#allocation7 + $0x330] sm:$0xff] }
 0x22f   :  { %5535 = vmatpush1.bf16.msra.mxu1 %v6595_v39  ;;  %v6628_v39 = vcombine.high %v1141_v41, %v1145_v11  ;;  %v6633_v19 = vcombine.low %v1148_v5, %v1152_v24 }
 0x230   :  { %4576 = vmatmul.mubr.bf16.gmra.mrb[80].mxu0 %v8785_v50  ;;  %5536 = vmatprep.subr.bf16.mxu1 %v6604_v27  ;;  %v6625_v27 = vcombine.low %v1140_v28, %v1144_v40  ;;  %v1165_v28 = vld [vmem:[#allocation7 + $0x398] sm:$0xff] }
 0x231   :  { %5028 = vmatmul.mubr.bf16.gmra.mrb[80].mxu1 %v8785_v50  ;;  %5085 = vmatpush1.bf16.msra.mxu0 %v6601_v30  ;;  %v6634_v30 = vcombine.high %v1148_v5, %v1152_v24  ;;  %v1169_v40 = vld [vmem:[#allocation7 + $0x3b8] sm:$0xff] }
 0x232   :  { %4585 = vmatprep.mubr.bf16.mxu0 %v8834_v22  ;;  %5037 = vmatprep.mubr.bf16.mxu1 %v8834_v22  ;;  %v6652_v11 = vcombine.high %v1165_v28, %v1169_v40  ;;  %v1173_v24 = vld [vmem:[#allocation7 + $0x3d8] sm:$0xff]  ;;  %v9138_v22 = vld [vmem:[#allocation7 + $0xef0] sm:$0xff] }
 0x233   :  { %5537 = vmatpush1.bf16.msra.mxu1 %v6603_v45  ;;  %5086 = vmatprep.subr.bf16.mxu0 %v6610_v42  ;;  %v1156_v45 = vld [vmem:[#allocation7 + $0x350] sm:$0xff]  ;;  %v9147_v50 = vld [vmem:[#allocation7 + $0xed8] sm:$0xff] }
 0x234   :  { %5538 = vmatprep.subr.bf16.mxu1 %v6612_v13  ;;  %v1160_v42 = vld [vmem:[#allocation7 + $0x370] sm:$0xff]  ;;  %v1161_v13 = vld [vmem:[#allocation7 + $0x378] sm:$0xff] }
 0x235   :  { %5087 = vmatpush1.bf16.msra.mxu0 %v6609_v59  ;;  %v6635_v59 = vcombine.low %v1149_v35, %v1153_v48  ;;  %v6642_v0 = vcombine.high %v1156_v45, %v1160_v42  ;;  %v6643_v41 = vcombine.low %v1157_v44, %v1161_v13  ;;  %v1180_v48 = vld [vmem:[#allocation7 + $0x410] sm:$0xff] }
 0x236   :  { %5088 = vmatprep.subr.bf16.mxu0 %v6618_v38  ;;  %v1168_v38 = vld [vmem:[#allocation7 + $0x3b0] sm:$0xff] }
 0x237   :  { %5539 = vmatpush1.bf16.msra.mxu1 %v6611_v1  ;;  %v6644_v1 = vcombine.high %v1157_v44, %v1161_v13  ;;  %v6649_v5 = vcombine.low %v1164_v3, %v1168_v38  ;;  %v1188_v13 = vld [vmem:[#allocation7 + $0x450] sm:$0xff] }
 0x238   :  { %4586 = vmatmul.mubr.bf16.gmra.mrb[84].mxu0 %v8829_v46  ;;  %5540 = vmatprep.subr.bf16.mxu1 %v6620_v43  ;;  %v6641_v43 = vcombine.low %v1156_v45, %v1160_v42  ;;  %v1181_v45 = vld [vmem:[#allocation7 + $0x418] sm:$0xff] }
 0x239   :  { %5038 = vmatmul.mubr.bf16.gmra.mrb[84].mxu1 %v8829_v46  ;;  %5089 = vmatpush1.bf16.msra.mxu0 %v6617_v33  ;;  %v6650_v33 = vcombine.high %v1164_v3, %v1168_v38  ;;  %v1185_v42 = vld [vmem:[#allocation7 + $0x438] sm:$0xff] }
 0x23a   :  { %4595 = vmatprep.mubr.bf16.mxu0 %v8857_v9  ;;  %5047 = vmatprep.mubr.bf16.mxu1 %v8857_v9  ;;  %v1189_v38 = vld [vmem:[#allocation7 + $0x458] sm:$0xff]  ;;  %v9123_v9 = vld [vmem:[#allocation7 + $0xeb0] sm:$0xff] }
 0x23b   :  { %5541 = vmatpush1.bf16.msra.mxu1 %v6619_v36  ;;  %5090 = vmatprep.subr.bf16.mxu0 %v6626_v56  ;;  %v1172_v36 = vld [vmem:[#allocation7 + $0x3d0] sm:$0xff]  ;;  %v9125_v46 = vld [vmem:[#allocation7 + $0xe98] sm:$0xff] }
 0x23c   :  { %5542 = vmatprep.subr.bf16.mxu1 %v6628_v39  ;;  %v1176_v56 = vld [vmem:[#allocation7 + $0x3f0] sm:$0xff]  ;;  %v1177_v39 = vld [vmem:[#allocation7 + $0x3f8] sm:$0xff] }
 0x23d   :  { %5091 = vmatpush1.bf16.msra.mxu0 %v6625_v27  ;;  %v6651_v27 = vcombine.low %v1165_v28, %v1169_v40  ;;  %v6658_v35 = vcombine.high %v1172_v36, %v1176_v56  ;;  %v6659_v44 = vcombine.low %v1173_v24, %v1177_v39  ;;  %v6667_v28 = vcombine.low %v1181_v45, %v1185_v42  ;;  %v1196_v40 = vld [vmem:[#allocation7 + $0x490] sm:$0xff] }
 0x23e   :  { %5092 = vmatprep.subr.bf16.mxu0 %v6634_v30  ;;  %v1184_v30 = vld [vmem:[#allocation7 + $0x430] sm:$0xff] }
 0x23f   :  { %5543 = vmatpush1.bf16.msra.mxu1 %v6627_v32  ;;  %v6660_v32 = vcombine.high %v1173_v24, %v1177_v39  ;;  %v6665_v3 = vcombine.low %v1180_v48, %v1184_v30  ;;  %v1204_v24 = vld [vmem:[#allocation7 + $0x4d0] sm:$0xff] }
 0x240   :  { %4596 = vmatmul.mubr.bf16.gmra.mrb[88].mxu0 %v8855_v10  ;;  %5544 = vmatprep.subr.bf16.mxu1 %v6636_v26  ;;  %v6657_v26 = vcombine.low %v1172_v36, %v1176_v56  ;;  %v1201_v36 = vld [vmem:[#allocation7 + $0x4b8] sm:$0xff]  ;;  %v1208_v39 = vld [vmem:[#allocation7 + $0x4f0] sm:$0xff] }
 0x241   :  { %5048 = vmatmul.mubr.bf16.gmra.mrb[88].mxu1 %v8855_v10  ;;  %5093 = vmatpush1.bf16.msra.mxu0 %v6633_v19  ;;  %v6666_v19 = vcombine.high %v1180_v48, %v1184_v30  ;;  %v1205_v48 = vld [vmem:[#allocation7 + $0x4d8] sm:$0xff] }
 0x242   :  { %4605 = vmatprep.mubr.bf16.mxu0 %v8869_v51  ;;  %5057 = vmatprep.mubr.bf16.mxu1 %v8869_v51  ;;  %v1209_v30 = vld [vmem:[#allocation7 + $0x4f8] sm:$0xff]  ;;  %v9097_v51 = vld [vmem:[#allocation7 + $0xe50] sm:$0xff] }
 0x243   :  { %5545 = vmatpush1.bf16.msra.mxu1 %v6635_v59  ;;  %5094 = vmatprep.subr.bf16.mxu0 %v6642_v0  ;;  %v1192_v59 = vld [vmem:[#allocation7 + $0x470] sm:$0xff]  ;;  %v6668_v0 = vcombine.high %v1181_v45, %v1185_v42  ;;  %v9980_v42 = vld [vmem:[#allocation21_spill] sm:$0xff]  ;;  %v9111_v10 = vld [vmem:[#allocation7 + $0xe78] sm:$0xff] }
 0x244   :  { %5546 = vmatprep.subr.bf16.mxu1 %v6644_v1  ;;  %v1193_v1 = vld [vmem:[#allocation7 + $0x478] sm:$0xff]  ;;  %v1212_v45 = vld [vmem:[#allocation7 + $0x510] sm:$0xff] }
 0x245   :  { %5095 = vmatpush1.bf16.msra.mxu0 %v6641_v43  ;;  %v6674_v43 = vcombine.high %v1188_v13, %v1192_v59 }
 0x246   :  { %5096 = vmatprep.subr.bf16.mxu0 %v6650_v33  ;;  %v1200_v33 = vld [vmem:[#allocation7 + $0x4b0] sm:$0xff] }
 0x247   :  { %5547 = vmatpush1.bf16.msra.mxu1 %v6643_v41  ;;  %v6673_v41 = vcombine.low %v1188_v13, %v1192_v59  ;;  %v6682_v56 = vcombine.high %v1196_v40, %v1200_v33  ;;  %v1217_v13 = vld [vmem:[#allocation7 + $0x538] sm:$0xff] }
 0x248   :  { %4606 = vmatmul.mubr.bf16.gmra.mrb[92].mxu0 %v8867_v20  ;;  %5548 = vmatprep.subr.bf16.mxu1 %v6652_v11  ;;  %v1197_v11 = vld [vmem:[#allocation7 + $0x498] sm:$0xff] }
 0x249   :  { %5058 = vmatmul.mubr.bf16.gmra.mrb[92].mxu1 %v8867_v20  ;;  %5097 = vmatpush1.bf16.msra.mxu0 %v6649_v5  ;;  %v6675_v5 = vcombine.low %v1189_v38, %v1193_v1  ;;  %v9095_v20 = vld [vmem:[#allocation7 + $0xe38] sm:$0xff] }
 0x24a   :  { %5100 = vmatprep.mubr.bf16.mxu0 %v8025_v62  ;;  %5552 = vmatprep.mubr.bf16.mxu1 %v8025_v62  ;;  %v6676_v62 = vcombine.high %v1189_v38, %v1193_v1  ;;  %v1224_v38 = vld [vmem:[#allocation7 + $0x570] sm:$0xff] }
 0x24b   :  { %5549 = vmatpush1.bf16.msra.mxu1 %v6651_v27  ;;  %5098 = vmatprep.subr.bf16.mxu0 %v6658_v35  ;;  %v6684_v27 = vcombine.high %v1197_v11, %v1201_v36  ;;  %v6681_v35 = vcombine.low %v1196_v40, %v1200_v33  ;;  %v1225_v40 = vld [vmem:[#allocation7 + $0x578] sm:$0xff] }
 0x24c   :  { %5550 = vmatprep.subr.bf16.mxu1 %v6660_v32  ;;  %v6690_v32 = vcombine.high %v1204_v24, %v1208_v39 }
 0x24d   :  { %5099 = vmatpush1.bf16.msra.mxu0 %v6657_v26  ;;  %v6683_v26 = vcombine.low %v1197_v11, %v1201_v36  ;;  %v9981_v11 = vld [vmem:[#allocation20_spill] sm:$0xff] }
 0x24e   :  { %5181 = vmatprep.subr.bf16.mxu0 %v6666_v19  ;;  %v6689_v19 = vcombine.low %v1204_v24, %v1208_v39  ;;  %v1229_v24 = vld [vmem:[#allocation7 + $0x598] sm:$0xff] }
 0x24f   :  { %5551 = vmatpush1.bf16.msra.mxu1 %v6659_v44  ;;  %v1213_v44 = vld [vmem:[#allocation7 + $0x518] sm:$0xff] }
 0x250   :  { %5101 = vmatmul.mubr.bf16.vlgmr.msra.gmra.mrb[96].mxu0 %v8015_v58  ;;  %5633 = vmatprep.subr.bf16.mxu1 %v6668_v0  ;;  %v6691_v0 = vcombine.low %v1205_v48, %v1209_v30  ;;  %v6700_v1 = vcombine.high %v1213_v44, %v1217_v13  ;;  %v1233_v39 = vld [vmem:[#allocation7 + $0x5b8] sm:$0xff] }
 0x251   :  { %5182 = vmatpush1.bf16.msra.mxu0 %v6665_v3  ;;  %5110 = vmatprep.mubr.bf16.mxu0 %v8087_v53  ;;  %v1220_v3 = vld [vmem:[#allocation7 + $0x550] sm:$0xff] }
 0x252   :  { %5553 = vmatmul.mubr.bf16.vlgmr.msra.gmra.mrb[96].mxu1 %v8015_v58  ;;  %5183 = vmatprep.subr.bf16.mxu0 %v6674_v43  ;;  %v1216_v58 = vld [vmem:[#allocation7 + $0x530] sm:$0xff]  ;;  %v6706_v33 = vcombine.high %v1220_v3, %v1224_v38 }
 0x253   :  { %5562 = vmatprep.mubr.bf16.mxu1 %v8087_v53  ;;  %5634 = vmatpush1.bf16.msra.mxu1 %v6667_v28  ;;  %v6692_v53 = vcombine.high %v1205_v48, %v1209_v30  ;;  %v6698_v59 = vcombine.high %v1212_v45, %v1216_v58  ;;  %v6697_v43 = vcombine.low %v1212_v45, %v1216_v58  ;;  %v1221_v28 = vld [vmem:[#allocation7 + $0x558] sm:$0xff]  ;;  %v1236_v48 = vld [vmem:[#allocation7 + $0x5d0] sm:$0xff] }
 0x254   :  { %5635 = vmatprep.subr.bf16.mxu1 %v6676_v62  ;;  %v6699_v62 = vcombine.low %v1213_v44, %v1217_v13  ;;  %v6708_v36 = vcombine.high %v1221_v28, %v1225_v40  ;;  %v1240_v30 = vld [vmem:[#allocation7 + $0x5f0] sm:$0xff]  ;;  %v1237_v45 = vld [vmem:[#allocation7 + $0x5d8] sm:$0xff]  ;;  %v9983_v13 = vld [vmem:[#allocation24_spill] sm:$0xff] }
 0x255   :  { %5184 = vmatpush1.bf16.msra.mxu0 %v6673_v41  ;;  %v1228_v41 = vld [vmem:[#allocation7 + $0x590] sm:$0xff]  ;;  %v1241_v58 = vld [vmem:[#allocation7 + $0x5f8] sm:$0xff] }
 0x256   :  { %5185 = vmatprep.subr.bf16.mxu0 %v6682_v56  ;;  %v9982_v56 = vld [vmem:[#allocation25_spill] sm:$0xff]  ;;  %v1248_v44 = vld [vmem:[#allocation7 + $0x630] sm:$0xff] }
 0x257   :  { %5636 = vmatpush1.bf16.msra.mxu1 %v6675_v5  ;;  %v6705_v5 = vcombine.low %v1220_v3, %v1224_v38  ;;  %v6721_v3 = vcombine.low %v1236_v48, %v1240_v30  ;;  %v1245_v38 = vld [vmem:[#allocation7 + $0x618] sm:$0xff] }
 0x258   :  { %5111 = vmatmul.mubr.bf16.gmra.mrb[100].mxu0 %v8077_v34  ;;  %5637 = vmatprep.subr.bf16.mxu1 %v6684_v27 }
 0x259   :  { %5186 = vmatpush1.bf16.msra.mxu0 %v6681_v35  ;;  %5120 = vmatprep.mubr.bf16.mxu0 %v9980_v42  ;;  %v6707_v35 = vcombine.low %v1221_v28, %v1225_v40  ;;  %v6723_v28 = vcombine.low %v1237_v45, %v1241_v58  ;;  %v1252_v40 = vld [vmem:[#allocation7 + $0x650] sm:$0xff] }
 0x25a   :  { %5563 = vmatmul.mubr.bf16.gmra.mrb[100].mxu1 %v8077_v34  ;;  %5187 = vmatprep.subr.bf16.mxu0 %v6690_v32  ;;  %v1232_v34 = vld [vmem:[#allocation7 + $0x5b0] sm:$0xff]  ;;  %v6716_v32 = vcombine.high %v1229_v24, %v1233_v39 }
 0x25b   :  { %5572 = vmatprep.mubr.bf16.mxu1 %v9980_v42  ;;  %5638 = vmatpush1.bf16.msra.mxu1 %v6683_v26  ;;  %v6714_v27 = vcombine.high %v1228_v41, %v1232_v34  ;;  %v6713_v26 = vcombine.low %v1228_v41, %v1232_v34  ;;  %v6715_v42 = vcombine.low %v1229_v24, %v1233_v39  ;;  %v1253_v34 = vld [vmem:[#allocation7 + $0x658] sm:$0xff]  ;;  %v1264_v24 = vld [vmem:[#allocation7 + $0x6b0] sm:$0xff]  ;;  %v9985_v39 = vld [vmem:[#allocation28_spill] sm:$0xff] }
 0x25c   :  { %5639 = vmatprep.subr.bf16.mxu1 %v6692_v53  ;;  %v6722_v53 = vcombine.high %v1236_v48, %v1240_v30  ;;  %v1261_v30 = vld [vmem:[#allocation7 + $0x698] sm:$0xff] }
 0x25d   :  { %5188 = vmatpush1.bf16.msra.mxu0 %v6689_v19  ;;  %v1244_v19 = vld [vmem:[#allocation7 + $0x610] sm:$0xff] }
 0x25e   :  { %5189 = vmatprep.subr.bf16.mxu0 %v6698_v59  ;;  %v6724_v59 = vcombine.high %v1237_v45, %v1241_v58  ;;  %v6729_v41 = vcombine.low %v1244_v19, %v1248_v44  ;;  %v1268_v58 = vld [vmem:[#allocation7 + $0x6d0] sm:$0xff] }
 0x25f   :  { %5640 = vmatpush1.bf16.msra.mxu1 %v6691_v0  ;;  %v9984_v0 = vld [vmem:[#allocation29_spill] sm:$0xff] }
 0x260   :  { %5121 = vmatmul.mubr.bf16.gmra.mrb[104].mxu0 %v9981_v11  ;;  %5641 = vmatprep.subr.bf16.mxu1 %v6700_v1  ;;  %v1249_v1 = vld [vmem:[#allocation7 + $0x638] sm:$0xff] }
 0x261   :  { %5190 = vmatpush1.bf16.msra.mxu0 %v6697_v43  ;;  %5130 = vmatprep.mubr.bf16.mxu0 %v9982_v56  ;;  %v6730_v43 = vcombine.high %v1244_v19, %v1248_v44  ;;  %v1269_v44 = vld [vmem:[#allocation7 + $0x6d8] sm:$0xff] }
 0x262   :  { %5573 = vmatmul.mubr.bf16.gmra.mrb[104].mxu1 %v9981_v11  ;;  %5191 = vmatprep.subr.bf16.mxu0 %v6706_v33  ;;  %v1256_v33 = vld [vmem:[#allocation7 + $0x670] sm:$0xff]  ;;  %v1257_v11 = vld [vmem:[#allocation7 + $0x678] sm:$0xff] }
 0x263   :  { %5582 = vmatprep.mubr.bf16.mxu1 %v9982_v56  ;;  %5642 = vmatpush1.bf16.msra.mxu1 %v6699_v62  ;;  %v6732_v62 = vcombine.high %v1245_v38, %v1249_v1  ;;  %v6731_v56 = vcombine.low %v1245_v38, %v1249_v1  ;;  %v6737_v48 = vcombine.low %v1252_v40, %v1256_v33  ;;  %v1280_v38 = vld [vmem:[#allocation7 + $0x730] sm:$0xff]  ;;  %v9987_v1 = vld [vmem:[#allocation32_spill] sm:$0xff] }
 0x264   :  { %5643 = vmatprep.subr.bf16.mxu1 %v6708_v36  ;;  %v6738_v36 = vcombine.high %v1252_v40, %v1256_v33  ;;  %v6739_v45 = vcombine.low %v1253_v34, %v1257_v11  ;;  %v1277_v33 = vld [vmem:[#allocation7 + $0x718] sm:$0xff] }
 0x265   :  { %5192 = vmatpush1.bf16.msra.mxu0 %v6705_v5  ;;  %v1260_v5 = vld [vmem:[#allocation7 + $0x690] sm:$0xff] }
 0x266   :  { %5193 = vmatprep.subr.bf16.mxu0 %v6714_v27  ;;  %v6740_v27 = vcombine.high %v1253_v34, %v1257_v11  ;;  %v6745_v19 = vcombine.low %v1260_v5, %v1264_v24  ;;  %v1284_v11 = vld [vmem:[#allocation7 + $0x750] sm:$0xff] }
 0x267   :  { %5644 = vmatpush1.bf16.msra.mxu1 %v6707_v35  ;;  %v9986_v35 = vld [vmem:[#allocation33_spill] sm:$0xff] }
 0x268   :  { %5131 = vmatmul.mubr.bf16.gmra.mrb[108].mxu0 %v9983_v13  ;;  %5645 = vmatprep.subr.bf16.mxu1 %v6716_v32  ;;  %v1265_v32 = vld [vmem:[#allocation7 + $0x6b8] sm:$0xff] }
 0x269   :  { %5194 = vmatpush1.bf16.msra.mxu0 %v6713_v26  ;;  %5140 = vmatprep.mubr.bf16.mxu0 %v9984_v0  ;;  %v6746_v26 = vcombine.high %v1260_v5, %v1264_v24  ;;  %v1285_v24 = vld [vmem:[#allocation7 + $0x758] sm:$0xff] }
 0x26a   :  { %5583 = vmatmul.mubr.bf16.gmra.mrb[108].mxu1 %v9983_v13  ;;  %5195 = vmatprep.subr.bf16.mxu0 %v6722_v53  ;;  %v1272_v53 = vld [vmem:[#allocation7 + $0x6f0] sm:$0xff]  ;;  %v1273_v13 = vld [vmem:[#allocation7 + $0x6f8] sm:$0xff] }
 0x26b   :  { %5592 = vmatprep.mubr.bf16.mxu1 %v9984_v0  ;;  %5646 = vmatpush1.bf16.msra.mxu1 %v6715_v42  ;;  %v6748_v42 = vcombine.high %v1261_v30, %v1265_v32  ;;  %v6747_v0 = vcombine.low %v1261_v30, %v1265_v32  ;;  %v6753_v40 = vcombine.low %v1268_v58, %v1272_v53  ;;  %v1296_v30 = vld [vmem:[#allocation7 + $0x7b0] sm:$0xff]  ;;  %v9989_v32 = vld [vmem:[#allocation36_spill] sm:$0xff] }
 0x26c   :  { %5647 = vmatprep.subr.bf16.mxu1 %v6724_v59  ;;  %v6754_v59 = vcombine.high %v1268_v58, %v1272_v53  ;;  %v6755_v34 = vcombine.low %v1269_v44, %v1273_v13  ;;  %v1293_v53 = vld [vmem:[#allocation7 + $0x798] sm:$0xff] }
 0x26d   :  { %5196 = vmatpush1.bf16.msra.mxu0 %v6721_v3  ;;  %v1276_v3 = vld [vmem:[#allocation7 + $0x710] sm:$0xff] }
 0x26e   :  { %5197 = vmatprep.subr.bf16.mxu0 %v6730_v43  ;;  %v6756_v43 = vcombine.high %v1269_v44, %v1273_v13  ;;  %v6761_v5 = vcombine.low %v1276_v3, %v1280_v38  ;;  %v1300_v13 = vld [vmem:[#allocation7 + $0x7d0] sm:$0xff] }
 0x26f   :  { %5648 = vmatpush1.bf16.msra.mxu1 %v6723_v28  ;;  %v9988_v28 = vld [vmem:[#allocation37_spill] sm:$0xff] }
 0x270   :  { %5141 = vmatmul.mubr.bf16.gmra.mrb[112].mxu0 %v9985_v39  ;;  %5649 = vmatprep.subr.bf16.mxu1 %v6732_v62  ;;  %v1281_v62 = vld [vmem:[#allocation7 + $0x738] sm:$0xff] }
 0x271   :  { %5198 = vmatpush1.bf16.msra.mxu0 %v6729_v41  ;;  %5150 = vmatprep.mubr.bf16.mxu0 %v9986_v35  ;;  %v6762_v41 = vcombine.high %v1276_v3, %v1280_v38  ;;  %v1301_v38 = vld [vmem:[#allocation7 + $0x7d8] sm:$0xff] }
 0x272   :  { %5593 = vmatmul.mubr.bf16.gmra.mrb[112].mxu1 %v9985_v39  ;;  %5199 = vmatprep.subr.bf16.mxu0 %v6738_v36  ;;  %v1288_v36 = vld [vmem:[#allocation7 + $0x770] sm:$0xff]  ;;  %v1289_v39 = vld [vmem:[#allocation7 + $0x778] sm:$0xff] }
 0x273   :  { %5602 = vmatprep.mubr.bf16.mxu1 %v9986_v35  ;;  %5650 = vmatpush1.bf16.msra.mxu1 %v6731_v56  ;;  %v6764_v56 = vcombine.high %v1277_v33, %v1281_v62  ;;  %v6763_v35 = vcombine.low %v1277_v33, %v1281_v62  ;;  %v6769_v58 = vcombine.low %v1284_v11, %v1288_v36  ;;  %v1312_v33 = vld [vmem:[#allocation7 + $0x830] sm:$0xff] }
 0x274   :  { %5651 = vmatprep.subr.bf16.mxu1 %v6740_v27  ;;  %v6770_v27 = vcombine.high %v1284_v11, %v1288_v36  ;;  %v6771_v44 = vcombine.low %v1285_v24, %v1289_v39  ;;  %v9991_v62 = vld [vmem:[#allocation42_spill] sm:$0xff]  ;;  %v1309_v36 = vld [vmem:[#allocation7 + $0x818] sm:$0xff] }
 0x275   :  { %5200 = vmatpush1.bf16.msra.mxu0 %v6737_v48  ;;  %v1292_v48 = vld [vmem:[#allocation7 + $0x790] sm:$0xff] }
 0x276   :  { %5201 = vmatprep.subr.bf16.mxu0 %v6746_v26  ;;  %v6772_v26 = vcombine.high %v1285_v24, %v1289_v39  ;;  %v6777_v3 = vcombine.low %v1292_v48, %v1296_v30  ;;  %v1316_v39 = vld [vmem:[#allocation7 + $0x850] sm:$0xff] }
 0x277   :  { %5652 = vmatpush1.bf16.msra.mxu1 %v6739_v45  ;;  %v9990_v45 = vld [vmem:[#allocation43_spill] sm:$0xff] }
 0x278   :  { %5151 = vmatmul.mubr.bf16.gmra.mrb[116].mxu0 %v9987_v1  ;;  %5653 = vmatprep.subr.bf16.mxu1 %v6748_v42  ;;  %v1297_v42 = vld [vmem:[#allocation7 + $0x7b8] sm:$0xff] }
 0x279   :  { %5202 = vmatpush1.bf16.msra.mxu0 %v6745_v19  ;;  %5160 = vmatprep.mubr.bf16.mxu0 %v9988_v28  ;;  %v6778_v19 = vcombine.high %v1292_v48, %v1296_v30  ;;  %v1317_v30 = vld [vmem:[#allocation7 + $0x858] sm:$0xff] }
 0x27a   :  { %5603 = vmatmul.mubr.bf16.gmra.mrb[116].mxu1 %v9987_v1  ;;  %5203 = vmatprep.subr.bf16.mxu0 %v6754_v59  ;;  %v1304_v59 = vld [vmem:[#allocation7 + $0x7f0] sm:$0xff]  ;;  %v1305_v1 = vld [vmem:[#allocation7 + $0x7f8] sm:$0xff] }
 0x27b   :  { %5612 = vmatprep.mubr.bf16.mxu1 %v9988_v28  ;;  %5654 = vmatpush1.bf16.msra.mxu1 %v6747_v0  ;;  %v6780_v0 = vcombine.high %v1293_v53, %v1297_v42  ;;  %v6779_v28 = vcombine.low %v1293_v53, %v1297_v42  ;;  %v6785_v11 = vcombine.low %v1300_v13, %v1304_v59  ;;  %v1328_v53 = vld [vmem:[#allocation7 + $0x8b0] sm:$0xff] }
 0x27c   :  { %5655 = vmatprep.subr.bf16.mxu1 %v6756_v43  ;;  %v6786_v43 = vcombine.high %v1300_v13, %v1304_v59  ;;  %v6787_v24 = vcombine.low %v1301_v38, %v1305_v1  ;;  %v9993_v42 = vld [vmem:[#allocation18_spill] sm:$0xff]  ;;  %v1325_v59 = vld [vmem:[#allocation7 + $0x898] sm:$0xff] }
 0x27d   :  { %5204 = vmatpush1.bf16.msra.mxu0 %v6753_v40  ;;  %v1308_v40 = vld [vmem:[#allocation7 + $0x810] sm:$0xff] }
 0x27e   :  { %5205 = vmatprep.subr.bf16.mxu0 %v6762_v41  ;;  %v6788_v41 = vcombine.high %v1301_v38, %v1305_v1  ;;  %v6793_v48 = vcombine.low %v1308_v40, %v1312_v33  ;;  %v1332_v1 = vld [vmem:[#allocation7 + $0x8d0] sm:$0xff] }
 0x27f   :  { %5656 = vmatpush1.bf16.msra.mxu1 %v6755_v34  ;;  %v9992_v34 = vld [vmem:[#allocation19_spill] sm:$0xff] }
 0x280   :  { %5161 = vmatmul.mubr.bf16.gmra.mrb[120].mxu0 %v9989_v32  ;;  %5657 = vmatprep.subr.bf16.mxu1 %v6764_v56  ;;  %v1313_v56 = vld [vmem:[#allocation7 + $0x838] sm:$0xff] }
 0x281   :  { %5206 = vmatpush1.bf16.msra.mxu0 %v6761_v5  ;;  %5170 = vmatprep.mubr.bf16.mxu0 %v9990_v45  ;;  %v6794_v5 = vcombine.high %v1308_v40, %v1312_v33  ;;  %v1333_v33 = vld [vmem:[#allocation7 + $0x8d8] sm:$0xff] }
 0x282   :  { %5613 = vmatmul.mubr.bf16.gmra.mrb[120].mxu1 %v9989_v32  ;;  %5207 = vmatprep.subr.bf16.mxu0 %v6770_v27  ;;  %v1320_v27 = vld [vmem:[#allocation7 + $0x870] sm:$0xff]  ;;  %v1321_v32 = vld [vmem:[#allocation7 + $0x878] sm:$0xff] }
 0x283   :  { %5622 = vmatprep.mubr.bf16.mxu1 %v9990_v45  ;;  %5658 = vmatpush1.bf16.msra.mxu1 %v6763_v35  ;;  %v6796_v35 = vcombine.high %v1309_v36, %v1313_v56  ;;  %v6795_v45 = vcombine.low %v1309_v36, %v1313_v56  ;;  %v6801_v13 = vcombine.low %v1316_v39, %v1320_v27  ;;  %v1344_v36 = vld [vmem:[#allocation7 + $0x930] sm:$0xff] }
 0x284   :  { %5659 = vmatprep.subr.bf16.mxu1 %v6772_v26  ;;  %v6802_v26 = vcombine.high %v1316_v39, %v1320_v27  ;;  %v6803_v38 = vcombine.low %v1317_v30, %v1321_v32  ;;  %v9995_v56 = vld [vmem:[#allocation22_spill] sm:$0xff]  ;;  %v1341_v27 = vld [vmem:[#allocation7 + $0x918] sm:$0xff] }
 0x285   :  { %5208 = vmatpush1.bf16.msra.mxu0 %v6769_v58  ;;  %v1324_v58 = vld [vmem:[#allocation7 + $0x890] sm:$0xff] }
 0x286   :  { %5209 = vmatprep.subr.bf16.mxu0 %v6778_v19  ;;  %v6804_v19 = vcombine.high %v1317_v30, %v1321_v32  ;;  %v6809_v40 = vcombine.low %v1324_v58, %v1328_v53  ;;  %v1348_v32 = vld [vmem:[#allocation7 + $0x950] sm:$0xff] }
 0x287   :  { %5660 = vmatpush1.bf16.msra.mxu1 %v6771_v44  ;;  %v9994_v44 = vld [vmem:[#allocation23_spill] sm:$0xff] }
 0x288   :  { %5171 = vmatmul.mubr.bf16.gmra.mrb[124].mxu0 %v9991_v62  ;;  %5661 = vmatprep.subr.bf16.mxu1 %v6780_v0  ;;  %v1329_v0 = vld [vmem:[#allocation7 + $0x8b8] sm:$0xff] }
 0x289   :  { %5210 = vmatpush1.bf16.msra.mxu0 %v6777_v3  ;;  %5213 = vmatprep.mubr.bf16.mxu0 %v9992_v34  ;;  %v6810_v3 = vcombine.high %v1324_v58, %v1328_v53  ;;  %v1349_v53 = vld [vmem:[#allocation7 + $0x958] sm:$0xff] }
 0x28a   :  { %5623 = vmatmul.mubr.bf16.gmra.mrb[124].mxu1 %v9991_v62  ;;  %5211 = vmatprep.subr.bf16.mxu0 %v6786_v43  ;;  %v1336_v43 = vld [vmem:[#allocation7 + $0x8f0] sm:$0xff]  ;;  %v1337_v62 = vld [vmem:[#allocation7 + $0x8f8] sm:$0xff] }
 0x28b   :  { %5662 = vmatpush1.bf16.msra.mxu1 %v6779_v28  ;;  %5665 = vmatprep.mubr.bf16.mxu1 %v9992_v34  ;;  %v6812_v28 = vcombine.high %v1325_v59, %v1329_v0  ;;  %v6811_v34 = vcombine.low %v1325_v59, %v1329_v0  ;;  %v6817_v39 = vcombine.low %v1332_v1, %v1336_v43  ;;  %v1360_v59 = vld [vmem:[#allocation7 + $0x9b0] sm:$0xff] }
 0x28c   :  { %5663 = vmatprep.subr.bf16.mxu1 %v6788_v41  ;;  %v6818_v41 = vcombine.high %v1332_v1, %v1336_v43  ;;  %v6819_v30 = vcombine.low %v1333_v33, %v1337_v62  ;;  %v9997_v0 = vld [vmem:[#allocation26_spill] sm:$0xff]  ;;  %v1357_v43 = vld [vmem:[#allocation7 + $0x998] sm:$0xff] }
 0x28d   :  { %5212 = vmatpush1.bf16.msra.mxu0 %v6785_v11  ;;  %v1340_v11 = vld [vmem:[#allocation7 + $0x910] sm:$0xff] }
 0x28e   :  { %5294 = vmatprep.subr.bf16.mxu0 %v6794_v5  ;;  %v6820_v5 = vcombine.high %v1333_v33, %v1337_v62  ;;  %v6825_v58 = vcombine.low %v1340_v11, %v1344_v36  ;;  %v1364_v62 = vld [vmem:[#allocation7 + $0x9d0] sm:$0xff] }
 0x28f   :  { %5664 = vmatpush1.bf16.msra.mxu1 %v6787_v24  ;;  %v9996_v24 = vld [vmem:[#allocation27_spill] sm:$0xff] }
 0x290   :  { %5214 = vmatmul.mubr.bf16.vlgmr.msra.gmra.mrb[96].mxu0 %v9993_v42  ;;  %5746 = vmatprep.subr.bf16.mxu1 %v6796_v35  ;;  %v1345_v35 = vld [vmem:[#allocation7 + $0x938] sm:$0xff] }
 0x291   :  { %5295 = vmatpush1.bf16.msra.mxu0 %v6793_v48  ;;  %5223 = vmatprep.mubr.bf16.mxu0 %v9994_v44  ;;  %v6826_v48 = vcombine.high %v1340_v11, %v1344_v36  ;;  %v1365_v36 = vld [vmem:[#allocation7 + $0x9d8] sm:$0xff] }
 0x292   :  { %5666 = vmatmul.mubr.bf16.vlgmr.msra.gmra.mrb[96].mxu1 %v9993_v42  ;;  %5296 = vmatprep.subr.bf16.mxu0 %v6802_v26  ;;  %v1352_v26 = vld [vmem:[#allocation7 + $0x970] sm:$0xff]  ;;  %v1353_v42 = vld [vmem:[#allocation7 + $0x978] sm:$0xff] }
 0x293   :  { %5675 = vmatprep.mubr.bf16.mxu1 %v9994_v44  ;;  %5747 = vmatpush1.bf16.msra.mxu1 %v6795_v45  ;;  %v6828_v45 = vcombine.high %v1341_v27, %v1345_v35  ;;  %v6827_v44 = vcombine.low %v1341_v27, %v1345_v35  ;;  %v6833_v1 = vcombine.low %v1348_v32, %v1352_v26  ;;  %v1376_v27 = vld [vmem:[#allocation7 + $0xa30] sm:$0xff] }
 0x294   :  { %5748 = vmatprep.subr.bf16.mxu1 %v6804_v19  ;;  %v6834_v19 = vcombine.high %v1348_v32, %v1352_v26  ;;  %v6835_v33 = vcombine.low %v1349_v53, %v1353_v42  ;;  %v9999_v35 = vld [vmem:[#allocation30_spill] sm:$0xff]  ;;  %v1373_v26 = vld [vmem:[#allocation7 + $0xa18] sm:$0xff] }
 0x295   :  { %5297 = vmatpush1.bf16.msra.mxu0 %v6801_v13  ;;  %v1356_v13 = vld [vmem:[#allocation7 + $0x990] sm:$0xff] }
 0x296   :  { %5298 = vmatprep.subr.bf16.mxu0 %v6810_v3  ;;  %v6836_v3 = vcombine.high %v1349_v53, %v1353_v42  ;;  %v6841_v11 = vcombine.low %v1356_v13, %v1360_v59  ;;  %v1380_v42 = vld [vmem:[#allocation7 + $0xa50] sm:$0xff] }
 0x297   :  { %5749 = vmatpush1.bf16.msra.mxu1 %v6803_v38  ;;  %v9998_v38 = vld [vmem:[#allocation31_spill] sm:$0xff] }
 0x298   :  { %5224 = vmatmul.mubr.bf16.gmra.mrb[100].mxu0 %v9995_v56  ;;  %5750 = vmatprep.subr.bf16.mxu1 %v6812_v28  ;;  %v1361_v28 = vld [vmem:[#allocation7 + $0x9b8] sm:$0xff] }
 0x299   :  { %5299 = vmatpush1.bf16.msra.mxu0 %v6809_v40  ;;  %5233 = vmatprep.mubr.bf16.mxu0 %v9996_v24  ;;  %v6842_v40 = vcombine.high %v1356_v13, %v1360_v59  ;;  %v1381_v59 = vld [vmem:[#allocation7 + $0xa58] sm:$0xff] }
 0x29a   :  { %5676 = vmatmul.mubr.bf16.gmra.mrb[100].mxu1 %v9995_v56  ;;  %5300 = vmatprep.subr.bf16.mxu0 %v6818_v41  ;;  %v1368_v41 = vld [vmem:[#allocation7 + $0x9f0] sm:$0xff]  ;;  %v1369_v56 = vld [vmem:[#allocation7 + $0x9f8] sm:$0xff] }
 0x29b   :  { %5685 = vmatprep.mubr.bf16.mxu1 %v9996_v24  ;;  %5751 = vmatpush1.bf16.msra.mxu1 %v6811_v34  ;;  %v6844_v34 = vcombine.high %v1357_v43, %v1361_v28  ;;  %v6843_v24 = vcombine.low %v1357_v43, %v1361_v28  ;;  %v6849_v32 = vcombine.low %v1364_v62, %v1368_v41  ;;  %v1392_v43 = vld [vmem:[#allocation7 + $0xab0] sm:$0xff] }
 0x29c   :  { %5752 = vmatprep.subr.bf16.mxu1 %v6820_v5  ;;  %v6850_v5 = vcombine.high %v1364_v62, %v1368_v41  ;;  %v6851_v53 = vcombine.low %v1365_v36, %v1369_v56  ;;  %v10001_v28 = vld [vmem:[#allocation34_spill] sm:$0xff]  ;;  %v1389_v41 = vld [vmem:[#allocation7 + $0xa98] sm:$0xff] }
 0x29d   :  { %5301 = vmatpush1.bf16.msra.mxu0 %v6817_v39  ;;  %v1372_v39 = vld [vmem:[#allocation7 + $0xa10] sm:$0xff] }
 0x29e   :  { %5302 = vmatprep.subr.bf16.mxu0 %v6826_v48  ;;  %v6852_v48 = vcombine.high %v1365_v36, %v1369_v56  ;;  %v6857_v13 = vcombine.low %v1372_v39, %v1376_v27  ;;  %v1396_v56 = vld [vmem:[#allocation7 + $0xad0] sm:$0xff] }
 0x29f   :  { %5753 = vmatpush1.bf16.msra.mxu1 %v6819_v30  ;;  %v10000_v30 = vld [vmem:[#allocation35_spill] sm:$0xff] }
 0x2a0   :  { %5234 = vmatmul.mubr.bf16.gmra.mrb[104].mxu0 %v9997_v0  ;;  %5754 = vmatprep.subr.bf16.mxu1 %v6828_v45  ;;  %v1377_v45 = vld [vmem:[#allocation7 + $0xa38] sm:$0xff] }
 0x2a1   :  { %5303 = vmatpush1.bf16.msra.mxu0 %v6825_v58  ;;  %5243 = vmatprep.mubr.bf16.mxu0 %v9998_v38  ;;  %v6858_v58 = vcombine.high %v1372_v39, %v1376_v27  ;;  %v1397_v27 = vld [vmem:[#allocation7 + $0xad8] sm:$0xff] }
 0x2a2   :  { %5686 = vmatmul.mubr.bf16.gmra.mrb[104].mxu1 %v9997_v0  ;;  %5304 = vmatprep.subr.bf16.mxu0 %v6834_v19  ;;  %v1384_v19 = vld [vmem:[#allocation7 + $0xa70] sm:$0xff]  ;;  %v1385_v0 = vld [vmem:[#allocation7 + $0xa78] sm:$0xff] }
 0x2a3   :  { %5695 = vmatprep.mubr.bf16.mxu1 %v9998_v38  ;;  %5755 = vmatpush1.bf16.msra.mxu1 %v6827_v44  ;;  %v6860_v44 = vcombine.high %v1373_v26, %v1377_v45  ;;  %v6859_v38 = vcombine.low %v1373_v26, %v1377_v45  ;;  %v6865_v62 = vcombine.low %v1380_v42, %v1384_v19  ;;  %v1408_v26 = vld [vmem:[#allocation7 + $0xb30] sm:$0xff] }
 0x2a4   :  { %5756 = vmatprep.subr.bf16.mxu1 %v6836_v3  ;;  %v6866_v3 = vcombine.high %v1380_v42, %v1384_v19  ;;  %v6867_v36 = vcombine.low %v1381_v59, %v1385_v0  ;;  %v10003_v45 = vld [vmem:[#allocation38_spill] sm:$0xff]  ;;  %v1405_v19 = vld [vmem:[#allocation7 + $0xb18] sm:$0xff] }
 0x2a5   :  { %5305 = vmatpush1.bf16.msra.mxu0 %v6833_v1  ;;  %v1388_v1 = vld [vmem:[#allocation7 + $0xa90] sm:$0xff] }
 0x2a6   :  { %5306 = vmatprep.subr.bf16.mxu0 %v6842_v40  ;;  %v6868_v40 = vcombine.high %v1381_v59, %v1385_v0  ;;  %v6873_v39 = vcombine.low %v1388_v1, %v1392_v43  ;;  %v1412_v0 = vld [vmem:[#allocation7 + $0xb50] sm:$0xff] }
 0x2a7   :  { %5757 = vmatpush1.bf16.msra.mxu1 %v6835_v33  ;;  %v10002_v33 = vld [vmem:[#allocation40_spill] sm:$0xff] }
 0x2a8   :  { %5244 = vmatmul.mubr.bf16.gmra.mrb[108].mxu0 %v9999_v35  ;;  %5758 = vmatprep.subr.bf16.mxu1 %v6844_v34  ;;  %v1393_v34 = vld [vmem:[#allocation7 + $0xab8] sm:$0xff] }
 0x2a9   :  { %5307 = vmatpush1.bf16.msra.mxu0 %v6841_v11  ;;  %5253 = vmatprep.mubr.bf16.mxu0 %v10000_v30  ;;  %v6874_v11 = vcombine.high %v1388_v1, %v1392_v43  ;;  %v1413_v43 = vld [vmem:[#allocation7 + $0xb58] sm:$0xff] }
 0x2aa   :  { %5696 = vmatmul.mubr.bf16.gmra.mrb[108].mxu1 %v9999_v35  ;;  %5308 = vmatprep.subr.bf16.mxu0 %v6850_v5  ;;  %v1400_v5 = vld [vmem:[#allocation7 + $0xaf0] sm:$0xff]  ;;  %v1401_v35 = vld [vmem:[#allocation7 + $0xaf8] sm:$0xff] }
 0x2ab   :  { %5705 = vmatprep.mubr.bf16.mxu1 %v10000_v30  ;;  %5759 = vmatpush1.bf16.msra.mxu1 %v6843_v24  ;;  %v6876_v24 = vcombine.high %v1389_v41, %v1393_v34  ;;  %v6875_v30 = vcombine.low %v1389_v41, %v1393_v34  ;;  %v6881_v42 = vcombine.low %v1396_v56, %v1400_v5  ;;  %v1424_v41 = vld [vmem:[#allocation7 + $0xbb0] sm:$0xff]  ;;  %v10005_v34 = vld [vmem:[#allocation44_spill] sm:$0xff] }
 0x2ac   :  { %5760 = vmatprep.subr.bf16.mxu1 %v6852_v48  ;;  %v6882_v48 = vcombine.high %v1396_v56, %v1400_v5  ;;  %v6883_v59 = vcombine.low %v1397_v27, %v1401_v35  ;;  %v1421_v5 = vld [vmem:[#allocation7 + $0xb98] sm:$0xff] }
 0x2ad   :  { %5309 = vmatpush1.bf16.msra.mxu0 %v6849_v32  ;;  %v1404_v32 = vld [vmem:[#allocation7 + $0xb10] sm:$0xff] }
 0x2ae   :  { %5310 = vmatprep.subr.bf16.mxu0 %v6858_v58  ;;  %v6884_v58 = vcombine.high %v1397_v27, %v1401_v35  ;;  %v6889_v1 = vcombine.low %v1404_v32, %v1408_v26  ;;  %v1428_v35 = vld [vmem:[#allocation7 + $0xbd0] sm:$0xff] }
 0x2af   :  { %5761 = vmatpush1.bf16.msra.mxu1 %v6851_v53  ;;  %v10004_v53 = vld [vmem:[#allocation45_spill] sm:$0xff] }
 0x2b0   :  { %5254 = vmatmul.mubr.bf16.gmra.mrb[112].mxu0 %v10001_v28  ;;  %5762 = vmatprep.subr.bf16.mxu1 %v6860_v44  ;;  %v1409_v44 = vld [vmem:[#allocation7 + $0xb38] sm:$0xff] }
 0x2b1   :  { %5311 = vmatpush1.bf16.msra.mxu0 %v6857_v13  ;;  %5263 = vmatprep.mubr.bf16.mxu0 %v10002_v33  ;;  %v6890_v13 = vcombine.high %v1404_v32, %v1408_v26  ;;  %v1429_v26 = vld [vmem:[#allocation7 + $0xbd8] sm:$0xff] }
 0x2b2   :  { %5706 = vmatmul.mubr.bf16.gmra.mrb[112].mxu1 %v10001_v28  ;;  %5312 = vmatprep.subr.bf16.mxu0 %v6866_v3  ;;  %v1416_v3 = vld [vmem:[#allocation7 + $0xb70] sm:$0xff]  ;;  %v1417_v28 = vld [vmem:[#allocation7 + $0xb78] sm:$0xff] }
 0x2b3   :  { %5715 = vmatprep.mubr.bf16.mxu1 %v10002_v33  ;;  %5763 = vmatpush1.bf16.msra.mxu1 %v6859_v38  ;;  %v6892_v38 = vcombine.high %v1405_v19, %v1409_v44  ;;  %v6891_v33 = vcombine.low %v1405_v19, %v1409_v44  ;;  %v6897_v56 = vcombine.low %v1412_v0, %v1416_v3  ;;  %v1440_v19 = vld [vmem:[#allocation7 + $0xc30] sm:$0xff] }
 0x2b4   :  { %5764 = vmatprep.subr.bf16.mxu1 %v6868_v40  ;;  %v6898_v40 = vcombine.high %v1412_v0, %v1416_v3  ;;  %v6899_v27 = vcombine.low %v1413_v43, %v1417_v28  ;;  %v1441_v0 = vld [vmem:[#allocation7 + $0xc38] sm:$0xff] }
 0x2b5   :  { %5313 = vmatpush1.bf16.msra.mxu0 %v6865_v62  ;;  %v1420_v62 = vld [vmem:[#allocation7 + $0xb90] sm:$0xff] }
 0x2b6   :  { %5314 = vmatprep.subr.bf16.mxu0 %v6874_v11  ;;  %v6900_v11 = vcombine.high %v1413_v43, %v1417_v28  ;;  %v6905_v32 = vcombine.low %v1420_v62, %v1424_v41  ;;  %v1448_v43 = vld [vmem:[#allocation7 + $0xc70] sm:$0xff] }
 0x2b7   :  { %5765 = vmatpush1.bf16.msra.mxu1 %v6867_v36  ;;  %v10006_v36 = vld [vmem:[#allocation48_spill] sm:$0xff] }
 0x2b8   :  { %5264 = vmatmul.mubr.bf16.gmra.mrb[116].mxu0 %v10003_v45  ;;  %5766 = vmatprep.subr.bf16.mxu1 %v6876_v24  ;;  %v1425_v24 = vld [vmem:[#allocation7 + $0xbb8] sm:$0xff] }
 0x2b9   :  { %5315 = vmatpush1.bf16.msra.mxu0 %v6873_v39  ;;  %5273 = vmatprep.mubr.bf16.mxu0 %v10004_v53  ;;  %v6906_v39 = vcombine.high %v1420_v62, %v1424_v41  ;;  %v1449_v62 = vld [vmem:[#allocation7 + $0xc78] sm:$0xff] }
 0x2ba   :  { %5716 = vmatmul.mubr.bf16.gmra.mrb[116].mxu1 %v10003_v45  ;;  %5316 = vmatprep.subr.bf16.mxu0 %v6882_v48  ;;  %v1432_v48 = vld [vmem:[#allocation7 + $0xbf0] sm:$0xff]  ;;  %v1433_v45 = vld [vmem:[#allocation7 + $0xbf8] sm:$0xff] }
 0x2bb   :  { %5725 = vmatprep.mubr.bf16.mxu1 %v10004_v53  ;;  %5767 = vmatpush1.bf16.msra.mxu1 %v6875_v30  ;;  %v6908_v30 = vcombine.high %v1421_v5, %v1425_v24  ;;  %v6907_v53 = vcombine.low %v1421_v5, %v1425_v24  ;;  %v6916_v44 = vcombine.high %v1429_v26, %v1433_v45  ;;  %v1457_v5 = vld [vmem:[#allocation7 + $0xcb8] sm:$0xff] }
 0x2bc   :  { %5768 = vmatprep.subr.bf16.mxu1 %v6884_v58  ;;  %v6914_v58 = vcombine.high %v1428_v35, %v1432_v48 }
 0x2bd   :  { %5317 = vmatpush1.bf16.msra.mxu0 %v6881_v42  ;;  %v1436_v42 = vld [vmem:[#allocation7 + $0xc10] sm:$0xff] }
 0x2be   :  { %5318 = vmatprep.subr.bf16.mxu0 %v6890_v13  ;;  %v6913_v13 = vcombine.low %v1428_v35, %v1432_v48  ;;  %v6922_v3 = vcombine.high %v1436_v42, %v1440_v19  ;;  %v1464_v35 = vld [vmem:[#allocation7 + $0xcf0] sm:$0xff] }
 0x2bf   :  { %5769 = vmatpush1.bf16.msra.mxu1 %v6883_v59  ;;  %v1437_v59 = vld [vmem:[#allocation7 + $0xc18] sm:$0xff] }
 0x2c0   :  { %5274 = vmatmul.mubr.bf16.gmra.mrb[120].mxu0 %v10005_v34  ;;  %5770 = vmatprep.subr.bf16.mxu1 %v6892_v38  ;;  %v6915_v38 = vcombine.low %v1429_v26, %v1433_v45  ;;  %v6924_v28 = vcombine.high %v1437_v59, %v1441_v0  ;;  %v9005_v26 = vld [vmem:[#allocation7 + $0xcf8] sm:$0xff]  ;;  %v9007_v45 = vld [vmem:[#allocation7 + $0xd10] sm:$0xff] }
 0x2c1   :  { %5319 = vmatpush1.bf16.msra.mxu0 %v6889_v1  ;;  %5283 = vmatprep.mubr.bf16.mxu0 %v10006_v36  ;;  %v1444_v1 = vld [vmem:[#allocation7 + $0xc50] sm:$0xff] }
 0x2c2   :  { %5726 = vmatmul.mubr.bf16.gmra.mrb[120].mxu1 %v10005_v34  ;;  %5320 = vmatprep.subr.bf16.mxu0 %v6898_v40  ;;  %v6921_v40 = vcombine.low %v1436_v42, %v1440_v19  ;;  %v6930_v41 = vcombine.high %v1444_v1, %v1448_v43  ;;  %v6923_v34 = vcombine.low %v1437_v59, %v1441_v0  ;;  %v1562_v19 = vld [vmem:[#allocation8] sm:$0xff]  ;;  %v9020_v0 = vld [vmem:[#allocation7 + $0xd50] sm:$0xff] }
 0x2c3   :  { %5735 = vmatprep.mubr.bf16.mxu1 %v10006_v36  ;;  %5771 = vmatpush1.bf16.msra.mxu1 %v6891_v33  ;;  %v1445_v33 = vld [vmem:[#allocation7 + $0xc58] sm:$0xff] }
 0x2c4   :  { %5772 = vmatprep.subr.bf16.mxu1 %v6900_v11  ;;  %v1452_v11 = vld [vmem:[#allocation7 + $0xc90] sm:$0xff]  ;;  %v6932_v36 = vcombine.high %v1445_v33, %v1449_v62 }
 0x2c5   :  { %5321 = vmatpush1.bf16.msra.mxu0 %v6897_v56  ;;  %v1453_v56 = vld [vmem:[#allocation7 + $0xc98] sm:$0xff] }
 0x2c6   :  { %5322 = vmatprep.subr.bf16.mxu0 %v6906_v39  ;;  %v6931_v39 = vcombine.low %v1445_v33, %v1449_v62  ;;  %v6940_v48 = vcombine.high %v1453_v56, %v1457_v5  ;;  %v6939_v42 = vcombine.low %v1453_v56, %v1457_v5  ;;  %v9033_v33 = vld [vmem:[#allocation7 + $0xd78] sm:$0xff]  ;;  %v9035_v62 = vld [vmem:[#allocation7 + $0xd90] sm:$0xff] }
 0x2c7   :  { %5773 = vmatpush1.bf16.msra.mxu1 %v6899_v27  ;;  %v1460_v27 = vld [vmem:[#allocation7 + $0xcd0] sm:$0xff]  ;;  %v9048_v56 = vld [vmem:[#allocation7 + $0xd98] sm:$0xff] }
 0x2c8   :  { %5284 = vmatmul.mubr.bf16.gmra.mrb[124].mxu0 %v8563_v2  ;;  %5774 = vmatprep.subr.bf16.mxu1 %v6908_v30  ;;  %v9050_v5 = vld [vmem:[#allocation7 + $0xdb8] sm:$0xff] }
 0x2c9   :  { %5323 = vmatpush1.bf16.msra.mxu0 %v6905_v32  ;;  %5326 = vmatprep.mubr.bf16.mxu0 %v8565_v31  ;;  %v9003_v32 = vld [vmem:[#allocation7 + $0xcd8] sm:$0xff] }
 0x2ca   :  { %5736 = vmatmul.mubr.bf16.gmra.mrb[124].mxu1 %v8563_v2  ;;  %5324 = vmatprep.subr.bf16.mxu0 %v6914_v58  ;;  %v1456_v2 = vld [vmem:[#allocation7 + $0xcb0] sm:$0xff]  ;;  %v6948_v59 = vcombine.high %v9003_v32, %v9005_v26 }
 0x2cb   :  { %5775 = vmatpush1.bf16.msra.mxu1 %v6907_v53  ;;  %5778 = vmatprep.mubr.bf16.mxu1 %v8565_v31  ;;  %v6929_v31 = vcombine.low %v1444_v1, %v1448_v43  ;;  %v6938_v24 = vcombine.high %v1452_v11, %v1456_v2  ;;  %v6937_v30 = vcombine.low %v1452_v11, %v1456_v2  ;;  %v9009_v58 = vld [vmem:[#allocation7 + $0xd30] sm:$0xff]  ;;  %v9011_v53 = vld [vmem:[#allocation7 + $0xd18] sm:$0xff]  ;;  %v10008_v2 = vld [vmem:[#allocation16_spill] sm:$0xff] }
 0x2cc   :  { %5776 = vmatprep.subr.bf16.mxu1 %v6916_v44  ;;  %v6945_v44 = vcombine.low %v1460_v27, %v1464_v35  ;;  %v6953_v1 = vcombine.low %v9007_v45, %v9009_v58  ;;  %v6954_v43 = vcombine.high %v9007_v45, %v9009_v58  ;;  %v9076_v58 = vld [vmem:[#allocation7 + $0xdf8] sm:$0xff] }
 0x2cd   :  { %5325 = vmatpush1.bf16.msra.mxu0 %v6913_v13  ;;  %v6947_v13 = vcombine.low %v9003_v32, %v9005_v26  ;;  %v9109_v45 = vld [vmem:[#allocation7 + $0xe58] sm:$0xff] }
 0x2ce   :  { %5407 = vmatprep.subr.bf16.mxu0 %v6922_v3  ;;  %v9022_v3 = vld [vmem:[#allocation7 + $0xd70] sm:$0xff] }
 0x2cf   :  { %5777 = vmatpush1.bf16.msra.mxu1 %v6915_v38  ;;  %v9024_v38 = vld [vmem:[#allocation7 + $0xd58] sm:$0xff] }
 0x2d0   :  { %5327 = vmatmul.mubr.bf16.vlgmr.msra.gmra.mrb[96].mxu0 %v8548_v61  ;;  %5859 = vmatprep.subr.bf16.mxu1 %v6924_v28  ;;  %v9093_v28 = vld [vmem:[#allocation7 + $0xe18] sm:$0xff] }
 0x2d1   :  { %5408 = vmatpush1.bf16.msra.mxu0 %v6921_v40  ;;  %5336 = vmatprep.mubr.bf16.mxu0 %v8607_v4  ;;  %v6100_v40 = vld [vmem:[#allocation10] sm:$0xff] }
 0x2d2   :  { %5779 = vmatmul.mubr.bf16.vlgmr.msra.gmra.mrb[96].mxu1 %v8548_v61  ;;  %5409 = vmatprep.subr.bf16.mxu0 %v6930_v41  ;;  %v6946_v61 = vcombine.high %v1460_v27, %v1464_v35  ;;  %v9060_v35 = vld [vmem:[#allocation7 + $0xdd0] sm:$0xff] }
 0x2d3   :  { %5788 = vmatprep.mubr.bf16.mxu1 %v8607_v4  ;;  %5860 = vmatpush1.bf16.msra.mxu1 %v6923_v34  ;;  %v9013_v4 = vld [vmem:[#allocation7 + $0xd38] sm:$0xff]  ;;  %v10007_v34 = vld [vmem:[#allocation14_spill] sm:$0xff] }
 0x2d4   :  { %5861 = vmatprep.subr.bf16.mxu1 %v6932_v36  ;;  %v6956_v41 = vcombine.high %v9011_v53, %v9013_v4  ;;  %v9041_v11 = vrot.slane %v1562_v19, %v10007_v34  ;;  %v9044_v36 = vrot.slane %v1562_v19, %v10008_v2  ;;  %v9067_v32 = vrot.slane %v6100_v40, %v10007_v34 }
 0x2d5   :  { %5410 = vmatpush1.bf16.msra.mxu0 %v6929_v31  ;;  %v9046_v31 = vld [vmem:[#allocation7 + $0xdb0] sm:$0xff] }
 0x2d6   :  { %5411 = vmatprep.subr.bf16.mxu0 %v6938_v24  ;;  %v6962_v24 = vcombine.high %v9020_v0, %v9022_v3 }
 0x2d7   :  { %5862 = vmatpush1.bf16.msra.mxu1 %v6931_v39  ;;  %v10009_v39 = vld [vmem:[#allocation15_spill] sm:$0xff] }
 0x2d8   :  { %5337 = vmatmul.mubr.bf16.gmra.mrb[100].mxu0 %v8599_v12  ;;  %5863 = vmatprep.subr.bf16.mxu1 %v6940_v48  ;;  %v9058_v27 = vrot.slane %v1562_v19, %v10009_v39  ;;  %v9062_v48 = vld [vmem:[#allocation7 + $0xdf0] sm:$0xff]  ;;  %v9086_v34 = vrot.slane %v6100_v40, %v10009_v39 }
 0x2d9   :  { %5412 = vmatpush1.bf16.msra.mxu0 %v6937_v30  ;;  %5346 = vmatprep.mubr.bf16.mxu0 %v8651_v16  ;;  %v9064_v30 = vld [vmem:[#allocation7 + $0xdd8] sm:$0xff]  ;;  %v9121_v39 = vld [vmem:[#allocation7 + $0xe90] sm:$0xff] }
 0x2da   :  { %5789 = vmatmul.mubr.bf16.gmra.mrb[100].mxu1 %v8599_v12  ;;  %5413 = vmatprep.subr.bf16.mxu0 %v6946_v61  ;;  %v6964_v61 = vcombine.high %v9024_v38, %v9033_v33  ;;  %v9080_v12 = vld [vmem:[#allocation7 + $0xe30] sm:$0xff] }
 0x2db   :  { %5798 = vmatprep.mubr.bf16.mxu1 %v8651_v16  ;;  %5864 = vmatpush1.bf16.msra.mxu1 %v6939_v42  ;;  %v10010_v16 = vld [vmem:[#allocation17_spill] sm:$0xff]  ;;  %v9078_v42 = vld [vmem:[#allocation7 + $0xe10] sm:$0xff] }
 0x2dc   :  { %5865 = vmatprep.subr.bf16.mxu1 %v6948_v59  ;;  %v9070_v26 = vrot.slane %v1562_v19, %v10010_v16  ;;  %v9083_v59 = vrot.slane %v6100_v40, %v10008_v2  ;;  %v9089_v19 = vrot.slane %v6100_v40, %v10010_v16  ;;  %v9107_v16 = vld [vmem:[#allocation7 + $0xe70] sm:$0xff]  ;;  %v9134_v2 = vld [vmem:[#allocation7 + $0xeb8] sm:$0xff] }
 0x2dd   :  { %5414 = vmatpush1.bf16.msra.mxu0 %v6945_v44  ;;  %v9136_v40 = vld [vmem:[#allocation7 + $0xed0] sm:$0xff]  ;;  %v10011_v44 = vcombine.low %v9011_v53, %v9013_v4 }
 0x2de   :  { %5415 = vmatprep.subr.bf16.mxu0 %v6954_v43  ;;  %v9149_v43 = vld [vmem:[#allocation7 + $0xef8] sm:$0xff]  ;;  %v9204_v53 = vld [vmem:[#allocation7 + $0xf50] sm:$0xff] }
 0x2df   :  { %5866 = vmatpush1.bf16.msra.mxu1 %v6947_v13  ;;  %v9158_v13 = vld [vmem:[#allocation7 + $0xf10] sm:$0xff] }
 0x2e0   :  { %5347 = vmatmul.mubr.bf16.gmra.mrb[104].mxu0 %v8643_v63  ;;  %5867 = vmatprep.subr.bf16.mxu1 %v6956_v41 }
 0x2e1   :  { %5416 = vmatpush1.bf16.msra.mxu0 %v6953_v1  ;;  %5356 = vmatprep.mubr.bf16.mxu0 %v8695_v55  ;;  %v9172_v1 = vld [vmem:[#allocation7 + $0xf18] sm:$0xff] }
 0x2e2   :  { %5799 = vmatmul.mubr.bf16.gmra.mrb[104].mxu1 %v8643_v63  ;;  %5417 = vmatprep.subr.bf16.mxu0 %v6962_v24 }
 0x2e3   :  { %5808 = vmatprep.mubr.bf16.mxu1 %v8695_v55  ;;  %5868 = vmatpush1.bf16.msra.mxu1 %v10011_v44  ;;  %v4537_v63 = vpop.f32.mrb[64].mxu0 }
 0x2e4   :  { %v7046_v55 = vadd.f32 %v4537_v63, %v9041_v11  ;;  %v4989_v37 = vpop.f32.mrb[64].mxu1  ;;  %v4539_v6 = vpop.f32.mrb[65].mxu0  ;;  %5869 = vmatprep.subr.bf16.mxu1 %v6964_v61  ;;  %v10012_v63 = vcombine.low %v9020_v0, %v9022_v3 }
 0x2e5   :  { %v7078_v41 = vadd.f32 %v4989_v37, %v9044_v36  ;;  %v7047_v24 = vadd.f32 %v4539_v6, %v9058_v27  ;;  %v4991_v49 = vpop.f32.mrb[65].mxu1  ;;  %v4541_v60 = vpop.f32.mrb[66].mxu0  ;;  %v10013_v6 = vcombine.high %v9035_v62, %v9046_v31 }
 0x2e6   :  { %5418 = vmatpush1.bf16.msra.mxu0 %v10012_v63  ;;  %v5972_v4 = vmax.f32 %v7046_v55, 0.0  ;;  %v7079_v23 = vadd.f32 %v4991_v49, %v9070_v26  ;;  %v7048_v44 = vadd.f32 %v4541_v60, %v9041_v11  ;;  %v4993_v37 = vpop.f32.mrb[66].mxu1  ;;  %v4543_v18 = vpop.f32.mrb[67].mxu0  ;;  %v10014_v55 = vcombine.low %v9024_v38, %v9033_v33 }
 0x2e7   :  { %5419 = vmatprep.subr.bf16.mxu0 %v10013_v6  ;;  %v5974_v3 = vmax.f32 %v7078_v41, 0.0  ;;  %v5973_v63 = vmax.f32 %v7047_v24, 0.0  ;;  %v7080_v61 = vadd.f32 %v4993_v37, %v9044_v36  ;;  %v7049_v49 = vadd.f32 %v4543_v18, %v9058_v27  ;;  %v4995_v60 = vpop.f32.mrb[67].mxu1 }
 0x2e8   :  { %5870 = vmatpush1.bf16.msra.mxu1 %v10014_v55  ;;  %v6142_v6 = vmul.f32 %v9067_v32, %v5972_v4  ;;  %v5975_v15 = vmax.f32 %v7079_v23, 0.0  ;;  %v5980_v14 = vmax.f32 %v7048_v44, 0.0  ;;  %v7081_v41 = vadd.f32 %v4995_v60, %v9070_v26  ;;  %5357 = vmatmul.mubr.bf16.gmra.mrb[108].mxu0 %v8687_v54  ;;  %v9221_v4 = vld [vmem:[#allocation7 + $0xf58] sm:$0xff] }
 0x2e9   :  { %v10015_v24 = vcombine.high %v9048_v56, %v9050_v5  ;;  %v6143_v38 = vmul.f32 %v9086_v34, %v5973_v63  ;;  %v5982_v18 = vmax.f32 %v7080_v61, 0.0  ;;  %v5981_v33 = vmax.f32 %v7049_v49, 0.0  ;;  %5366 = vmatprep.mubr.bf16.mxu0 %v8739_v21  ;;  %v9223_v44 = vld [vmem:[#allocation7 + $0xf78] sm:$0xff] }
 0x2ea   :  { %v10016_v37 = vcombine.low %v9035_v62, %v9046_v31  ;;  %v7020_v23 = vcombine.high %v9172_v1, %v9174_v7  ;;  %v6150_v55 = vmul.f32 %v9067_v32, %v5980_v14  ;;  %v5983_v60 = vmax.f32 %v7081_v41, 0.0  ;;  %5809 = vmatmul.mubr.bf16.gmra.mrb[108].mxu1 %v8687_v54 }
 0x2eb   :  { %5871 = vmatprep.subr.bf16.mxu1 %v10015_v24  ;;  %v10017_v61 = vcombine.high %v9060_v35, %v9062_v48  ;;  %v6144_v63 = vmul.f32 %v9083_v59, %v5974_v3  ;;  %v6270_v49 = vadd.f32 %v6143_v38, %v6142_v6  ;;  %v6151_v24 = vmul.f32 %v9086_v34, %v5981_v33  ;;  %v4547_v14 = vpop.f32.mrb[68].mxu0 }
 0x2ec   :  { %5420 = vmatpush1.bf16.msra.mxu0 %v10016_v37  ;;  %5818 = vmatprep.mubr.bf16.mxu1 %v8739_v21  ;;  %v10018_v54 = vcombine.low %v9048_v56, %v9050_v5  ;;  %v6145_v41 = vmul.f32 %v9089_v19, %v5975_v15  ;;  %v6152_v37 = vmul.f32 %v9083_v59, %v5982_v18  ;;  %v4999_v62 = vpop.f32.mrb[68].mxu1  ;;  %v4549_v31 = vpop.f32.mrb[69].mxu0 }
 0x2ed   :  { %5421 = vmatprep.subr.bf16.mxu0 %v10017_v61  ;;  %v7050_v61 = vadd.f32 %v4547_v14, %v9041_v11  ;;  %v10019_v3 = vcombine.high %v9064_v30, %v9076_v58  ;;  %v6271_v6 = vadd.f32 %v6270_v49, %v6144_v63  ;;  %v6279_v38 = vadd.f32 %v6151_v24, %v6150_v55  ;;  %v5001_v15 = vpop.f32.mrb[69].mxu1  ;;  %v4551_v33 = vpop.f32.mrb[70].mxu0  ;;  %v9264_v24 = vld [vmem:[#allocation7 + $0xf90] sm:$0xff] }
 0x2ee   :  { %5872 = vmatpush1.bf16.msra.mxu1 %v10018_v54  ;;  %v7082_v56 = vadd.f32 %v4999_v62, %v9044_v36  ;;  %v7051_v5 = vadd.f32 %v4549_v31, %v9058_v27  ;;  %v10020_v18 = vcombine.low %v9060_v35, %v9062_v48  ;;  %v6153_v54 = vmul.f32 %v9089_v19, %v5983_v60  ;;  %v5003_v21 = vpop.f32.mrb[70].mxu1  ;;  %v4553_v63 = vpop.f32.mrb[71].mxu0 }
 0x2ef   :  { %5873 = vmatprep.subr.bf16.mxu1 %v10019_v3  ;;  %v5988_v14 = vmax.f32 %v7050_v61, 0.0  ;;  %v7083_v3 = vadd.f32 %v5001_v15, %v9070_v26  ;;  %v7052_v0 = vadd.f32 %v4551_v33, %v9041_v11  ;;  %v10021_v55 = vcombine.high %v9078_v42, %v9080_v12  ;;  %v5005_v60 = vpop.f32.mrb[71].mxu1  ;;  %v9266_v61 = vld [vmem:[#allocation7 + $0xfb0] sm:$0xff] }
 0x2f0   :  { %5422 = vmatpush1.bf16.msra.mxu0 %v10020_v18  ;;  %v9259_v62 = vadd.f32 %v6271_v6, %v6145_v41  ;;  %v6280_v31 = vadd.f32 %v6279_v38, %v6152_v37  ;;  %v5990_v49 = vmax.f32 %v7082_v56, 0.0  ;;  %v5989_v35 = vmax.f32 %v7051_v5, 0.0  ;;  %v9285_v38 = vld [vmem:[#allocation7 + $0xfb8] sm:$0xff] }
 0x2f1   :  { %5423 = vmatprep.subr.bf16.mxu0 %v10021_v55  ;;  %v10022_v48 = vcombine.low %v9064_v30, %v9076_v58  ;;  %v6158_v15 = vmul.f32 %v9067_v32, %v5988_v14  ;;  %v5991_v18 = vmax.f32 %v7083_v3, 0.0  ;;  %v5996_v33 = vmax.f32 %v7052_v0, 0.0  ;;  %5367 = vmatmul.mubr.bf16.gmra.mrb[112].mxu0 %v8731_v17 }
 0x2f2   :  { %v7084_v55 = vadd.f32 %v5003_v21, %v9044_v36  ;;  %v10023_v41 = vcombine.high %v9093_v28, %v9095_v20  ;;  %v9274_v37 = vadd.f32 %v6280_v31, %v6153_v54  ;;  %v6159_v30 = vmul.f32 %v9086_v34, %v5989_v35  ;;  %v9283_v21 = vld [vmem:[#allocation7 + $0xf98] sm:$0xff]  ;;  %5819 = vmatmul.mubr.bf16.gmra.mrb[112].mxu1 %v8731_v17 }
 0x2f3   :  { %5874 = vmatpush1.bf16.msra.mxu1 %v10022_v48  ;;  %v7053_v58 = vadd.f32 %v4553_v63, %v9058_v27  ;;  %v10024_v6 = vcombine.low %v9078_v42, %v9080_v12  ;;  %v7028_v0 = vcombine.high %v9221_v4, %v9223_v44  ;;  %v7085_v5 = vadd.f32 %v5005_v60, %v9070_v26  ;;  %v4557_v17 = vpop.f32.mrb[72].mxu0 }
 0x2f4   :  { %5875 = vmatprep.subr.bf16.mxu1 %v10023_v41  ;;  %v5998_v56 = vmax.f32 %v7084_v55, 0.0  ;;  %5376 = vmatprep.mubr.bf16.mxu0 %v8783_v29  ;;  %v7033_v54 = vcombine.low %v9264_v24, %v9266_v61  ;;  %v7034_v12 = vcombine.high %v9264_v24, %v9266_v61  ;;  %v6160_v42 = vmul.f32 %v9083_v59, %v5990_v49  ;;  %v5009_v55 = vpop.f32.mrb[72].mxu1 }
 0x2f5   :  { %5424 = vmatpush1.bf16.msra.mxu0 %v10024_v6  ;;  %v6288_v14 = vadd.f32 %v6159_v30, %v6158_v15  ;;  %v6166_v3 = vmul.f32 %v9067_v32, %v5996_v33  ;;  %v5997_v63 = vmax.f32 %v7053_v58, 0.0  ;;  %5828 = vmatprep.mubr.bf16.mxu1 %v8783_v29  ;;  %v10025_v31 = vcombine.low %v9093_v28, %v9095_v20  ;;  %v4559_v15 = vpop.f32.mrb[73].mxu0  ;;  %v5011_v30 = vpop.f32.mrb[73].mxu1 }
 0x2f6   :  { %v6161_v35 = vmul.f32 %v9089_v19, %v5991_v18  ;;  %v5999_v48 = vmax.f32 %v7085_v5, 0.0  ;;  %v7054_v60 = vadd.f32 %v4557_v17, %v9041_v11  ;;  %v10026_v49 = vcombine.high %v9097_v51, %v9107_v16  ;;  %v4561_v6 = vpop.f32.mrb[74].mxu0 }
 0x2f7   :  { %5876 = vmatpush1.bf16.msra.mxu1 %v10025_v31  ;;  %v10027_v33 = vcombine.high %v9109_v45, %v9111_v10  ;;  %v7035_v29 = vcombine.low %v9283_v21, %v9285_v38  ;;  %v6289_v20 = vadd.f32 %v6288_v14, %v6160_v42  ;;  %v6167_v28 = vmul.f32 %v9086_v34, %v5997_v63  ;;  %v5013_v42 = vpop.f32.mrb[74].mxu1  ;;  %v4563_v14 = vpop.f32.mrb[75].mxu0 }
 0x2f8   :  { %5425 = vmatprep.subr.bf16.mxu0 %v10026_v49  ;;  %v7086_v18 = vadd.f32 %v5009_v55, %v9044_v36  ;;  %v7055_v41 = vadd.f32 %v4559_v15, %v9058_v27  ;;  %v10028_v58 = vcombine.low %v9097_v51, %v9107_v16  ;;  %v6168_v5 = vmul.f32 %v9083_v59, %v5998_v56  ;;  %v5015_v56 = vpop.f32.mrb[75].mxu1 }
 0x2f9   :  { %5877 = vmatprep.subr.bf16.mxu1 %v10027_v33  ;;  %v6004_v31 = vmax.f32 %v7054_v60, 0.0  ;;  %v7087_v17 = vadd.f32 %v5011_v30, %v9070_v26  ;;  %v7056_v49 = vadd.f32 %v4561_v6, %v9041_v11  ;;  %v10029_v63 = vcombine.high %v9121_v39, %v9123_v9  ;;  %5377 = vmatmul.mubr.bf16.gmra.mrb[116].mxu0 %v8775_v25 }
 0x2fa   :  { %5426 = vmatpush1.bf16.msra.mxu0 %v10028_v58  ;;  %v9322_v55 = vadd.f32 %v6289_v20, %v6161_v35  ;;  %v6297_v15 = vadd.f32 %v6167_v28, %v6166_v3  ;;  %v6006_v33 = vmax.f32 %v7086_v18, 0.0  ;;  %v6005_v51 = vmax.f32 %v7055_v41, 0.0  ;;  %v9339_v18 = vld [vmem:[#allocation7 + $0xfd0] sm:$0xff]  ;;  %5829 = vmatmul.mubr.bf16.gmra.mrb[116].mxu1 %v8775_v25 }
 0x2fb   :  { %5427 = vmatprep.subr.bf16.mxu0 %v10029_v63  ;;  %v10030_v16 = vcombine.low %v9109_v45, %v9111_v10  ;;  %v6174_v60 = vmul.f32 %v9067_v32, %v6004_v31  ;;  %v6007_v30 = vmax.f32 %v7087_v17, 0.0  ;;  %v6012_v58 = vmax.f32 %v7056_v49, 0.0  ;;  %v9341_v41 = vld [vmem:[#allocation7 + $0xff0] sm:$0xff]  ;;  %5386 = vmatprep.mubr.bf16.mxu0 %v8827_v8  ;;  %v4567_v63 = vpop.f32.mrb[76].mxu0 }
 0x2fc   :  { %v7088_v6 = vadd.f32 %v5013_v42, %v9044_v36  ;;  %v10031_v35 = vcombine.high %v9125_v46, %v9134_v2  ;;  %v6169_v3 = vmul.f32 %v9089_v19, %v5999_v48  ;;  %v6298_v20 = vadd.f32 %v6297_v15, %v6168_v5  ;;  %5838 = vmatprep.mubr.bf16.mxu1 %v8827_v8 }
 0x2fd   :  { %5878 = vmatpush1.bf16.msra.mxu1 %v10030_v16  ;;  %v6175_v28 = vmul.f32 %v9086_v34, %v6005_v51  ;;  %v7057_v10 = vadd.f32 %v4563_v14, %v9058_v27  ;;  %v10032_v45 = vcombine.low %v9121_v39, %v9123_v9  ;;  %v6176_v31 = vmul.f32 %v9083_v59, %v6006_v33  ;;  %v5019_v51 = vpop.f32.mrb[76].mxu1 }
 0x2fe   :  { %5879 = vmatprep.subr.bf16.mxu1 %v10031_v35  ;;  %v6014_v17 = vmax.f32 %v7088_v6, 0.0  ;;  %v7089_v49 = vadd.f32 %v5015_v56, %v9070_v26  ;;  %v7036_v48 = vcombine.high %v9283_v21, %v9285_v38  ;;  %v9349_v5 = vadd.f32 %v6298_v20, %v6169_v3  ;;  %v4569_v56 = vpop.f32.mrb[77].mxu0  ;;  %v5021_v6 = vpop.f32.mrb[77].mxu1 }
 0x2ff   :  { %5428 = vmatpush1.bf16.msra.mxu0 %v10032_v45  ;;  %v6306_v9 = vadd.f32 %v6175_v28, %v6174_v60  ;;  %v6182_v39 = vmul.f32 %v9067_v32, %v6012_v58  ;;  %v6013_v42 = vmax.f32 %v7057_v10, 0.0  ;;  %v10033_v14 = vcombine.low %v9125_v46, %v9134_v2  ;;  %v4571_v3 = vpop.f32.mrb[78].mxu0 }
 0x300   :  { %v6177_v25 = vmul.f32 %v9089_v19, %v6007_v30  ;;  %v6015_v15 = vmax.f32 %v7089_v49, 0.0  ;;  %v7058_v33 = vadd.f32 %v4567_v63, %v9041_v11  ;;  %v10034_v16 = vcombine.high %v9136_v40, %v9138_v22  ;;  %v4573_v49 = vpop.f32.mrb[79].mxu0 }
 0x301   :  { %5880 = vmatpush1.bf16.msra.mxu1 %v10033_v14  ;;  %v10035_v60 = vcombine.high %v9147_v50, %v9149_v43  ;;  %v7042_v8 = vcombine.high %v9339_v18, %v9341_v41  ;;  %v6307_v46 = vadd.f32 %v6306_v9, %v6176_v31  ;;  %v6183_v2 = vmul.f32 %v9086_v34, %v6013_v42  ;;  %v5023_v31 = vpop.f32.mrb[78].mxu1 }
 0x302   :  { %5429 = vmatprep.subr.bf16.mxu0 %v10034_v16  ;;  %v7090_v30 = vadd.f32 %v5019_v51, %v9044_v36  ;;  %v7059_v58 = vadd.f32 %v4569_v56, %v9058_v27  ;;  %v10036_v35 = vcombine.low %v9136_v40, %v9138_v22  ;;  %v6184_v20 = vmul.f32 %v9083_v59, %v6014_v17  ;;  %v5025_v17 = vpop.f32.mrb[79].mxu1 }
 0x303   :  { %5881 = vmatprep.subr.bf16.mxu1 %v10035_v60  ;;  %v6020_v28 = vmax.f32 %v7058_v33, 0.0  ;;  %v7091_v10 = vadd.f32 %v5021_v6, %v9070_v26  ;;  %v7060_v45 = vadd.f32 %v4571_v3, %v9041_v11  ;;  %v10037_v9 = vcombine.high %v9158_v13, %v9160_v57  ;;  %5387 = vmatmul.mubr.bf16.gmra.mrb[120].mxu0 %v8819_v52 }
 0x304   :  { %5430 = vmatpush1.bf16.msra.mxu0 %v10036_v35  ;;  %v9378_v42 = vadd.f32 %v6307_v46, %v6177_v25  ;;  %v6315_v14 = vadd.f32 %v6183_v2, %v6182_v39  ;;  %v6022_v63 = vmax.f32 %v7090_v30, 0.0  ;;  %v6021_v22 = vmax.f32 %v7059_v58, 0.0  ;;  %v9395_v46 = vld [vmem:[#allocation7 + $0xfd8] sm:$0xff]  ;;  %5839 = vmatmul.mubr.bf16.gmra.mrb[120].mxu1 %v8819_v52 }
 0x305   :  { %5431 = vmatprep.subr.bf16.mxu0 %v10037_v9  ;;  %v10038_v40 = vcombine.low %v9147_v50, %v9149_v43  ;;  %v6190_v33 = vmul.f32 %v9067_v32, %v6020_v28  ;;  %v6023_v51 = vmax.f32 %v7091_v10, 0.0  ;;  %v6028_v16 = vmax.f32 %v7060_v45, 0.0  ;;  %v9397_v2 = vld [vmem:[#allocation7 + $0xff8] sm:$0xff]  ;;  %v4577_v28 = vpop.f32.mrb[80].mxu0 }
 0x306   :  { %v7092_v56 = vadd.f32 %v5023_v31, %v9044_v36  ;;  %v6185_v39 = vmul.f32 %v9089_v19, %v6015_v15  ;;  %v6316_v25 = vadd.f32 %v6315_v14, %v6184_v20  ;;  %v6191_v60 = vmul.f32 %v9086_v34, %v6021_v22  ;;  %v10040_v15 = vld [vmem:[#allocation62_spill] sm:$0xff]  ;;  %v5029_v31 = vpop.f32.mrb[80].mxu1  ;;  %v4579_v9 = vpop.f32.mrb[81].mxu0 }
 0x307   :  { %5882 = vmatpush1.bf16.msra.mxu1 %v10038_v40  ;;  %v7061_v50 = vadd.f32 %v4573_v49, %v9058_v27  ;;  %v10039_v43 = vcombine.low %v9158_v13, %v9160_v57  ;;  %v6192_v30 = vmul.f32 %v9083_v59, %v6022_v63  ;;  %5396 = vmatprep.mubr.bf16.mxu0 %v10040_v15  ;;  %v5031_v40 = vpop.f32.mrb[81].mxu1 }
 0x308   :  { %5883 = vmatprep.subr.bf16.mxu1 %v7020_v23  ;;  %v6030_v58 = vmax.f32 %v7092_v56, 0.0  ;;  %v7093_v23 = vadd.f32 %v5025_v17, %v9070_v26  ;;  %v7041_v6 = vcombine.low %v9339_v18, %v9341_v41  ;;  %v9405_v35 = vadd.f32 %v6316_v25, %v6185_v39  ;;  %5848 = vmatprep.mubr.bf16.mxu1 %v10040_v15  ;;  %v5033_v39 = vpop.f32.mrb[82].mxu1 }
 0x309   :  { %5432 = vmatpush1.bf16.msra.mxu0 %v10039_v43  ;;  %v6324_v57 = vadd.f32 %v6191_v60, %v6190_v33  ;;  %v6198_v13 = vmul.f32 %v9067_v32, %v6028_v16  ;;  %v6029_v3 = vmax.f32 %v7061_v50, 0.0  ;;  %v10041_v20 = vcombine.low %v9172_v1, %v9174_v7  ;;  %v4581_v33 = vpop.f32.mrb[82].mxu0 }
 0x30a   :  { %v6193_v52 = vmul.f32 %v9089_v19, %v6023_v51  ;;  %v6031_v10 = vmax.f32 %v7093_v23, 0.0  ;;  %v7062_v45 = vadd.f32 %v4577_v28, %v9041_v11  ;;  %v10042_v49 = vcombine.high %v9204_v53, %v9206_v47  ;;  %v4583_v25 = vpop.f32.mrb[83].mxu0 }
 0x30b   :  { %5884 = vmatpush1.bf16.msra.mxu1 %v10041_v20  ;;  %v7044_v7 = vcombine.high %v9395_v46, %v9397_v2  ;;  %v6325_v1 = vadd.f32 %v6324_v57, %v6192_v30  ;;  %v6199_v14 = vmul.f32 %v9086_v34, %v6029_v3  ;;  %v7094_v63 = vadd.f32 %v5029_v31, %v9044_v36  ;;  %v5035_v30 = vpop.f32.mrb[83].mxu1  ;;  %v10045_v3 = vld [vmem:[#allocation61_spill] sm:$0xff]  ;;  %v4587_v24 = vpop.f32.mrb[84].mxu0 }
 0x30c   :  { %5433 = vmatprep.subr.bf16.mxu0 %v10042_v49  ;;  %5885 = vmatprep.subr.bf16.mxu1 %v7028_v0  ;;  %v7063_v22 = vadd.f32 %v4579_v9, %v9058_v27  ;;  %v10043_v17 = vcombine.low %v9204_v53, %v9206_v47  ;;  %v6200_v51 = vmul.f32 %v9083_v59, %v6030_v58  ;;  %v6036_v16 = vmax.f32 %v7062_v45, 0.0  ;;  %v10046_v45 = vld [vmem:[#allocation50_spill] sm:$0xff] }
 0x30d   :  { %v7095_v0 = vadd.f32 %v5031_v40, %v9070_v26  ;;  %v7064_v56 = vadd.f32 %v4581_v33, %v9041_v11  ;;  %v9434_v60 = vadd.f32 %v6325_v1, %v6193_v52  ;;  %v6333_v50 = vadd.f32 %v6199_v14, %v6198_v13  ;;  %5397 = vmatmul.mubr.bf16.gmra.mrb[124].mxu0 %v10045_v3  ;;  %v5039_v14 = vpop.f32.mrb[84].mxu1 }
 0x30e   :  { %5434 = vmatpush1.bf16.msra.mxu0 %v10043_v17  ;;  %v6038_v43 = vmax.f32 %v7094_v63, 0.0  ;;  %v6037_v47 = vmax.f32 %v7063_v22, 0.0  ;;  %v10044_v53 = vcombine.low %v9221_v4, %v9223_v44  ;;  %v6206_v58 = vmul.f32 %v9067_v32, %v6036_v16  ;;  %5849 = vmatmul.mubr.bf16.gmra.mrb[124].mxu1 %v10045_v3 }
 0x30f   :  { %5435 = vmatprep.subr.bf16.mxu0 %v7034_v12  ;;  %v6039_v23 = vmax.f32 %v7095_v0, 0.0  ;;  %v6044_v15 = vmax.f32 %v7064_v56, 0.0  ;;  %v7096_v57 = vadd.f32 %v5033_v39, %v9044_v36  ;;  %v6201_v12 = vmul.f32 %v9089_v19, %v6031_v10  ;;  %5439 = vmatprep.mubr.bf16.mxu0 %v10046_v45 }
 0x310   :  { %5886 = vmatpush1.bf16.msra.mxu1 %v10044_v53  ;;  %v6334_v13 = vadd.f32 %v6333_v50, %v6200_v51  ;;  %v6207_v20 = vmul.f32 %v9086_v34, %v6037_v47  ;;  %v7065_v4 = vadd.f32 %v4583_v25, %v9058_v27  ;;  %v6208_v44 = vmul.f32 %v9083_v59, %v6038_v43  ;;  %v10047_v43 = vld [vmem:[#allocation49_spill] sm:$0xff] }
 0x311   :  { %5887 = vmatprep.subr.bf16.mxu1 %v7036_v48  ;;  %v6046_v28 = vmax.f32 %v7096_v57, 0.0  ;;  %v7097_v52 = vadd.f32 %v5035_v30, %v9070_v26  ;;  %v7043_v48 = vcombine.low %v9395_v46, %v9397_v2  ;;  %v6214_v49 = vmul.f32 %v9067_v32, %v6044_v15  ;;  %5891 = vmatprep.mubr.bf16.mxu1 %v10046_v45  ;;  %v4589_v46 = vpop.f32.mrb[85].mxu0 }
 0x312   :  { %5436 = vmatpush1.bf16.msra.mxu0 %v7033_v54  ;;  %v9457_v10 = vadd.f32 %v6334_v13, %v6201_v12  ;;  %v6342_v31 = vadd.f32 %v6207_v20, %v6206_v58  ;;  %v6045_v9 = vmax.f32 %v7065_v4, 0.0  ;;  %v6209_v61 = vmul.f32 %v9089_v19, %v6039_v23  ;;  %v4591_v22 = vpop.f32.mrb[86].mxu0  ;;  %v10048_v23 = vld [vmem:[#allocation52_spill] sm:$0xff] }
 0x313   :  { %v6047_v54 = vmax.f32 %v7097_v52, 0.0  ;;  %v7066_v1 = vadd.f32 %v4587_v24, %v9041_v11  ;;  %5437 = vmatprep.subr.bf16.mxu0 %v7042_v8  ;;  %v7098_v21 = vadd.f32 %v5039_v14, %v9044_v36  ;;  %v7067_v38 = vadd.f32 %v4589_v46, %v9058_v27  ;;  %v4593_v51 = vpop.f32.mrb[87].mxu0 }
 0x314   :  { %5888 = vmatpush1.bf16.msra.mxu1 %v7035_v29  ;;  %v6343_v2 = vadd.f32 %v6342_v31, %v6208_v44  ;;  %v6215_v63 = vmul.f32 %v9086_v34, %v6045_v9  ;;  %v5041_v29 = vpop.f32.mrb[85].mxu1  ;;  %v6216_v40 = vmul.f32 %v9083_v59, %v6046_v28  ;;  %v7069_v58 = vadd.f32 %v4593_v51, %v9058_v27  ;;  %v4597_v44 = vpop.f32.mrb[88].mxu0 }
 0x315   :  { %5889 = vmatprep.subr.bf16.mxu1 %v7044_v7  ;;  %v6052_v17 = vmax.f32 %v7066_v1, 0.0  ;;  %v7099_v8 = vadd.f32 %v5041_v29, %v9070_v26  ;;  %v7068_v7 = vadd.f32 %v4591_v22, %v9041_v11  ;;  %v5043_v33 = vpop.f32.mrb[86].mxu1  ;;  %v6054_v56 = vmax.f32 %v7098_v21, 0.0  ;;  %v4599_v31 = vpop.f32.mrb[89].mxu0 }
 0x316   :  { %5438 = vmatpush1.bf16.msra.mxu0 %v7041_v6  ;;  %v9478_v16 = vadd.f32 %v6343_v2, %v6209_v61  ;;  %v6351_v0 = vadd.f32 %v6215_v63, %v6214_v49  ;;  %v6053_v39 = vmax.f32 %v7067_v38, 0.0  ;;  %v5045_v25 = vpop.f32.mrb[87].mxu1  ;;  %v7100_v50 = vadd.f32 %v5043_v33, %v9044_v36  ;;  %v4601_v1 = vpop.f32.mrb[90].mxu0 }
 0x317   :  { %v6222_v18 = vmul.f32 %v9067_v32, %v6052_v17  ;;  %v6055_v41 = vmax.f32 %v7099_v8, 0.0  ;;  %v6060_v6 = vmax.f32 %v7068_v7, 0.0  ;;  %v6217_v47 = vmul.f32 %v9089_v19, %v6047_v54  ;;  %v4603_v38 = vpop.f32.mrb[91].mxu0 }
 0x318   :  { %5890 = vmatpush1.bf16.msra.mxu1 %v7043_v48  ;;  %v6352_v53 = vadd.f32 %v6351_v0, %v6216_v40  ;;  %v6223_v30 = vmul.f32 %v9086_v34, %v6053_v39  ;;  %v6224_v15 = vmul.f32 %v9083_v59, %v6054_v56  ;;  %v6062_v57 = vmax.f32 %v7100_v50, 0.0  ;;  %v5049_v48 = vpop.f32.mrb[88].mxu1  ;;  %v10049_v56 = vld [vmem:[#allocation51_spill] sm:$0xff] }
 0x319   :  { %5440 = vmatmul.mubr.bf16.vlgmr.msra.gmra.mrb[96].mxu0 %v10047_v43  ;;  %v7101_v3 = vadd.f32 %v5045_v25, %v9070_v26  ;;  %v6230_v20 = vmul.f32 %v9067_v32, %v6060_v6  ;;  %v6061_v4 = vmax.f32 %v7069_v58, 0.0  ;;  %v6225_v28 = vmul.f32 %v9089_v19, %v6055_v41  ;;  %v5051_v54 = vpop.f32.mrb[89].mxu1  ;;  %v10050_v6 = vld [vmem:[#allocation54_spill] sm:$0xff] }
 0x31a   :  { %5449 = vmatprep.mubr.bf16.mxu0 %v10048_v23  ;;  %v9490_v12 = vadd.f32 %v6352_v53, %v6217_v47  ;;  %v6360_v13 = vadd.f32 %v6223_v30, %v6222_v18  ;;  %v7070_v45 = vadd.f32 %v4597_v44, %v9041_v11  ;;  %v7102_v24 = vadd.f32 %v5049_v48, %v9044_v36  ;;  %v5053_v21 = vpop.f32.mrb[90].mxu1 }
 0x31b   :  { %5892 = vmatmul.mubr.bf16.vlgmr.msra.gmra.mrb[96].mxu1 %v10047_v43  ;;  %v6063_v52 = vmax.f32 %v7101_v3, 0.0  ;;  %v6231_v9 = vmul.f32 %v9086_v34, %v6061_v4  ;;  %v7071_v61 = vadd.f32 %v4599_v31, %v9058_v27  ;;  %v6232_v14 = vmul.f32 %v9083_v59, %v6062_v57  ;;  %v5055_v8 = vpop.f32.mrb[91].mxu1 }
 0x31c   :  { %5901 = vmatprep.mubr.bf16.mxu1 %v10048_v23  ;;  %v6361_v49 = vadd.f32 %v6360_v13, %v6224_v15  ;;  %v6068_v46 = vmax.f32 %v7070_v45, 0.0  ;;  %v7103_v2 = vadd.f32 %v5051_v54, %v9070_v26  ;;  %v7072_v63 = vadd.f32 %v4601_v1, %v9041_v11  ;;  %v4607_v15 = vpop.f32.mrb[92].mxu0 }
 0x31d   :  { %v6369_v22 = vadd.f32 %v6231_v9, %v6230_v20  ;;  %v6070_v40 = vmax.f32 %v7102_v24, 0.0  ;;  %v6069_v17 = vmax.f32 %v7071_v61, 0.0  ;;  %v7104_v0 = vadd.f32 %v5053_v21, %v9044_v36  ;;  %v5059_v20 = vpop.f32.mrb[92].mxu1  ;;  %v4609_v4 = vpop.f32.mrb[93].mxu0 }
 0x31e   :  { %v9502_v29 = vadd.f32 %v6361_v49, %v6225_v28  ;;  %v6238_v7 = vmul.f32 %v9067_v32, %v6068_v46  ;;  %v6071_v33 = vmax.f32 %v7103_v2, 0.0  ;;  %v6076_v51 = vmax.f32 %v7072_v63, 0.0  ;;  %v5061_v48 = vpop.f32.mrb[93].mxu1  ;;  %v4611_v31 = vpop.f32.mrb[94].mxu0 }
 0x31f   :  { %v6233_v39 = vmul.f32 %v9089_v19, %v6063_v52  ;;  %v6370_v25 = vadd.f32 %v6369_v22, %v6232_v14  ;;  %v6239_v18 = vmul.f32 %v9086_v34, %v6069_v17  ;;  %v7073_v41 = vadd.f32 %v4603_v38, %v9058_v27  ;;  %v5063_v54 = vpop.f32.mrb[94].mxu1  ;;  %v4613_v1 = vpop.f32.mrb[95].mxu0 }
 0x320   :  { %v6240_v50 = vmul.f32 %v9083_v59, %v6070_v40  ;;  %v6078_v43 = vmax.f32 %v7104_v0, 0.0  ;;  %v7105_v47 = vadd.f32 %v5055_v8, %v9070_v26  ;;  %v6246_v58 = vmul.f32 %v9067_v32, %v6076_v51  ;;  %v5065_v21 = vpop.f32.mrb[95].mxu1  ;;  %v10051_v8 = vld [vmem:[#allocation53_spill] sm:$0xff]  ;;  %v10052_v0 = vld [vmem:[#allocation56_spill] sm:$0xff] }
 0x321   :  { %5450 = vmatmul.mubr.bf16.gmra.mrb[100].mxu0 %v10049_v56  ;;  %v9514_v53 = vadd.f32 %v6370_v25, %v6233_v39  ;;  %v6378_v30 = vadd.f32 %v6239_v18, %v6238_v7  ;;  %v6077_v23 = vmax.f32 %v7073_v41, 0.0  ;;  %v6241_v57 = vmul.f32 %v9089_v19, %v6071_v33 }
 0x322   :  { %5459 = vmatprep.mubr.bf16.mxu0 %v10050_v6  ;;  %v6079_v3 = vmax.f32 %v7105_v47, 0.0  ;;  %v7074_v13 = vadd.f32 %v4607_v15, %v9041_v11  ;;  %v7106_v52 = vadd.f32 %v5059_v20, %v9044_v36  ;;  %v7075_v45 = vadd.f32 %v4609_v4, %v9058_v27  ;;  %v10059_v20 = vld [vmem:[#allocation63_spill] sm:$0xff]  ;;  %v10060_v4 = vld [vmem:[#allocation66_spill] sm:$0xff] }
 0x323   :  { %5902 = vmatmul.mubr.bf16.gmra.mrb[100].mxu1 %v10049_v56  ;;  %v6379_v44 = vadd.f32 %v6378_v30, %v6240_v50  ;;  %v6247_v28 = vmul.f32 %v9086_v34, %v6077_v23  ;;  %v6248_v49 = vmul.f32 %v9083_v59, %v6078_v43  ;;  %v7107_v24 = vadd.f32 %v5061_v48, %v9070_v26  ;;  %v10063_v48 = vld [vmem:[#allocation41_spill] sm:$0xff] }
 0x324   :  { %5911 = vmatprep.mubr.bf16.mxu1 %v10050_v6  ;;  %v6084_v9 = vmax.f32 %v7074_v13, 0.0  ;;  %v7076_v61 = vadd.f32 %v4611_v31, %v9041_v11  ;;  %v6086_v2 = vmax.f32 %v7106_v52, 0.0  ;;  %v6085_v63 = vmax.f32 %v7075_v45, 0.0  ;;  %v10056_v13 = vld [vmem:[#allocation60_spill] sm:$0xff]  ;;  %v10062_v52 = vld [vmem:[#allocation39_spill] sm:$0xff] }
 0x325   :  { %v9526_v14 = vadd.f32 %v6379_v44, %v6241_v57  ;;  %v6387_v46 = vadd.f32 %v6247_v28, %v6246_v58  ;;  %v6249_v38 = vmul.f32 %v9089_v19, %v6079_v3  ;;  %v7108_v17 = vadd.f32 %v5063_v54, %v9044_v36  ;;  %v10053_v58 = vld [vmem:[#allocation55_spill] sm:$0xff]  ;;  %v10054_v57 = vld [vmem:[#allocation58_spill] sm:$0xff]  ;;  %v10061_v44 = vld [vmem:[#allocation65_spill] sm:$0xff] }
 0x326   :  { %v6254_v22 = vmul.f32 %v9067_v32, %v6084_v9  ;;  %v6092_v40 = vmax.f32 %v7076_v61, 0.0  ;;  %v6255_v11 = vmul.f32 %v9086_v34, %v6085_v63  ;;  %v6087_v33 = vmax.f32 %v7107_v24, 0.0  ;;  %v7574_v28 = vld [vmem:[#allocation8] sm:$0xff]  ;;  %v10065_v61 = vld [vmem:[#allocation47_spill] sm:$0xff] }
 0x327   :  { %v6388_v7 = vadd.f32 %v6387_v46, %v6248_v49  ;;  %v7077_v51 = vadd.f32 %v4613_v1, %v9058_v27  ;;  %v6256_v56 = vmul.f32 %v9083_v59, %v6086_v2  ;;  %v7109_v25 = vadd.f32 %v5065_v21, %v9070_v26  ;;  %v10064_v49 = vld [vmem:[#allocation46_spill] sm:$0xff]  ;;  %v7575_v46 = vld [vmem:[#allocation10] sm:$0xff] }
 0x328   :  { %v6262_v39 = vmul.f32 %v9067_v32, %v6092_v40  ;;  %v6396_v36 = vadd.f32 %v6255_v11, %v6254_v22  ;;  %v6094_v41 = vmax.f32 %v7108_v17, 0.0  ;;  %v6257_v50 = vmul.f32 %v9089_v19, %v6087_v33 }
 0x329   :  { %5460 = vmatmul.mubr.bf16.gmra.mrb[104].mxu0 %v10051_v8  ;;  %v9539_v18 = vadd.f32 %v6388_v7, %v6249_v38  ;;  %v6093_v6 = vmax.f32 %v7077_v51, 0.0  ;;  %v6095_v47 = vmax.f32 %v7109_v25, 0.0  ;;  %v9569_v45 = vrot.slane %v7574_v28, %v10062_v52 }
 0x32a   :  { %5469 = vmatprep.mubr.bf16.mxu0 %v10052_v0  ;;  %v6397_v27 = vadd.f32 %v6396_v36, %v6256_v56  ;;  %v6264_v32 = vmul.f32 %v9083_v59, %v6094_v41  ;;  %v10057_v59 = vld [vmem:[#allocation59_spill] sm:$0xff]  ;;  %v9572_v31 = vrot.slane %v7574_v28, %v10063_v48  ;;  %v9575_v9 = vrot.slane %v7574_v28, %v10064_v49 }
 0x32b   :  { %5912 = vmatmul.mubr.bf16.gmra.mrb[104].mxu1 %v10051_v8  ;;  %v6263_v43 = vmul.f32 %v9086_v34, %v6093_v6  ;;  %v6265_v23 = vmul.f32 %v9089_v19, %v6095_v47  ;;  %v10055_v34 = vld [vmem:[#allocation57_spill] sm:$0xff]  ;;  %v10058_v19 = vld [vmem:[#allocation64_spill] sm:$0xff]  ;;  %v9578_v54 = vrot.slane %v7574_v28, %v10065_v61  ;;  %v9582_v2 = vrot.slane %v7575_v46, %v10062_v52 }
 0x32c   :  { %5921 = vmatprep.mubr.bf16.mxu1 %v10052_v0  ;;  %v9544_v30 = vadd.f32 %v6397_v27, %v6257_v50  ;;  %v9586_v22 = vrot.slane %v7575_v46, %v10063_v48  ;;  %v9590_v7 = vrot.slane %v7575_v46, %v10064_v49  ;;  %v9596_v36 = vrot.slane %v7575_v46, %v10065_v61 }
 0x32d   :  { %v6405_v26 = vadd.f32 %v6263_v43, %v6262_v39 }
 0x32f   :  { %v6406_v15 = vadd.f32 %v6405_v26, %v6264_v32 }
 0x331   :  { %5470 = vmatmul.mubr.bf16.gmra.mrb[108].mxu0 %v10053_v58  ;;  %v9551_v3 = vadd.f32 %v6406_v15, %v6265_v23 }
 0x332   :  { %5479 = vmatprep.mubr.bf16.mxu0 %v10054_v57 }
 0x333   :  { %5922 = vmatmul.mubr.bf16.gmra.mrb[108].mxu1 %v10053_v58 }
 0x334   :  { %5931 = vmatprep.mubr.bf16.mxu1 %v10054_v57 }
 0x339   :  { %5480 = vmatmul.mubr.bf16.gmra.mrb[112].mxu0 %v10055_v34 }
 0x33a   :  { %5489 = vmatprep.mubr.bf16.mxu0 %v10056_v13 }
 0x33b   :  { %5932 = vmatmul.mubr.bf16.gmra.mrb[112].mxu1 %v10055_v34 }
 0x33c   :  { %5941 = vmatprep.mubr.bf16.mxu1 %v10056_v13 }
 0x341   :  { %5490 = vmatmul.mubr.bf16.gmra.mrb[116].mxu0 %v10057_v59 }
 0x342   :  { %5499 = vmatprep.mubr.bf16.mxu0 %v10058_v19 }
 0x343   :  { %5942 = vmatmul.mubr.bf16.gmra.mrb[116].mxu1 %v10057_v59 }
 0x344   :  { %5951 = vmatprep.mubr.bf16.mxu1 %v10058_v19 }
 0x349   :  { %5500 = vmatmul.mubr.bf16.gmra.mrb[120].mxu0 %v10059_v20 }
 0x34a   :  { %5509 = vmatprep.mubr.bf16.mxu0 %v10060_v4 }
 0x34b   :  { %5952 = vmatmul.mubr.bf16.gmra.mrb[120].mxu1 %v10059_v20 }
 0x34c   :  { %5961 = vmatprep.mubr.bf16.mxu1 %v10060_v4 }
 0x351   :  { %5510 = vmatmul.mubr.bf16.gmra.mrb[124].mxu0 %v10061_v44 }
 0x353   :  { %5962 = vmatmul.mubr.bf16.gmra.mrb[124].mxu1 %v10061_v44 }
 0x3ec   :  { %v5441_v24 = vpop.f32.mrb[96].mxu0 }
 0x3ed   :  { %v7110_v1 = vadd.f32 %v5441_v24, %v9569_v45  ;;  %v5443_v63 = vpop.f32.mrb[97].mxu0 }
 0x3ee   :  { %v5893_v21 = vpop.f32.mrb[96].mxu1  ;;  %v7111_v38 = vadd.f32 %v5443_v63, %v9572_v31  ;;  %v5445_v40 = vpop.f32.mrb[98].mxu0 }
 0x3ef   :  { %v5976_v17 = vmax.f32 %v7110_v1, 0.0  ;;  %v7142_v8 = vadd.f32 %v5893_v21, %v9575_v9  ;;  %v5895_v11 = vpop.f32.mrb[97].mxu1  ;;  %v7112_v33 = vadd.f32 %v5445_v40, %v9569_v45  ;;  %v5447_v51 = vpop.f32.mrb[99].mxu0 }
 0x3f0   :  { %v5977_v0 = vmax.f32 %v7111_v38, 0.0  ;;  %v7143_v56 = vadd.f32 %v5895_v11, %v9578_v54  ;;  %v5897_v39 = vpop.f32.mrb[98].mxu1  ;;  %v7113_v25 = vadd.f32 %v5447_v51, %v9572_v31 }
 0x3f1   :  { %v6146_v41 = vmul.f32 %v9582_v2, %v5976_v17  ;;  %v5978_v6 = vmax.f32 %v7142_v8, 0.0  ;;  %v5984_v50 = vmax.f32 %v7112_v33, 0.0  ;;  %v7144_v27 = vadd.f32 %v5897_v39, %v9575_v9  ;;  %v5899_v43 = vpop.f32.mrb[99].mxu1 }
 0x3f2   :  { %v6147_v47 = vmul.f32 %v9586_v22, %v5977_v0  ;;  %v5979_v32 = vmax.f32 %v7143_v56, 0.0  ;;  %v5985_v26 = vmax.f32 %v7113_v25, 0.0  ;;  %v7145_v58 = vadd.f32 %v5899_v43, %v9578_v54 }
 0x3f3   :  { %v6273_v23 = vadd.f32 %v9259_v62, %v6146_v41  ;;  %v6154_v15 = vmul.f32 %v9582_v2, %v5984_v50  ;;  %v5986_v57 = vmax.f32 %v7144_v27, 0.0  ;;  %v6148_v59 = vmul.f32 %v9590_v7, %v5978_v6 }
 0x3f4   :  { %v6155_v34 = vmul.f32 %v9586_v22, %v5985_v26  ;;  %v5451_v13 = vpop.f32.mrb[100].mxu0  ;;  %v5987_v52 = vmax.f32 %v7145_v58, 0.0  ;;  %v6149_v24 = vmul.f32 %v9596_v36, %v5979_v32 }
 0x3f5   :  { %v6282_v19 = vadd.f32 %v9274_v37, %v6154_v15  ;;  %v7114_v20 = vadd.f32 %v5451_v13, %v9569_v45  ;;  %v5453_v4 = vpop.f32.mrb[101].mxu0  ;;  %v6274_v44 = vadd.f32 %v6273_v23, %v6147_v47  ;;  %v6156_v28 = vmul.f32 %v9590_v7, %v5986_v57 }
 0x3f6   :  { %v5903_v48 = vpop.f32.mrb[100].mxu1  ;;  %v7115_v62 = vadd.f32 %v5453_v4, %v9572_v31  ;;  %v5455_v49 = vpop.f32.mrb[102].mxu0  ;;  %v6157_v27 = vmul.f32 %v9596_v36, %v5987_v52 }
 0x3f7   :  { %v6283_v61 = vadd.f32 %v6282_v19, %v6155_v34  ;;  %v5992_v1 = vmax.f32 %v7114_v20, 0.0  ;;  %v7146_v46 = vadd.f32 %v5903_v48, %v9575_v9  ;;  %v5905_v63 = vpop.f32.mrb[101].mxu1  ;;  %v7116_v37 = vadd.f32 %v5455_v49, %v9569_v45  ;;  %v5457_v21 = vpop.f32.mrb[103].mxu0 }
 0x3f8   :  { %v5993_v38 = vmax.f32 %v7115_v62, 0.0  ;;  %v7147_v40 = vadd.f32 %v5905_v63, %v9578_v54  ;;  %v5907_v17 = vpop.f32.mrb[102].mxu1  ;;  %v7117_v8 = vadd.f32 %v5457_v21, %v9572_v31  ;;  %v6275_v11 = vadd.f32 %v6274_v44, %v6148_v59 }
 0x3f9   :  { %v6162_v33 = vmul.f32 %v9582_v2, %v5992_v1  ;;  %v5994_v51 = vmax.f32 %v7146_v46, 0.0  ;;  %v6000_v0 = vmax.f32 %v7116_v37, 0.0  ;;  %v7148_v56 = vadd.f32 %v5907_v17, %v9575_v9  ;;  %v5909_v39 = vpop.f32.mrb[103].mxu1 }
 0x3fa   :  { %v6163_v25 = vmul.f32 %v9586_v22, %v5993_v38  ;;  %v5995_v41 = vmax.f32 %v7147_v40, 0.0  ;;  %v6001_v6 = vmax.f32 %v7117_v8, 0.0  ;;  %v7149_v50 = vadd.f32 %v5909_v39, %v9578_v54 }
 0x3fb   :  { %v6291_v43 = vadd.f32 %v9322_v55, %v6162_v33  ;;  %v6170_v47 = vmul.f32 %v9582_v2, %v6000_v0  ;;  %v6164_v32 = vmul.f32 %v9590_v7, %v5994_v51  ;;  %v6276_v58 = vadd.f32 %v6275_v11, %v6149_v24 }
 0x3fc   :  { %v6171_v26 = vmul.f32 %v9586_v22, %v6001_v6  ;;  %v5461_v23 = vpop.f32.mrb[104].mxu0  ;;  %v6284_v15 = vadd.f32 %v6283_v61, %v6156_v28  ;;  %v6002_v34 = vmax.f32 %v7148_v56, 0.0  ;;  %v6003_v13 = vmax.f32 %v7149_v50, 0.0 }
 0x3fd   :  { %v6300_v57 = vadd.f32 %v9349_v5, %v6170_v47  ;;  %v7118_v59 = vadd.f32 %v5461_v23, %v9569_v45  ;;  %v5463_v19 = vpop.f32.mrb[105].mxu0  ;;  %6277 = vadd.xlane.f32.xlu0 %v6276_v58  ;;  %v6165_v52 = vmul.f32 %v9596_v36, %v5995_v41  ;;  %v6292_v48 = vadd.f32 %v6291_v43, %v6163_v25 }
 0x3fe   :  { %v5913_v20 = vpop.f32.mrb[104].mxu1  ;;  %v7119_v55 = vadd.f32 %v5463_v19, %v9572_v31  ;;  %v5465_v4 = vpop.f32.mrb[106].mxu0  ;;  %v6285_v44 = vadd.f32 %v6284_v15, %v6157_v27  ;;  %v6172_v39 = vmul.f32 %v9590_v7, %v6002_v34  ;;  %v6173_v6 = vmul.f32 %v9596_v36, %v6003_v13 }
 0x3ff   :  { %v6301_v62 = vadd.f32 %v6300_v57, %v6171_v26  ;;  %v6008_v49 = vmax.f32 %v7118_v59, 0.0  ;;  %v7150_v28 = vadd.f32 %v5913_v20, %v9575_v9  ;;  %v5915_v24 = vpop.f32.mrb[105].mxu1  ;;  %v7120_v5 = vadd.f32 %v5465_v4, %v9569_v45  ;;  %v5467_v61 = vpop.f32.mrb[107].mxu0 }
 0x400   :  { %v6009_v1 = vmax.f32 %v7119_v55, 0.0  ;;  %v7151_v46 = vadd.f32 %v5915_v24, %v9578_v54  ;;  %v5917_v63 = vpop.f32.mrb[106].mxu1  ;;  %v7121_v37 = vadd.f32 %v5467_v61, %v9572_v31  ;;  %v6293_v21 = vadd.f32 %v6292_v48, %v6164_v32 }
 0x401   :  { %v6178_v38 = vmul.f32 %v9582_v2, %v6008_v49  ;;  %v6010_v40 = vmax.f32 %v7150_v28, 0.0  ;;  %v6016_v17 = vmax.f32 %v7120_v5, 0.0  ;;  %v7152_v8 = vadd.f32 %v5917_v63, %v9575_v9  ;;  %v5919_v11 = vpop.f32.mrb[107].mxu1  ;;  %6286 = vadd.xlane.f32.xlu0 %v6285_v44 }
 0x402   :  { %v6179_v33 = vmul.f32 %v9586_v22, %v6009_v1  ;;  %v6011_v51 = vmax.f32 %v7151_v46, 0.0  ;;  %v6017_v0 = vmax.f32 %v7121_v37, 0.0  ;;  %v7153_v56 = vadd.f32 %v5919_v11, %v9578_v54 }
 0x403   :  { %v6309_v25 = vadd.f32 %v9378_v42, %v6178_v38  ;;  %v6186_v41 = vmul.f32 %v9582_v2, %v6016_v17  ;;  %v6180_v50 = vmul.f32 %v9590_v7, %v6010_v40  ;;  %v6294_v43 = vadd.f32 %v6293_v21, %v6165_v52 }
 0x404   :  { %v6187_v27 = vmul.f32 %v9586_v22, %v6017_v0  ;;  %v5471_v47 = vpop.f32.mrb[108].mxu0  ;;  %v6018_v58 = vmax.f32 %v7152_v8, 0.0  ;;  %v6181_v57 = vmul.f32 %v9596_v36, %v6011_v51  ;;  %v6019_v42 = vmax.f32 %v7153_v56, 0.0 }
 0x405   :  { %v6310_v32 = vadd.f32 %v6309_v25, %v6179_v33  ;;  %v6318_v26 = vadd.f32 %v9405_v35, %v6186_v41  ;;  %v7122_v23 = vadd.f32 %v5471_v47, %v9569_v45  ;;  %v5473_v15 = vpop.f32.mrb[109].mxu0  ;;  %6295 = vadd.xlane.f32.xlu1 %v6294_v43  ;;  %v6302_v19 = vadd.f32 %v6301_v62, %v6172_v39 }
 0x406   :  { %v5923_v34 = vpop.f32.mrb[108].mxu1  ;;  %v7123_v13 = vadd.f32 %v5473_v15, %v9572_v31  ;;  %v5475_v59 = vpop.f32.mrb[110].mxu0  ;;  %v6188_v17 = vmul.f32 %v9590_v7, %v6018_v58  ;;  %v6189_v8 = vmul.f32 %v9596_v36, %v6019_v42 }
 0x407   :  { %v6319_v20 = vadd.f32 %v6318_v26, %v6187_v27  ;;  %v6024_v55 = vmax.f32 %v7122_v23, 0.0  ;;  %v7154_v4 = vadd.f32 %v5923_v34, %v9575_v9  ;;  %v5925_v44 = vpop.f32.mrb[109].mxu1  ;;  %v7124_v35 = vadd.f32 %v5475_v59, %v9569_v45  ;;  %v5477_v52 = vpop.f32.mrb[111].mxu0 }
 0x408   :  { %v6025_v48 = vmax.f32 %v7123_v13, 0.0  ;;  %v7155_v49 = vadd.f32 %v5925_v44, %v9578_v54  ;;  %v5927_v28 = vpop.f32.mrb[110].mxu1  ;;  %v7125_v24 = vadd.f32 %v5477_v52, %v9572_v31  ;;  %v6303_v5 = vadd.f32 %v6302_v19, %v6173_v6 }
 0x409   :  { %v6194_v61 = vmul.f32 %v9582_v2, %v6024_v55  ;;  %v6026_v1 = vmax.f32 %v7154_v4, 0.0  ;;  %v6032_v46 = vmax.f32 %v7124_v35, 0.0  ;;  %v7156_v62 = vadd.f32 %v5927_v28, %v9575_v9  ;;  %v5929_v63 = vpop.f32.mrb[111].mxu1 }
 0x40a   :  { %v6195_v37 = vmul.f32 %v9586_v22, %v6025_v48  ;;  %v6027_v21 = vmax.f32 %v7155_v49, 0.0  ;;  %v6033_v38 = vmax.f32 %v7125_v24, 0.0  ;;  %v7157_v40 = vadd.f32 %v5929_v63, %v9578_v54  ;;  %6304 = vadd.xlane.f32.xlu1 %v6303_v5 }
 0x40b   :  { %v6327_v11 = vadd.f32 %v9434_v60, %v6194_v61  ;;  %v6202_v33 = vmul.f32 %v9582_v2, %v6032_v46  ;;  %v6196_v51 = vmul.f32 %v9590_v7, %v6026_v1  ;;  %v6034_v0 = vmax.f32 %v7156_v62, 0.0 }
 0x40c   :  { %v6203_v56 = vmul.f32 %v9586_v22, %v6033_v38  ;;  %v6311_v39 = vadd.f32 %v6310_v32, %v6180_v50  ;;  %v5481_v25 = vpop.f32.mrb[112].mxu0  ;;  %v6197_v6 = vmul.f32 %v9596_v36, %v6027_v21  ;;  %v6035_v26 = vmax.f32 %v7157_v40, 0.0 }
 0x40d   :  { %v6328_v41 = vadd.f32 %v6327_v11, %v6195_v37  ;;  %v6336_v27 = vadd.f32 %v9457_v10, %v6202_v33  ;;  %v7126_v43 = vadd.f32 %v5481_v25, %v9569_v45  ;;  %v5483_v47 = vpop.f32.mrb[113].mxu0  ;;  %v6320_v15 = vadd.f32 %v6319_v20, %v6188_v17 }
 0x40e   :  { %v6312_v58 = vadd.f32 %v6311_v39, %v6181_v57  ;;  %v5933_v60 = vpop.f32.mrb[112].mxu1  ;;  %v7127_v23 = vadd.f32 %v5483_v47, %v9572_v31  ;;  %v5485_v42 = vpop.f32.mrb[114].mxu0  ;;  %v6204_v1 = vmul.f32 %v9590_v7, %v6034_v0  ;;  %v6205_v46 = vmul.f32 %v9596_v36, %v6035_v26 }
 0x40f   :  { %v6337_v34 = vadd.f32 %v6336_v27, %v6203_v56  ;;  %v6040_v13 = vmax.f32 %v7126_v43, 0.0  ;;  %v7158_v50 = vadd.f32 %v5933_v60, %v9575_v9  ;;  %v5935_v32 = vpop.f32.mrb[113].mxu1  ;;  %v7128_v59 = vadd.f32 %v5485_v42, %v9569_v45  ;;  %v5487_v19 = vpop.f32.mrb[115].mxu0 }
 0x410   :  { %6313 = vadd.xlane.f32.xlu0 %v6312_v58  ;;  %v6041_v10 = vmax.f32 %v7127_v23, 0.0  ;;  %v7159_v55 = vadd.f32 %v5935_v32, %v9578_v54  ;;  %v6321_v4 = vadd.f32 %v6320_v15, %v6189_v8  ;;  %v5937_v44 = vpop.f32.mrb[114].mxu1  ;;  %v7129_v57 = vadd.f32 %v5487_v19, %v9572_v31 }
 0x411   :  { %v6210_v35 = vmul.f32 %v9582_v2, %v6040_v13  ;;  %v6042_v20 = vmax.f32 %v7158_v50, 0.0  ;;  %v6048_v52 = vmax.f32 %v7128_v59, 0.0  ;;  %v7160_v48 = vadd.f32 %v5937_v44, %v9575_v9  ;;  %v5939_v49 = vpop.f32.mrb[115].mxu1 }
 0x412   :  { %v6211_v28 = vmul.f32 %v9586_v22, %v6041_v10  ;;  %v6043_v24 = vmax.f32 %v7159_v55, 0.0  ;;  %6322 = vadd.xlane.f32.xlu1 %v6321_v4  ;;  %v6049_v5 = vmax.f32 %v7129_v57, 0.0  ;;  %v7161_v61 = vadd.f32 %v5939_v49, %v9578_v54 }
 0x413   :  { %v6345_v62 = vadd.f32 %v9478_v16, %v6210_v35  ;;  %v6218_v63 = vmul.f32 %v9582_v2, %v6048_v52  ;;  %v6212_v37 = vmul.f32 %v9590_v7, %v6042_v20  ;;  %v6050_v21 = vmax.f32 %v7160_v48, 0.0 }
 0x414   :  { %v6219_v38 = vmul.f32 %v9586_v22, %v6049_v5  ;;  %v6329_v40 = vadd.f32 %v6328_v41, %v6196_v51  ;;  %v5491_v17 = vpop.f32.mrb[116].mxu0  ;;  %v6213_v11 = vmul.f32 %v9596_v36, %v6043_v24  ;;  %v6051_v39 = vmax.f32 %v7161_v61, 0.0 }
 0x415   :  { %v6346_v8 = vadd.f32 %v6345_v62, %v6211_v28  ;;  %v6354_v33 = vadd.f32 %v9490_v12, %v6218_v63  ;;  %v7130_v0 = vadd.f32 %v5491_v17, %v9569_v45  ;;  %v5493_v56 = vpop.f32.mrb[117].mxu0  ;;  %v6338_v43 = vadd.f32 %v6337_v34, %v6204_v1 }
 0x416   :  { %v6330_v25 = vadd.f32 %v6329_v40, %v6197_v6  ;;  %v5943_v16 = vpop.f32.mrb[116].mxu1  ;;  %v7131_v27 = vadd.f32 %v5493_v56, %v9572_v31  ;;  %v5495_v47 = vpop.f32.mrb[118].mxu0  ;;  %v6220_v57 = vmul.f32 %v9590_v7, %v6050_v21  ;;  %v6221_v35 = vmul.f32 %v9596_v36, %v6051_v39 }
 0x417   :  { %v6355_v26 = vadd.f32 %v6354_v33, %v6219_v38  ;;  %v6056_v58 = vmax.f32 %v7130_v0, 0.0  ;;  %v7162_v51 = vadd.f32 %v5943_v16, %v9575_v9  ;;  %v5945_v41 = vpop.f32.mrb[117].mxu1  ;;  %v7132_v60 = vadd.f32 %v5495_v47, %v9569_v45  ;;  %v5497_v23 = vpop.f32.mrb[119].mxu0 }
 0x418   :  { %6331 = vadd.xlane.f32.xlu0 %v6330_v25  ;;  %v6057_v12 = vmax.f32 %v7131_v27, 0.0  ;;  %v7163_v15 = vadd.f32 %v5945_v41, %v9578_v54  ;;  %v6339_v42 = vadd.f32 %v6338_v43, %v6205_v46  ;;  %v5947_v13 = vpop.f32.mrb[118].mxu1  ;;  %v7133_v6 = vadd.f32 %v5497_v23, %v9572_v31 }
 0x419   :  { %v6226_v50 = vmul.f32 %v9582_v2, %v6056_v58  ;;  %v6058_v34 = vmax.f32 %v7162_v51, 0.0  ;;  %v6064_v32 = vmax.f32 %v7132_v60, 0.0  ;;  %v7164_v59 = vadd.f32 %v5947_v13, %v9575_v9  ;;  %v5949_v19 = vpop.f32.mrb[119].mxu1 }
 0x41a   :  { %v6227_v10 = vmul.f32 %v9586_v22, %v6057_v12  ;;  %v6059_v55 = vmax.f32 %v7163_v15, 0.0  ;;  %6340 = vadd.xlane.f32.xlu1 %v6339_v42  ;;  %v6065_v4 = vmax.f32 %v7133_v6, 0.0  ;;  %v7165_v44 = vadd.f32 %v5949_v19, %v9578_v54 }
 0x41b   :  { %v6363_v20 = vadd.f32 %v9502_v29, %v6226_v50  ;;  %v6234_v52 = vmul.f32 %v9582_v2, %v6064_v32  ;;  %v6228_v48 = vmul.f32 %v9590_v7, %v6058_v34  ;;  %v6066_v49 = vmax.f32 %v7164_v59, 0.0 }
 0x41c   :  { %v6235_v28 = vmul.f32 %v9586_v22, %v6065_v4  ;;  %v6347_v24 = vadd.f32 %v6346_v8, %v6212_v37  ;;  %v5501_v5 = vpop.f32.mrb[120].mxu0  ;;  %v6229_v1 = vmul.f32 %v9596_v36, %v6059_v55  ;;  %v6067_v21 = vmax.f32 %v7165_v44, 0.0 }
 0x41d   :  { %v6364_v61 = vadd.f32 %v6363_v20, %v6227_v10  ;;  %v6372_v46 = vadd.f32 %v9514_v53, %v6234_v52  ;;  %v7134_v62 = vadd.f32 %v5501_v5, %v9569_v45  ;;  %v5503_v63 = vpop.f32.mrb[121].mxu0  ;;  %v6356_v17 = vadd.f32 %v6355_v26, %v6220_v57 }
 0x41e   :  { %v6348_v38 = vadd.f32 %v6347_v24, %v6213_v11  ;;  %v5953_v29 = vpop.f32.mrb[120].mxu1  ;;  %v7135_v40 = vadd.f32 %v5503_v63, %v9572_v31  ;;  %v5505_v33 = vpop.f32.mrb[122].mxu0  ;;  %v6236_v42 = vmul.f32 %v9590_v7, %v6066_v49  ;;  %v6237_v13 = vmul.f32 %v9596_v36, %v6067_v21 }
 0x41f   :  { %v6373_v0 = vadd.f32 %v6372_v46, %v6235_v28  ;;  %v6072_v56 = vmax.f32 %v7134_v62, 0.0  ;;  %v7166_v37 = vadd.f32 %v5953_v29, %v9575_v9  ;;  %v5955_v8 = vpop.f32.mrb[121].mxu1  ;;  %v7136_v39 = vadd.f32 %v5505_v33, %v9569_v45  ;;  %v5507_v25 = vpop.f32.mrb[123].mxu0 }
 0x420   :  { %6349 = vadd.xlane.f32.xlu0 %v6348_v38  ;;  %v6073_v53 = vmax.f32 %v7135_v40, 0.0  ;;  %v7167_v16 = vadd.f32 %v5955_v8, %v9578_v54  ;;  %v6357_v27 = vadd.f32 %v6356_v17, %v6221_v35  ;;  %v5957_v43 = vpop.f32.mrb[122].mxu1  ;;  %v7137_v11 = vadd.f32 %v5507_v25, %v9572_v31 }
 0x421   :  { %v6242_v47 = vmul.f32 %v9582_v2, %v6072_v56  ;;  %v6074_v26 = vmax.f32 %v7166_v37, 0.0  ;;  %v6080_v58 = vmax.f32 %v7136_v39, 0.0  ;;  %v7168_v51 = vadd.f32 %v5957_v43, %v9575_v9  ;;  %v5959_v41 = vpop.f32.mrb[123].mxu1 }
 0x422   :  { %v6243_v60 = vmul.f32 %v9586_v22, %v6073_v53  ;;  %v6075_v23 = vmax.f32 %v7167_v16, 0.0  ;;  %6358 = vadd.xlane.f32.xlu1 %v6357_v27  ;;  %v6081_v12 = vmax.f32 %v7137_v11, 0.0  ;;  %v7169_v15 = vadd.f32 %v5959_v41, %v9578_v54 }
 0x423   :  { %v6381_v6 = vadd.f32 %v9526_v14, %v6242_v47  ;;  %v6250_v50 = vmul.f32 %v9582_v2, %v6080_v58  ;;  %v6244_v34 = vmul.f32 %v9590_v7, %v6074_v26  ;;  %v6082_v32 = vmax.f32 %v7168_v51, 0.0 }
 0x424   :  { %v6251_v59 = vmul.f32 %v9586_v22, %v6081_v12  ;;  %v6365_v19 = vadd.f32 %v6364_v61, %v6228_v48  ;;  %v5511_v10 = vpop.f32.mrb[124].mxu0  ;;  %v6245_v4 = vmul.f32 %v9596_v36, %v6075_v23  ;;  %v6083_v20 = vmax.f32 %v7169_v15, 0.0 }
 0x425   :  { %v6382_v55 = vadd.f32 %v6381_v6, %v6243_v60  ;;  %v6390_v44 = vadd.f32 %v9539_v18, %v6250_v50  ;;  %v7138_v57 = vadd.f32 %v5511_v10, %v9569_v45  ;;  %v5513_v35 = vpop.f32.mrb[125].mxu0  ;;  %v6374_v28 = vadd.f32 %v6373_v0, %v6236_v42 }
 0x426   :  { %v6366_v52 = vadd.f32 %v6365_v19, %v6229_v1  ;;  %v5963_v14 = vpop.f32.mrb[124].mxu1  ;;  %v7139_v49 = vadd.f32 %v5513_v35, %v9572_v31  ;;  %v5515_v24 = vpop.f32.mrb[126].mxu0  ;;  %v6252_v25 = vmul.f32 %v9590_v7, %v6082_v32  ;;  %v6253_v27 = vmul.f32 %v9596_v36, %v6083_v20 }
 0x427   :  { %v6391_v5 = vadd.f32 %v6390_v44, %v6251_v59  ;;  %v6088_v46 = vmax.f32 %v7138_v57, 0.0  ;;  %v7170_v48 = vadd.f32 %v5963_v14, %v9575_v9  ;;  %v5965_v61 = vpop.f32.mrb[125].mxu1  ;;  %v7140_v62 = vadd.f32 %v5515_v24, %v9569_v45  ;;  %v5517_v63 = vpop.f32.mrb[127].mxu0 }
 0x428   :  { %6367 = vadd.xlane.f32.xlu0 %v6366_v52  ;;  %v6089_v18 = vmax.f32 %v7139_v49, 0.0  ;;  %v7171_v21 = vadd.f32 %v5965_v61, %v9578_v54  ;;  %v6375_v38 = vadd.f32 %v6374_v28, %v6237_v13  ;;  %v5967_v29 = vpop.f32.mrb[126].mxu1  ;;  %v7141_v1 = vadd.f32 %v5517_v63, %v9572_v31 }
 0x429   :  { %v6258_v40 = vmul.f32 %v9582_v2, %v6088_v46  ;;  %v6090_v17 = vmax.f32 %v7170_v48, 0.0  ;;  %v6096_v33 = vmax.f32 %v7140_v62, 0.0  ;;  %v7172_v0 = vadd.f32 %v5967_v29, %v9575_v9  ;;  %v5969_v56 = vpop.f32.mrb[127].mxu1 }
 0x42a   :  { %v6259_v37 = vmul.f32 %v9586_v22, %v6089_v18  ;;  %v6091_v8 = vmax.f32 %v7171_v21, 0.0  ;;  %6376 = vadd.xlane.f32.xlu1 %v6375_v38  ;;  %v6097_v45 = vmax.f32 %v7141_v1, 0.0  ;;  %v7173_v39 = vadd.f32 %v5969_v56, %v9578_v54 }
 0x42b   :  { %v6399_v53 = vadd.f32 %v9544_v30, %v6258_v40  ;;  %v6266_v31 = vmul.f32 %v9582_v2, %v6096_v33  ;;  %v6098_v16 = vmax.f32 %v7172_v0, 0.0  ;;  %v6260_v43 = vmul.f32 %v9590_v7, %v6090_v17 }
 0x42c   :  { %v6267_v9 = vmul.f32 %v9586_v22, %v6097_v45  ;;  %v6383_v11 = vadd.f32 %v6382_v55, %v6244_v34  ;;  %v6099_v58 = vmax.f32 %v7173_v39, 0.0  ;;  %v6392_v51 = vadd.f32 %v6391_v5, %v6252_v25 }
 0x42d   :  { %v6400_v47 = vadd.f32 %v6399_v53, %v6259_v37  ;;  %v6408_v26 = vadd.f32 %v9551_v3, %v6266_v31  ;;  %v6261_v54 = vmul.f32 %v9596_v36, %v6091_v8  ;;  %v6268_v30 = vmul.f32 %v9590_v7, %v6098_v16  ;;  %v7045_v3 = vld [vmem:[#allocation2] ss:$0 sm:$0xff] }
 0x42e   :  { %v6384_v41 = vadd.f32 %v6383_v11, %v6245_v4  ;;  %v6393_v2 = vadd.f32 %v6392_v51, %v6253_v27  ;;  %v6269_v12 = vmul.f32 %v9596_v36, %v6099_v58 }
 0x42f   :  { %v6409_v60 = vadd.f32 %v6408_v26, %v6267_v9  ;;  %v6401_v23 = vadd.f32 %v6400_v47, %v6260_v43 }
 0x430   :  { %6385 = vadd.xlane.f32.xlu0 %v6384_v41  ;;  %6394 = vadd.xlane.f32.xlu1 %v6393_v2 }
 0x431   :  { %v6402_v15 = vadd.f32 %v6401_v23, %v6261_v54  ;;  %v6410_v22 = vadd.f32 %v6409_v60, %v6268_v30 }
 0x433   :  { %v6411_v42 = vadd.f32 %v6410_v22, %v6269_v12 }
 0x434   :  { %6403 = vadd.xlane.f32.xlu0 %v6402_v15 }
 0x435   :  { %6412 = vadd.xlane.f32.xlu1 %v6411_v42 }
 0x48a   :  { %v6278_v13 = vpop.xlane.xlu0 %6277 }
 0x48b   :  { %v6421_v6 = vadd.f32 %v7045_v3, %v6278_v13 }
 0x48d   :  { %6438 = vst.msk [vmem:[%s9807_s7] sm:$0xff] %vm6437_vm1, %v6421_v6 }
 0x48e   :  { %v6287_v7 = vpop.xlane.xlu0 %6286 }
 0x48f   :  { %v6422_v50 = vadd.f32 %v7045_v3, %v6287_v7 }
 0x491   :  { %6439 = vst.msk [vmem:[%s9807_s7 + $0x8] sm:$0xff] %vm6437_vm1, %v6422_v50 }
 0x492   :  { %v6296_v36 = vpop.xlane.xlu1 %6295 }
 0x493   :  { %v6423_v34 = vadd.f32 %v7045_v3, %v6296_v36 }
 0x495   :  { %6440 = vst.msk [vmem:[%s9807_s7 + $0x10] sm:$0xff] %vm6437_vm1, %v6423_v34 }
 0x497   :  { %v6305_v32 = vpop.xlane.xlu1 %6304 }
 0x498   :  { %v6424_v59 = vadd.f32 %v7045_v3, %v6305_v32 }
 0x49a   :  { %6441 = vst.msk [vmem:[%s9807_s7 + $0x18] sm:$0xff] %vm6437_vm1, %v6424_v59 }
 0x49d   :  { %v6314_v19 = vpop.xlane.xlu0 %6313 }
 0x49e   :  { %v6425_v10 = vadd.f32 %v7045_v3, %v6314_v19 }
 0x49f   :  { %v6323_v55 = vpop.xlane.xlu1 %6322 }
 0x4a0   :  { %6442 = vst.msk [vmem:[%s9807_s7 + $0x20] sm:$0xff] %vm6437_vm1, %v6425_v10  ;;  %v6426_v4 = vadd.f32 %v7045_v3, %v6323_v55 }
 0x4a2   :  { %6443 = vst.msk [vmem:[%s9807_s7 + $0x28] sm:$0xff] %vm6437_vm1, %v6426_v4 }
 0x4a5   :  { %v6332_v44 = vpop.xlane.xlu0 %6331 }
 0x4a6   :  { %v6427_v57 = vadd.f32 %v7045_v3, %v6332_v44 }
 0x4a7   :  { %v6341_v35 = vpop.xlane.xlu1 %6340 }
 0x4a8   :  { %6444 = vst.msk [vmem:[%s9807_s7 + $0x30] sm:$0xff] %vm6437_vm1, %v6427_v57  ;;  %v6428_v20 = vadd.f32 %v7045_v3, %v6341_v35 }
 0x4aa   :  { %6445 = vst.msk [vmem:[%s9807_s7 + $0x38] sm:$0xff] %vm6437_vm1, %v6428_v20 }
 0x4ad   :  { %v6350_v52 = vpop.xlane.xlu0 %6349 }
 0x4ae   :  { %v6429_v14 = vadd.f32 %v7045_v3, %v6350_v52 }
 0x4af   :  { %v6359_v49 = vpop.xlane.xlu1 %6358 }
 0x4b0   :  { %6446 = vst.msk [vmem:[%s9807_s7 + $0x40] sm:$0xff] %vm6437_vm1, %v6429_v14  ;;  %v6430_v28 = vadd.f32 %v7045_v3, %v6359_v49 }
 0x4b2   :  { %6447 = vst.msk [vmem:[%s9807_s7 + $0x48] sm:$0xff] %vm6437_vm1, %v6430_v28 }
 0x4b5   :  { %v6368_v24 = vpop.xlane.xlu0 %6367 }
 0x4b6   :  { %v6431_v5 = vadd.f32 %v7045_v3, %v6368_v24 }
 0x4b7   :  { %v6377_v46 = vpop.xlane.xlu1 %6376 }
 0x4b8   :  { %6448 = vst.msk [vmem:[%s9807_s7 + $0x50] sm:$0xff] %vm6437_vm1, %v6431_v5  ;;  %v6432_v48 = vadd.f32 %v7045_v3, %v6377_v46 }
 0x4ba   :  { %6449 = vst.msk [vmem:[%s9807_s7 + $0x58] sm:$0xff] %vm6437_vm1, %v6432_v48 }
 0x4bd   :  { %v6386_v61 = vpop.xlane.xlu0 %6385  ;;  %v6395_v63 = vpop.xlane.xlu1 %6394 }
 0x4be   :  { %v6433_v62 = vadd.f32 %v7045_v3, %v6386_v61  ;;  %v6434_v18 = vadd.f32 %v7045_v3, %v6395_v63 }
 0x4c0   :  { %6450 = vst.msk [vmem:[%s9807_s7 + $0x60] sm:$0xff] %vm6437_vm1, %v6433_v62  ;;  %6451 = vst.msk [vmem:[%s9807_s7 + $0x68] sm:$0xff] %vm6437_vm1, %v6434_v18 }
 0x4c1   :  { %v6404_v21 = vpop.xlane.xlu0 %6403 }
 0x4c2   :  { %v6435_v38 = vadd.f32 %v7045_v3, %v6404_v21  ;;  %v6413_v29 = vpop.xlane.xlu1 %6412 }
 0x4c3   :  { %v6436_v1 = vadd.f32 %v7045_v3, %v6413_v29 }
 0x4c4   :  { %6452 = vst.msk [vmem:[%s9807_s7 + $0x70] sm:$0xff] %vm6437_vm1, %v6435_v38 }
 0x4c5   :  { %6453 = vst.msk [vmem:[%s9807_s7 + $0x78] sm:$0xff] %vm6437_vm1, %v6436_v1 }
 0x4c6   :  { %6458 = vsyncpa [#allocation4], 1 }
 0x4c7   :  { %6459 = vsyncpa [#allocation6], 1 }
 0x4c8   :  { %6460 = vsyncpa [#allocation9], 1 }

</bundles_post_ra>
